<compile_context>
chip_gen: v7x
topology: tpu7x:2x2x1
jax: 0.10.0
libtpu: 0.0.40
codegen_flags: <defaults>
</compile_context>

<pallas_src>
import jax
import jax.numpy as jnp
import numpy as np
from jax.experimental import pallas as pl
from jax.experimental.pallas import tpu as pltpu

EPS = 1e-5


def _round_up(x, m):
    return (x + m - 1) // m * m


def _interior_mask(H, W, offset, length):
    """(1, length) f32 mask: 1.0 at buffer lanes holding real (interior) pixels."""
    m = np.zeros((1, length), np.float32)
    Wp = W + 2
    for h in range(H):
        for w in range(W):
            m[0, offset + (h + 1) * Wp + (w + 1)] = 1.0
    return jnp.asarray(m)


def _batch_groups(n):
    """Grid groups: fold the whole batch into one step on single-TensorCore
    chips (v5e/v6e); keep one step per element elsewhere (v7x/megacore)."""
    try:
        kind = jax.devices()[0].device_kind.lower()
    except Exception:
        return n
    single_core = any(s in kind for s in
                      ("v5e", "v5 lite", "v5lite", "v6e", "v6 lite", "v6lite"))
    return 1 if single_core else n


def conv_unit_forward(x_nchw, params):
    """ConvUnit.forward (2 subunits + 1x1-conv residual). NCHW in / NCHW out."""
    w0, b0, a0, w1, b1, a1, wr, br = params
    del b0, b1  # cancelled exactly by the non-affine InstanceNorm (adn="NDA")

    N, Cin, H, W = x_nchw.shape
    Cout = w0.shape[-1]
    Hp, Wp = H + 2, W + 2
    P = Hp * Wp                                   # flattened padded grid size
    # tap offsets of a 3x3 / pad=1 conv in the flattened padded grid
    deltas = [(ky - 1) * Wp + (kx - 1) for ky in range(3) for kx in range(3)]
    margin = _round_up(max(abs(d) for d in deltas), 32)   # 32 for W=16
    L_out = _round_up(P, 128)                     # 384: lane-dense output width
    L_mid = L_out + 2 * margin                    # 448: intermediate frame
    L_in = L_mid + 2 * margin                     # 512: padded input buffer
    inv_hw = 1.0 / float(H * W)
    HIGHEST = jax.lax.Precision.HIGHEST

    # stacked-K sizes (padded to sublane multiples with explicit zeros)
    K0 = _round_up(10 * Cin, 8)                   # 9 conv0 taps + residual rows
    ROWS_C1 = 9 * Cout                            # conv1 tap rows in the y-stack
    ROW_RES = ROWS_C1                             # residual x rows start
    ROW_ONE = ROWS_C1 + Cin                       # ones row (residual bias)
    K1 = _round_up(ROW_ONE + 1, 8)                # 80 for Cout=8, Cin=4

    # ----------------- wrapper-side layout plumbing (tiny XLA glue) ----------
    xp = jnp.pad(x_nchw, ((0, 0), (0, 0), (1, 1), (1, 1))).reshape(N, Cin, P)
    x_buf = jnp.pad(xp, ((0, 0), (0, 0), (2 * margin, L_in - P - 2 * margin)))

    # im2col stack for conv0 (rows 0:9*Cin) + residual/center rows (output
    # frame, lane j <-> padded position j).  ~63 KiB per batch element.
    blocks = [x_buf[:, :, margin + d: margin + d + L_mid] for d in deltas]
    blocks.append(x_buf[:, :, 2 * margin: 2 * margin + L_mid])
    x_stack = jnp.concatenate(blocks, axis=1)                  # (N, 10*Cin, L_mid)
    if x_stack.shape[1] < K0:
        x_stack = jnp.pad(x_stack, ((0, 0), (0, K0 - x_stack.shape[1]), (0, 0)))

    # lane-dense 2-D weights
    w0_stack = jnp.transpose(w0, (3, 0, 1, 2)).reshape(Cout, 9 * Cin)
    w0_stack = jnp.pad(w0_stack, ((0, 0), (0, K0 - 9 * Cin)))   # (Cout, K0)

    w1_stack = jnp.transpose(w1, (3, 0, 1, 2)).reshape(Cout, 9 * Cout)
    w1_big = jnp.zeros((2 * Cout, K1), jnp.float32)
    w1_big = w1_big.at[:Cout, :ROWS_C1].set(w1_stack)           # conv1 rows
    w1_big = w1_big.at[Cout:, ROW_RES:ROW_RES + Cin].set(wr.T)  # residual rows
    w1_big = w1_big.at[Cout:, ROW_ONE].set(br)                  # bias via ones row

    m_mid = _interior_mask(H, W, margin, L_mid)                 # (1, L_mid)
    mcol_mid = m_mid.reshape(L_mid, 1)                          # (L_mid, 1)
    mcol_out = _interior_mask(H, W, 0, L_out).reshape(L_out, 1)  # (L_out, 1)
    alphas = jnp.stack([a0, a1]).astype(jnp.float32)            # (2,) -> SMEM

    G = _batch_groups(N)                                        # grid steps
    NB = N // G                                                 # elems per step

    def kernel(x_ref, w0_ref, w1_ref, mrow_ref, mcm_ref, mco_ref, a_ref,
               o_ref, y0_ref, ys_ref):
        # one-time rows of the conv1 stacked operand: ones row (residual bias)
        # and zeroed K-padding rows (never left uninitialized for the matmul).
        ys_ref[ROW_ONE:ROW_ONE + 1, :] = jnp.ones((1, L_out), jnp.float32)
        if ROW_ONE + 1 < K1:
            ys_ref[ROW_ONE + 1:K1, :] = jnp.zeros((K1 - ROW_ONE - 1, L_out),
                                                  jnp.float32)

        a0_s = a_ref[0]
        a1_s = a_ref[1]
        m_full = jnp.broadcast_to(mrow_ref[...], (Cout, L_mid))  # hoisted
        mcm = mcm_ref[...]
        mco = mco_ref[...]

        for b in range(NB):                      # unrolled over folded batch
            # ---- subunit 0: stacked-K 3x3 conv -> InstanceNorm -> PReLU ----
            acc0 = jnp.dot(w0_ref[...], x_ref[b],
                           preferred_element_type=jnp.float32,
                           precision=HIGHEST)                    # (Cout, L_mid)
            stats0 = jnp.dot(jnp.concatenate([acc0, acc0 * acc0], axis=0),
                             mcm, preferred_element_type=jnp.float32,
                             precision=HIGHEST) * inv_hw         # (2*Cout, 1)
            mean0 = stats0[:Cout]
            var0 = stats0[Cout:] - mean0 * mean0
            y0 = (acc0 - mean0) * jax.lax.rsqrt(var0 + EPS)
            y0 = jnp.where(y0 >= 0.0, y0, a0_s * y0)
            # re-zero non-interior lanes: they ARE the zero padding of conv1
            y0_ref[...] = y0 * m_full

            # ---- build conv1 stacked operand: 9 shifted copies + residual ----
            for k in range(9):
                s = margin + deltas[k]
                ys_ref[k * Cout:(k + 1) * Cout, :] = y0_ref[:, s:s + L_out]
            ys_ref[ROW_RES:ROW_RES + Cin, :] = \
                x_ref[b, 9 * Cin:9 * Cin + Cin, 0:L_out]

            # ---- subunit 1 conv + residual 1x1 conv in ONE matmul ----
            acc1res = jnp.dot(w1_ref[...], ys_ref[...],
                              preferred_element_type=jnp.float32,
                              precision=HIGHEST)                 # (2*Cout, L_out)
            acc1 = acc1res[:Cout]
            res = acc1res[Cout:]                                 # incl. bias br
            stats1 = jnp.dot(jnp.concatenate([acc1, acc1 * acc1], axis=0),
                             mco, preferred_element_type=jnp.float32,
                             precision=HIGHEST) * inv_hw
            mean1 = stats1[:Cout]
            var1 = stats1[Cout:] - mean1 * mean1
            y1 = (acc1 - mean1) * jax.lax.rsqrt(var1 + EPS)
            y1 = jnp.where(y1 >= 0.0, y1, a1_s * y1)

            o_ref[b] = (y1 + res).astype(o_ref.dtype)

    out_buf = pl.pallas_call(
        kernel,
        out_shape=jax.ShapeDtypeStruct((N, Cout, L_out), jnp.float32),
        grid=(G,),
        in_specs=[
            pl.BlockSpec((NB, K0, L_mid), lambda g: (g, 0, 0)),
            pl.BlockSpec((Cout, K0), lambda g: (0, 0)),
            pl.BlockSpec((2 * Cout, K1), lambda g: (0, 0)),
            pl.BlockSpec((1, L_mid), lambda g: (0, 0)),
            pl.BlockSpec((L_mid, 1), lambda g: (0, 0)),
            pl.BlockSpec((L_out, 1), lambda g: (0, 0)),
            pl.BlockSpec(memory_space=pltpu.MemorySpace.SMEM),   # PReLU alphas
        ],
        out_specs=pl.BlockSpec((NB, Cout, L_out), lambda g: (g, 0, 0)),
        scratch_shapes=[pltpu.VMEM((Cout, L_mid), jnp.float32),
                        pltpu.VMEM((K1, L_out), jnp.float32)],
        compiler_params=pltpu.CompilerParams(
            dimension_semantics=("parallel",)),
    )(x_stack, w0_stack, w1_big, m_mid, mcol_mid, mcol_out, alphas)

    # drop the zero-padding ring: (N, Cout, L_out) is already channel-major,
    # so this is NCHW with no transpose.
    return out_buf[:, :, :P].reshape(N, Cout, Hp, Wp)[:, :, 1:H + 1, 1:W + 1]


# ----------------------------- pure-JAX reference ----------------------------

def _ref_forward(x_nchw, params):
    w0, b0, a0, w1, b1, a1, wr, br = params
    x = jnp.transpose(x_nchw, (0, 2, 3, 1))

    def conv3x3(v, w, b):
        y = jax.lax.conv_general_dilated(
            v, w, window_strides=(1, 1), padding="SAME",
            dimension_numbers=("NHWC", "HWIO", "NHWC"),
            precision=jax.lax.Precision.HIGHEST)
        return y + b

    def inorm(y):
        m = y.mean(axis=(1, 2), keepdims=True)
        v = ((y - m) ** 2).mean(axis=(1, 2), keepdims=True)
        return (y - m) * jax.lax.rsqrt(v + EPS)

    def prelu(y, a):
        return jnp.where(y >= 0.0, y, a * y)

    y = prelu(inorm(conv3x3(x, w0, b0)), a0)
    y = prelu(inorm(conv3x3(y, w1, b1)), a1)
    res = jnp.einsum("nhwc,co->nhwo", x, wr,
                     precision=jax.lax.Precision.HIGHEST) + br
    return (y + res).transpose(0, 3, 1, 2)


# ------------------------------------ main ------------------------------------

if __name__ == "__main__":
    N, Cin, Cout, H, W = 2, 4, 8, 16, 16

    key = jax.random.PRNGKey(0)
    kx, kw0, kb0, kw1, kb1, kwr, kbr = jax.random.split(key, 7)

    x = jax.random.normal(kx, (N, Cin, H, W), dtype=jnp.float32)

    # Synthetic parameters (shapes follow the module's __init__; bias=True).
    w0 = 0.1 * jax.random.normal(kw0, (3, 3, Cin, Cout), dtype=jnp.float32)
    b0 = 0.1 * jax.random.normal(kb0, (Cout,), dtype=jnp.float32)
    a0 = jnp.asarray(0.25, dtype=jnp.float32)          # PReLU default init
    w1 = 0.1 * jax.random.normal(kw1, (3, 3, Cout, Cout), dtype=jnp.float32)
    b1 = 0.1 * jax.random.normal(kb1, (Cout,), dtype=jnp.float32)
    a1 = jnp.asarray(0.25, dtype=jnp.float32)
    wr = 0.1 * jax.random.normal(kwr, (Cin, Cout), dtype=jnp.float32)  # 1x1 residual
    br = 0.1 * jax.random.normal(kbr, (Cout,), dtype=jnp.float32)
    params = (w0, b0, a0, w1, b1, a1, wr, br)

    # TODO(synk): dropout is None in this configuration, so no dropout path.

    out = jax.block_until_ready(conv_unit_forward(x, params))
    ref = jax.block_until_ready(_ref_forward(x, params))

    # All kernel matmuls run at HIGHEST (f32) precision now; the remaining
    # tolerance covers one-pass-vs-two-pass variance and rsqrt approximation
    # differences between the Mosaic and XLA lowerings.
    np.testing.assert_allclose(np.asarray(out), np.asarray(ref),
                               rtol=1e-3, atol=1e-3)

    print("KERNEL_OK")
</pallas_src>

<mosaic_0001>
module attributes {stable_mosaic.version = 11 : i64} {
  func.func @kernel(%arg0: i32, %arg1: memref<1x40x448xf32, #tpu.memory_space<vmem>>, %arg2: memref<8x40xf32, #tpu.memory_space<vmem>>, %arg3: memref<16x80xf32, #tpu.memory_space<vmem>>, %arg4: memref<1x448xf32, #tpu.memory_space<vmem>>, %arg5: memref<448x1xf32, #tpu.memory_space<vmem>>, %arg6: memref<384x1xf32, #tpu.memory_space<vmem>>, %arg7: memref<2xf32, #tpu.memory_space<smem>>, %arg8: memref<1x8x384xf32, #tpu.memory_space<vmem>>, %arg9: memref<8x448xf32, #tpu.memory_space<vmem>>, %arg10: memref<80x384xf32, #tpu.memory_space<vmem>>) attributes {dimension_semantics = [#tpu.dimension_semantics<parallel>], iteration_bounds = array<i64: 2>, scalar_prefetch = 0 : i64, scratch_operands = 2 : i64, tpu.core_type = #tpu.core_type<tc>, window_params = [{transform_indices = @transform_0, window_bounds = array<i64: 1, 40, 448>}, {pipeline_mode = #tpu.pipeline_mode<synchronous>, transform_indices = @transform_1, window_bounds = array<i64: 8, 40>}, {pipeline_mode = #tpu.pipeline_mode<synchronous>, transform_indices = @transform_2, window_bounds = array<i64: 16, 80>}, {pipeline_mode = #tpu.pipeline_mode<synchronous>, transform_indices = @transform_3, window_bounds = array<i64: 1, 448>}, {pipeline_mode = #tpu.pipeline_mode<synchronous>, transform_indices = @transform_4, window_bounds = array<i64: 448, 1>}, {pipeline_mode = #tpu.pipeline_mode<synchronous>, transform_indices = @transform_5, window_bounds = array<i64: 384, 1>}, {transform_indices = @transform_6, window_bounds = array<i64: 2>}, {transform_indices = @transform_7, window_bounds = array<i64: 1, 8, 384>}]} {
    %cst = arith.constant 1.000000e+00 : f32
    %0 = vector.broadcast %cst : f32 to vector<1x384xf32>
    %c76 = arith.constant 76 : index
    %c0 = arith.constant 0 : index
    %1 = vector.load %arg10[%c76, %c0] : memref<80x384xf32, #tpu.memory_space<vmem>>, vector<1x384xf32>
    tpu.vector_store %arg10[%c76, %c0], %0 {strides = array<i32>} : memref<80x384xf32, #tpu.memory_space<vmem>>, vector<1x384xf32>,
    %cst_0 = arith.constant 0.000000e+00 : f32
    %2 = vector.broadcast %cst_0 : f32 to vector<3x384xf32>
    %c77 = arith.constant 77 : index
    %c0_1 = arith.constant 0 : index
    %3 = vector.load %arg10[%c77, %c0_1] : memref<80x384xf32, #tpu.memory_space<vmem>>, vector<3x384xf32>
    tpu.vector_store %arg10[%c77, %c0_1], %2 {strides = array<i32>} : memref<80x384xf32, #tpu.memory_space<vmem>>, vector<3x384xf32>,
    %c0_2 = arith.constant 0 : index
    %4 = memref.load %arg7[%c0_2] : memref<2xf32, #tpu.memory_space<smem>>
    %c1 = arith.constant 1 : index
    %5 = memref.load %arg7[%c1] : memref<2xf32, #tpu.memory_space<smem>>
    %c0_3 = arith.constant 0 : index
    %c0_4 = arith.constant 0 : index
    %6 = vector.load %arg4[%c0_3, %c0_4] : memref<1x448xf32, #tpu.memory_space<vmem>>, vector<1x448xf32>
    %7 = vector.shape_cast %6 : vector<1x448xf32> to vector<1x448xf32>
    %8 = vector.broadcast %7 : vector<1x448xf32> to vector<8x448xf32>
    %c0_5 = arith.constant 0 : index
    %c0_6 = arith.constant 0 : index
    %9 = vector.load %arg5[%c0_5, %c0_6] : memref<448x1xf32, #tpu.memory_space<vmem>>, vector<448x1xf32>
    %c0_7 = arith.constant 0 : index
    %c0_8 = arith.constant 0 : index
    %10 = vector.load %arg6[%c0_7, %c0_8] : memref<384x1xf32, #tpu.memory_space<vmem>>, vector<384x1xf32>
    %c0_9 = arith.constant 0 : index
    %c0_10 = arith.constant 0 : index
    %11 = vector.load %arg2[%c0_9, %c0_10] : memref<8x40xf32, #tpu.memory_space<vmem>>, vector<8x40xf32>
    %c0_11 = arith.constant 0 : index
    %c0_12 = arith.constant 0 : index
    %c0_13 = arith.constant 0 : index
    %12 = vector.load %arg1[%c0_11, %c0_12, %c0_13] : memref<1x40x448xf32, #tpu.memory_space<vmem>>, vector<1x40x448xf32>
    %13 = vector.shape_cast %12 : vector<1x40x448xf32> to vector<40x448xf32>
    %cst_14 = arith.constant dense<0.000000e+00> : vector<8x448xf32>
    %14 = tpu.matmul %11, %13, %cst_14 {dimension_numbers = #tpu.dot_dimension_numbers<[1], [0], [0], [1], [0, 0, 1, 1], [], []>, precision = #tpu.contract_precision<fp32>} : vector<8x40xf32>, vector<40x448xf32>, vector<8x448xf32> -> vector<8x448xf32>
    %15 = arith.mulf %14, %14 : vector<8x448xf32>
    %16 = tpu.concatenate %14, %15 in 0 : vector<8x448xf32>, vector<8x448xf32> -> vector<16x448xf32>
    %cst_15 = arith.constant dense<0.000000e+00> : vector<16x1xf32>
    %17 = tpu.matmul %16, %9, %cst_15 {dimension_numbers = #tpu.dot_dimension_numbers<[1], [0], [0], [1], [0, 0, 1, 1], [], []>, precision = #tpu.contract_precision<fp32>} : vector<16x448xf32>, vector<448x1xf32>, vector<16x1xf32> -> vector<16x1xf32>
    %cst_16 = arith.constant 3.906250e-03 : f32
    %18 = vector.broadcast %cst_16 : f32 to vector<16x1xf32>
    %19 = arith.mulf %17, %18 : vector<16x1xf32>
    %20 = vector.extract_strided_slice %19 {offsets = [0, 0], sizes = [8, 1], strides = [1, 1]} : vector<16x1xf32> to vector<8x1xf32>
    %21 = vector.extract_strided_slice %19 {offsets = [8, 0], sizes = [8, 1], strides = [1, 1]} : vector<16x1xf32> to vector<8x1xf32>
    %22 = arith.mulf %20, %20 : vector<8x1xf32>
    %23 = arith.subf %21, %22 : vector<8x1xf32>
    %24 = vector.broadcast %20 : vector<8x1xf32> to vector<8x448xf32>
    %25 = arith.subf %14, %24 : vector<8x448xf32>
    %cst_17 = arith.constant 9.99999974E-6 : f32
    %26 = vector.broadcast %cst_17 : f32 to vector<8x1xf32>
    %27 = arith.addf %23, %26 : vector<8x1xf32>
    %28 = math.rsqrt %27 : vector<8x1xf32>
    %29 = vector.broadcast %28 : vector<8x1xf32> to vector<8x448xf32>
    %30 = arith.mulf %25, %29 : vector<8x448xf32>
    %cst_18 = arith.constant 0.000000e+00 : f32
    %31 = vector.broadcast %cst_18 : f32 to vector<8x448xf32>
    %32 = arith.cmpf oge, %30, %31 : vector<8x448xf32>
    %33 = vector.broadcast %4 : f32 to vector<8x448xf32>
    %34 = arith.mulf %33, %30 : vector<8x448xf32>
    %35 = arith.select %32, %30, %34 : vector<8x448xi1>, vector<8x448xf32>
    %36 = arith.mulf %35, %8 : vector<8x448xf32>
    %c0_19 = arith.constant 0 : index
    %c0_20 = arith.constant 0 : index
    %37 = vector.load %arg9[%c0_19, %c0_20] : memref<8x448xf32, #tpu.memory_space<vmem>>, vector<8x448xf32>
    tpu.vector_store %arg9[%c0_19, %c0_20], %36 {strides = array<i32>} : memref<8x448xf32, #tpu.memory_space<vmem>>, vector<8x448xf32>,
    %c0_21 = arith.constant 0 : index
    %c13 = arith.constant 13 : index
    %38 = vector.load %arg9[%c0_21, %c13] : memref<8x448xf32, #tpu.memory_space<vmem>>, vector<8x384xf32>
    %c0_22 = arith.constant 0 : index
    %c0_23 = arith.constant 0 : index
    %39 = vector.load %arg10[%c0_22, %c0_23] : memref<80x384xf32, #tpu.memory_space<vmem>>, vector<8x384xf32>
    tpu.vector_store %arg10[%c0_22, %c0_23], %38 {strides = array<i32>} : memref<80x384xf32, #tpu.memory_space<vmem>>, vector<8x384xf32>,
    %c0_24 = arith.constant 0 : index
    %c14 = arith.constant 14 : index
    %40 = vector.load %arg9[%c0_24, %c14] : memref<8x448xf32, #tpu.memory_space<vmem>>, vector<8x384xf32>
    %c8 = arith.constant 8 : index
    %c0_25 = arith.constant 0 : index
    %41 = vector.load %arg10[%c8, %c0_25] : memref<80x384xf32, #tpu.memory_space<vmem>>, vector<8x384xf32>
    tpu.vector_store %arg10[%c8, %c0_25], %40 {strides = array<i32>} : memref<80x384xf32, #tpu.memory_space<vmem>>, vector<8x384xf32>,
    %c0_26 = arith.constant 0 : index
    %c15 = arith.constant 15 : index
    %42 = vector.load %arg9[%c0_26, %c15] : memref<8x448xf32, #tpu.memory_space<vmem>>, vector<8x384xf32>
    %c16 = arith.constant 16 : index
    %c0_27 = arith.constant 0 : index
    %43 = vector.load %arg10[%c16, %c0_27] : memref<80x384xf32, #tpu.memory_space<vmem>>, vector<8x384xf32>
    tpu.vector_store %arg10[%c16, %c0_27], %42 {strides = array<i32>} : memref<80x384xf32, #tpu.memory_space<vmem>>, vector<8x384xf32>,
    %c0_28 = arith.constant 0 : index
    %c31 = arith.constant 31 : index
    %44 = vector.load %arg9[%c0_28, %c31] : memref<8x448xf32, #tpu.memory_space<vmem>>, vector<8x384xf32>
    %c24 = arith.constant 24 : index
    %c0_29 = arith.constant 0 : index
    %45 = vector.load %arg10[%c24, %c0_29] : memref<80x384xf32, #tpu.memory_space<vmem>>, vector<8x384xf32>
    tpu.vector_store %arg10[%c24, %c0_29], %44 {strides = array<i32>} : memref<80x384xf32, #tpu.memory_space<vmem>>, vector<8x384xf32>,
    %c0_30 = arith.constant 0 : index
    %c32 = arith.constant 32 : index
    %46 = vector.load %arg9[%c0_30, %c32] : memref<8x448xf32, #tpu.memory_space<vmem>>, vector<8x384xf32>
    %c32_31 = arith.constant 32 : index
    %c0_32 = arith.constant 0 : index
    %47 = vector.load %arg10[%c32_31, %c0_32] : memref<80x384xf32, #tpu.memory_space<vmem>>, vector<8x384xf32>
    tpu.vector_store %arg10[%c32_31, %c0_32], %46 {strides = array<i32>} : memref<80x384xf32, #tpu.memory_space<vmem>>, vector<8x384xf32>,
    %c0_33 = arith.constant 0 : index
    %c33 = arith.constant 33 : index
    %48 = vector.load %arg9[%c0_33, %c33] : memref<8x448xf32, #tpu.memory_space<vmem>>, vector<8x384xf32>
    %c40 = arith.constant 40 : index
    %c0_34 = arith.constant 0 : index
    %49 = vector.load %arg10[%c40, %c0_34] : memref<80x384xf32, #tpu.memory_space<vmem>>, vector<8x384xf32>
    tpu.vector_store %arg10[%c40, %c0_34], %48 {strides = array<i32>} : memref<80x384xf32, #tpu.memory_space<vmem>>, vector<8x384xf32>,
    %c0_35 = arith.constant 0 : index
    %c49 = arith.constant 49 : index
    %50 = vector.load %arg9[%c0_35, %c49] : memref<8x448xf32, #tpu.memory_space<vmem>>, vector<8x384xf32>
    %c48 = arith.constant 48 : index
    %c0_36 = arith.constant 0 : index
    %51 = vector.load %arg10[%c48, %c0_36] : memref<80x384xf32, #tpu.memory_space<vmem>>, vector<8x384xf32>
    tpu.vector_store %arg10[%c48, %c0_36], %50 {strides = array<i32>} : memref<80x384xf32, #tpu.memory_space<vmem>>, vector<8x384xf32>,
    %c0_37 = arith.constant 0 : index
    %c50 = arith.constant 50 : index
    %52 = vector.load %arg9[%c0_37, %c50] : memref<8x448xf32, #tpu.memory_space<vmem>>, vector<8x384xf32>
    %c56 = arith.constant 56 : index
    %c0_38 = arith.constant 0 : index
    %53 = vector.load %arg10[%c56, %c0_38] : memref<80x384xf32, #tpu.memory_space<vmem>>, vector<8x384xf32>
    tpu.vector_store %arg10[%c56, %c0_38], %52 {strides = array<i32>} : memref<80x384xf32, #tpu.memory_space<vmem>>, vector<8x384xf32>,
    %c0_39 = arith.constant 0 : index
    %c51 = arith.constant 51 : index
    %54 = vector.load %arg9[%c0_39, %c51] : memref<8x448xf32, #tpu.memory_space<vmem>>, vector<8x384xf32>
    %c64 = arith.constant 64 : index
    %c0_40 = arith.constant 0 : index
    %55 = vector.load %arg10[%c64, %c0_40] : memref<80x384xf32, #tpu.memory_space<vmem>>, vector<8x384xf32>
    tpu.vector_store %arg10[%c64, %c0_40], %54 {strides = array<i32>} : memref<80x384xf32, #tpu.memory_space<vmem>>, vector<8x384xf32>,
    %c0_41 = arith.constant 0 : index
    %c36 = arith.constant 36 : index
    %c0_42 = arith.constant 0 : index
    %56 = vector.load %arg1[%c0_41, %c36, %c0_42] : memref<1x40x448xf32, #tpu.memory_space<vmem>>, vector<1x4x384xf32>
    %57 = vector.shape_cast %56 : vector<1x4x384xf32> to vector<4x384xf32>
    %c72 = arith.constant 72 : index
    %c0_43 = arith.constant 0 : index
    %58 = vector.load %arg10[%c72, %c0_43] : memref<80x384xf32, #tpu.memory_space<vmem>>, vector<4x384xf32>
    tpu.vector_store %arg10[%c72, %c0_43], %57 {strides = array<i32>} : memref<80x384xf32, #tpu.memory_space<vmem>>, vector<4x384xf32>,
    %c0_44 = arith.constant 0 : index
    %c0_45 = arith.constant 0 : index
    %59 = vector.load %arg3[%c0_44, %c0_45] : memref<16x80xf32, #tpu.memory_space<vmem>>, vector<16x80xf32>
    %c0_46 = arith.constant 0 : index
    %c0_47 = arith.constant 0 : index
    %60 = vector.load %arg10[%c0_46, %c0_47] : memref<80x384xf32, #tpu.memory_space<vmem>>, vector<80x384xf32>
    %cst_48 = arith.constant dense<0.000000e+00> : vector<16x384xf32>
    %61 = tpu.matmul %59, %60, %cst_48 {dimension_numbers = #tpu.dot_dimension_numbers<[1], [0], [0], [1], [0, 0, 1, 1], [], []>, precision = #tpu.contract_precision<fp32>} : vector<16x80xf32>, vector<80x384xf32>, vector<16x384xf32> -> vector<16x384xf32>
    %62 = vector.extract_strided_slice %61 {offsets = [0, 0], sizes = [8, 384], strides = [1, 1]} : vector<16x384xf32> to vector<8x384xf32>
    %63 = vector.extract_strided_slice %61 {offsets = [8, 0], sizes = [8, 384], strides = [1, 1]} : vector<16x384xf32> to vector<8x384xf32>
    %64 = arith.mulf %62, %62 : vector<8x384xf32>
    %65 = tpu.concatenate %62, %64 in 0 : vector<8x384xf32>, vector<8x384xf32> -> vector<16x384xf32>
    %cst_49 = arith.constant dense<0.000000e+00> : vector<16x1xf32>
    %66 = tpu.matmul %65, %10, %cst_49 {dimension_numbers = #tpu.dot_dimension_numbers<[1], [0], [0], [1], [0, 0, 1, 1], [], []>, precision = #tpu.contract_precision<fp32>} : vector<16x384xf32>, vector<384x1xf32>, vector<16x1xf32> -> vector<16x1xf32>
    %cst_50 = arith.constant 3.906250e-03 : f32
    %67 = vector.broadcast %cst_50 : f32 to vector<16x1xf32>
    %68 = arith.mulf %66, %67 : vector<16x1xf32>
    %69 = vector.extract_strided_slice %68 {offsets = [0, 0], sizes = [8, 1], strides = [1, 1]} : vector<16x1xf32> to vector<8x1xf32>
    %70 = vector.extract_strided_slice %68 {offsets = [8, 0], sizes = [8, 1], strides = [1, 1]} : vector<16x1xf32> to vector<8x1xf32>
    %71 = arith.mulf %69, %69 : vector<8x1xf32>
    %72 = arith.subf %70, %71 : vector<8x1xf32>
    %73 = vector.broadcast %69 : vector<8x1xf32> to vector<8x384xf32>
    %74 = arith.subf %62, %73 : vector<8x384xf32>
    %cst_51 = arith.constant 9.99999974E-6 : f32
    %75 = vector.broadcast %cst_51 : f32 to vector<8x1xf32>
    %76 = arith.addf %72, %75 : vector<8x1xf32>
    %77 = math.rsqrt %76 : vector<8x1xf32>
    %78 = vector.broadcast %77 : vector<8x1xf32> to vector<8x384xf32>
    %79 = arith.mulf %74, %78 : vector<8x384xf32>
    %cst_52 = arith.constant 0.000000e+00 : f32
    %80 = vector.broadcast %cst_52 : f32 to vector<8x384xf32>
    %81 = arith.cmpf oge, %79, %80 : vector<8x384xf32>
    %82 = vector.broadcast %5 : f32 to vector<8x384xf32>
    %83 = arith.mulf %82, %79 : vector<8x384xf32>
    %84 = arith.select %81, %79, %83 : vector<8x384xi1>, vector<8x384xf32>
    %85 = arith.addf %84, %63 : vector<8x384xf32>
    %c0_53 = arith.constant 0 : index
    %c0_54 = arith.constant 0 : index
    %c0_55 = arith.constant 0 : index
    %86 = vector.load %arg8[%c0_53, %c0_54, %c0_55] : memref<1x8x384xf32, #tpu.memory_space<vmem>>, vector<1x8x384xf32>
    %87 = vector.shape_cast %86 : vector<1x8x384xf32> to vector<8x384xf32>
    %88 = vector.shape_cast %85 : vector<8x384xf32> to vector<1x8x384xf32>
    tpu.vector_store %arg8[%c0_53, %c0_54, %c0_55], %88 {strides = array<i32>} : memref<1x8x384xf32, #tpu.memory_space<vmem>>, vector<1x8x384xf32>,
    return
  }
  func.func @transform_0(%arg0: i32) -> (i32, i32, i32) {
    %c0_i32 = arith.constant 0 : i32
    %c0_i32_0 = arith.constant 0 : i32
    %c0_i32_1 = arith.constant 0 : i32
    return %arg0, %c0_i32, %c0_i32_0 : i32, i32, i32
  }
  func.func @transform_1(%arg0: i32) -> (i32, i32) {
    %c0_i32 = arith.constant 0 : i32
    %c0_i32_0 = arith.constant 0 : i32
    %c0_i32_1 = arith.constant 0 : i32
    return %c0_i32, %c0_i32_0 : i32, i32
  }
  func.func @transform_2(%arg0: i32) -> (i32, i32) {
    %c0_i32 = arith.constant 0 : i32
    %c0_i32_0 = arith.constant 0 : i32
    %c0_i32_1 = arith.constant 0 : i32
    return %c0_i32, %c0_i32_0 : i32, i32
  }
  func.func @transform_3(%arg0: i32) -> (i32, i32) {
    %c0_i32 = arith.constant 0 : i32
    %c0_i32_0 = arith.constant 0 : i32
    %c0_i32_1 = arith.constant 0 : i32
    return %c0_i32, %c0_i32_0 : i32, i32
  }
  func.func @transform_4(%arg0: i32) -> (i32, i32) {
    %c0_i32 = arith.constant 0 : i32
    %c0_i32_0 = arith.constant 0 : i32
    %c0_i32_1 = arith.constant 0 : i32
    return %c0_i32, %c0_i32_0 : i32, i32
  }
  func.func @transform_5(%arg0: i32) -> (i32, i32) {
    %c0_i32 = arith.constant 0 : i32
    %c0_i32_0 = arith.constant 0 : i32
    %c0_i32_1 = arith.constant 0 : i32
    return %c0_i32, %c0_i32_0 : i32, i32
  }
  func.func @transform_6(%arg0: i32) -> i32 {
    %c0_i32 = arith.constant 0 : i32
    %c0_i32_0 = arith.constant 0 : i32
    return %c0_i32 : i32
  }
  func.func @transform_7(%arg0: i32) -> (i32, i32, i32) {
    %c0_i32 = arith.constant 0 : i32
    %c0_i32_0 = arith.constant 0 : i32
    %c0_i32_1 = arith.constant 0 : i32
    return %arg0, %c0_i32, %c0_i32_0 : i32, i32, i32
  }
}

</mosaic_0001>

<bundles_post_ra>
// kernel: tpu_custom_call.1
= control target key start
LH: loop header
LB: loop body
LE: loop exit
PB: predicated region body
PF: predicated region fallthrough
CT: control target
= control target key end

     0   :  { %12 = vsyncpa [#allocation6], 0  ;;  %s12474_s0 = inlined_call_operand.vmem [shape: f32[2,40,448], index: 0, kind: input, shape index: {}]   ;;  %s12475_s1 = inlined_call_operand.vmem [shape: f32[8,40], index: 1, kind: input, shape index: {}]   ;;  %s12476_s2 = inlined_call_operand.vmem [shape: f32[16,80], index: 2, kind: input, shape index: {}]   ;;  %s12477_s3 = inlined_call_operand.vmem [shape: f32[1,448], index: 3, kind: input, shape index: {}]   ;;  %s12478_s4 = inlined_call_operand.vmem [shape: f32[448,1], index: 4, kind: input, shape index: {}]   ;;  %s12479_s5 = inlined_call_operand.vmem [shape: f32[384,1], index: 5, kind: input, shape index: {}]   ;;  %s12480_s6 = inlined_call_operand.vmem [shape: f32[2], index: 6, kind: input, shape index: {}]   ;;  %s12481_s7 = inlined_call_operand.hbm [shape: f32[2,8,384], index: 7, kind: output, shape index: {}]  }
   0x1   :  { %13 = vsyncpa [#allocation5], 0 }
   0x2   :  { %15 = vsyncpa [#allocation5 + $0x1], 0  ;;  %s9166_s24 = smov 0   ;;  %s9168_s25 = smov 0  }
   0x3   :  { %s9170_s26 = smov 0   ;;  %s9172_s27 = smov 0  }
   0x4 LB: > { %s9187_s28 = sadd.s32 4294967295, %s9109_s27   ;;  %s6751_s29 = sadd.s32 4294967294, %s9109_s27   ;;  %s9109_s27 = sphi %s9172_s27, %s13114_s27   ;;  %s9105_s26 = sphi %s9170_s26, %s13113_s26   ;;  %s9101_s25 = sphi %s9168_s25, %s13112_s25   ;;  %s9097_s24 = sphi %s9166_s24, %s13111_s24  }
   0x5   : > { %s9191_s30 = sadd.s32 1, %s9109_s27   ;;  %s180_s8 = sadd.s32 1, %s9105_s26 }
   0x6   : > { %s177_s9 = ssub.s32 %s9109_s27, %s9191_s30  ;;  %p190_p0 = scmp.ne.s32.totalorder %s9105_s26, %s9101_s25 }
   0x7   : > { %p178_p1 = scmp.eq.s32.totalorder %s177_s9, 0  ;;  %p191_p2 = scmp.eq.s32.totalorder %s9187_s28, 1 }
   0x8   : > { %p196_p3 = scmp.ne.s32.totalorder %s9101_s25, %s9097_s24  ;;  %p197_p4 = scmp.eq.s32.totalorder %s6751_s29, 1 }
   0x9   : > { %s9202_s10 = scalar_select %p178_p1, %s9105_s26, %s180_s8  }
   0xa   : > { %p9204_p5 = por %p191_p2, %p190_p0  ;;  %p9208_p6 = por %p197_p4, %p196_p3 }
   0xb   : > { %p6752_p7 = scmp.ge.s32.totalorder %s9109_s27, 1  ;;  %p204_p8 = scmp.lt.s32.totalorder %s9109_s27, 3 }
   0xc   : > { %p8973_p9 = scmp.eq.s32.totalorder %s9187_s28, 0  ;;  %s232_s16 = sshll.u32 %s12480_s6, 4  ;;  %s233_s16 = int_to_ptr.vmem [resolvable:$true] %s232_s16 }
   0xd   : > { %p9215_p10 = pnand %p6752_p7, %p204_p8  ;;  %s9028_s17 = scalar_lea.vmem %s233_s16, 16 }
   0xe   : > { %p9029_p13 = scmp.ne.s32.totalorder %s233_s16, %s9028_s17  ;;  %p9036_p3 = scmp.lt.s32.totalorder %s233_s16, %s233_s16 }
   0xf   : > { %p8965_p11 = pneg %p9215_p10  ;;  %p9037_p4 = scmp.lt.s32.totalorder %s9028_s17, %s9028_s17 }
  0x11   : > { %p8966_p12 = pnand %p8973_p9, %p8965_p11  ;;  %p9038_p7 = por %p9037_p4, %p9036_p3 }
  0x13   : > { %p9030_p0 = pneg %p8966_p12 }
  0x15   : > { %p9031_p1 = pnand %p9030_p0, %p9029_p13 }
  0x17   : > { %p9032_p2 = pneg %p9031_p1 }
  0x19   : > { %p9039_p8 = pnand %p9038_p7, %p9032_p2 }
  0x1b   : > { %9042 = shalt.err (!%p9039_p8)
}
  0x1c   : > { %s9111_s18 = smov [#allocation4]   ;;  %253 = sbr.rel (%p9215_p10) target bundleno = 2138 (0x85a), region = 48 }
  0x1d   : > { %8968 = dma.vmem_to_smem (!%p8966_p12), %s233_s16, 16, %s9111_s18, [#allocation6]  }
  0x23   : > { %9088 = dma.done.wait (%p8973_p9), [#allocation6], 16  }
  0x24   : > { %9090 = vsyncadd (%p8973_p9), [#allocation6], 4294967280 }
  0x25   : > { %259 = sfence }
  0x26   : > { %p286_p11 = scmp.lt.s32.totalorder %s9187_s28, 1  ;;  %v429_v0 = vld [vmem:[%s12475_s1] sm:$0xff]  ;;  %vm450_vm0 = vcmask 326656   ;;  %v12507_v1 = vmov 0.0   ;;  %vm1596_vm1 = vcmask 523264   ;;  %s301_s20 = sld [smem:[#allocation4]] }
  0x27   : > { %654 = vmatprep.mubr.f32.mxu0 %v12507_v1  ;;  %298 = vst [vmem:[#allocation3 + $0xd8] sm:$0xe0] %v12507_v1  ;;  %299 = vst [vmem:[#allocation3 + $0xe0] sm:$0xe0] %v12507_v1  ;;  %v452_v2 = vsel %vm450_vm0, %v429_v0, 0  ;;  %528 = vmatprep.mubr.f32.mxu1 %v12507_v1  ;;  %s9116_s23 = smov 114  }
  0x28   : > { %300 = vst [vmem:[#allocation3 + $0xe8] sm:$0xe0] %v12507_v1  ;;  %s287_s21 = scalar_select %p286_p11, %s9187_s28, 1  ;;  %v9242_v3 = vand.u32 4294901760, %v452_v2  ;;  %vm3396_vm7 = vcmask 941056   ;;  %vm3422_vm8 = vcmask 932864  }
  0x29   : > { %s9117_s29 = smov 115   ;;  %s9118_s9 = smov 113   ;;  %vm3448_vm9 = vcmask 924672   ;;  %vm3661_vm10 = vcmask 654336   ;;  %vm3474_vm11 = vcmask 793600   ;;  %vm3500_vm12 = vcmask 785408  }
  0x2a   : > { %s8957_s22 = smul.u32 160, %s287_s21  ;;  %v9245_v4 = vsub.f32 %v452_v2, %v9242_v3  ;;  %s9119_s13 = smov 97   ;;  %vm3526_vm13 = vcmask 777216   ;;  %vm3552_vm14 = vcmask 646144   ;;  %vm3578_vm15 = vcmask 637952  }
  0x2b   : > { %s9120_s14 = smov 96   ;;  %s9121_s15 = smov 95   ;;  %vm3604_vm0 = vcmask 629760  }
  0x2c   : > { %s9250_s8 = scalar_lea.vmem %s12474_s0, %s8957_s22  ;;  %v9261_v19 = vand.u32 4294901760, %v9245_v4  ;;  %s9122_s16 = smov 79  }
  0x2d   : > { %v431_v5 = vld [vmem:[%s9250_s8 + $0x8] sm:$0xff]  ;;  %v430_v7 = vld [vmem:[%s9250_s8] sm:$0xff]  ;;  %v433_v0 = vld [vmem:[%s9250_s8 + $0x18] sm:$0xff]  ;;  %s9123_s17 = smov 78   ;;  %s9124_s18 = smov 77  }
  0x2e   : > { %v435_v6 = vld [vmem:[%s9250_s8 + $0x28] sm:$0xff]  ;;  %v454_v8 = vand.u32 4294901760, %v431_v5  ;;  %v434_v10 = vld [vmem:[%s9250_s8 + $0x20] sm:$0xff]  ;;  %v456_v11 = vand.u32 4294901760, %v430_v7  ;;  %v437_v2 = vld [vmem:[%s9250_s8 + $0x38] sm:$0xff]  ;;  %s283_s21 = sand.u32 1, %s9101_s25  }
  0x2f   : > { %v458_v9 = vand.u32 4294901760, %v435_v6  ;;  %v439_v12 = vld [vmem:[%s9250_s8 + $0x48] sm:$0xff]  ;;  %v460_v14 = vand.u32 4294901760, %v434_v10  ;;  %v438_v17 = vld [vmem:[%s9250_s8 + $0x40] sm:$0xff]  ;;  %s8956_s22 = smul.u32 24, %s283_s21 }
  0x30   : > { %v443_v13 = vld [vmem:[%s9250_s8 + $0x68] sm:$0xff]  ;;  %v462_v15 = vand.u32 4294901760, %v439_v12  ;;  %v442_v18 = vld [vmem:[%s9250_s8 + $0x60] sm:$0xff]  ;;  %v9263_v20 = vsub.f32 %v431_v5, %v454_v8  ;;  %v9267_v22 = vsub.f32 %v430_v7, %v456_v11  ;;  %v464_v23 = vand.u32 4294901760, %v438_v17 }
  0x31   : > { %v466_v16 = vand.u32 4294901760, %v443_v13  ;;  %v9265_v21 = vsub.f32 %v435_v6, %v458_v9  ;;  %v9269_v24 = vsub.f32 %v434_v10, %v460_v14  ;;  %v468_v27 = vand.u32 4294901760, %v442_v18  ;;  %v447_v44 = vld [vmem:[%s9250_s8 + $0x88] sm:$0xff]  ;;  %v446_v49 = vld [vmem:[%s9250_s8 + $0x80] sm:$0xff] }
  0x32   : > { %v9271_v25 = vsub.f32 %v439_v12, %v462_v15  ;;  %v542_v28 = vand.u32 4294901760, %v9263_v20  ;;  %v548_v30 = vand.u32 4294901760, %v9267_v22  ;;  %v9278_v31 = vsub.f32 %v438_v17, %v464_v23 }
  0x33   : > { %v9273_v26 = vsub.f32 %v443_v13, %v466_v16  ;;  %v554_v29 = vand.u32 4294901760, %v9265_v21  ;;  %v560_v32 = vand.u32 4294901760, %v9269_v24  ;;  %v9283_v35 = vsub.f32 %v442_v18, %v468_v27  ;;  %v441_v13 = vld [vmem:[%s9250_s8 + $0x58] sm:$0xff] }
  0x34   : > { %v566_v33 = vand.u32 4294901760, %v9271_v25  ;;  %v543_v36 = vsub.f32 %v9263_v20, %v542_v28  ;;  %v549_v38 = vsub.f32 %v9267_v22, %v548_v30  ;;  %v572_v39 = vand.u32 4294901760, %v9278_v31  ;;  %v445_v18 = vld [vmem:[%s9250_s8 + $0x78] sm:$0xff] }
  0x35   : > { %v578_v34 = vand.u32 4294901760, %v9273_v26  ;;  %v555_v37 = vsub.f32 %v9265_v21, %v554_v29  ;;  %v561_v40 = vsub.f32 %v9269_v24, %v560_v32  ;;  %v584_v43 = vand.u32 4294901760, %v9283_v35 }
  0x36   : > { %v567_v41 = vsub.f32 %v9271_v25, %v566_v33  ;;  %v544_v45 = vand.u32 4294901760, %v543_v36  ;;  %v550_v47 = vand.u32 4294901760, %v549_v38  ;;  %v573_v48 = vsub.f32 %v9278_v31, %v572_v39 }
  0x37   : > { %v579_v42 = vsub.f32 %v9273_v26, %v578_v34  ;;  %v556_v46 = vand.u32 4294901760, %v555_v37  ;;  %v562_v50 = vand.u32 4294901760, %v561_v40  ;;  %v585_v53 = vsub.f32 %v9283_v35, %v584_v43 }
  0x38   : > { %v568_v51 = vand.u32 4294901760, %v567_v41  ;;  %v574_v55 = vand.u32 4294901760, %v573_v48  ;;  %v9313_v56 = vand.u32 4294901760, %v447_v44  ;;  %v9315_v57 = vpack.c.bf16 %v458_v9, %v454_v8  ;;  %v432_v8 = vld [vmem:[%s9250_s8 + $0x10] sm:$0xff] }
  0x39   : > { %v580_v52 = vand.u32 4294901760, %v579_v42  ;;  %v7754_v54 = vpack.c.bf16 %v556_v46, %v544_v45  ;;  %v7756_v58 = vpack.c.bf16 %v562_v50, %v550_v47  ;;  %v586_v60 = vand.u32 4294901760, %v585_v53  ;;  %v436_v9 = vld [vmem:[%s9250_s8 + $0x30] sm:$0xff] }
  0x3a   : > { %v9317_v61 = vand.u32 4294901760, %v446_v49  ;;  %v9320_v62 = vsub.f32 %v447_v44, %v9313_v56  ;;  %7747 = vmatprep.subr.bf16.mxu1 %v9315_v57  ;;  %v9323_v63 = vpack.c.bf16 %v460_v14, %v456_v11  ;;  %v9330_v7 = vpack.c.bf16 %v466_v16, %v462_v15  ;;  %v440_v44 = vld [vmem:[%s9250_s8 + $0x50] sm:$0xff] }
  0x3b   : > { %v7758_v59 = vpack.c.bf16 %v580_v52, %v568_v51  ;;  %7755 = vmatprep.subr.bf16.mxu0 %v7754_v54  ;;  %v7760_v5 = vpack.c.bf16 %v586_v60, %v574_v55  ;;  %v9336_v12 = vpack.c.bf16 %v468_v27, %v464_v23  ;;  %v532_v11 = vsub.f32 %v9245_v4, %v9261_v19 }
  0x3c   : > { %7757 = vmatpush1.bf16.msra.mxu0 %v7756_v58  ;;  %v9328_v6 = vsub.f32 %v446_v49, %v9317_v61  ;;  %v590_v10 = vand.u32 4294901760, %v9320_v62  ;;  %7749 = vmatpush1.bf16.msra.mxu1 %v9323_v63  ;;  %v7762_v15 = vpack.c.bf16 %v9265_v21, %v9263_v20  ;;  %v1023_v16 = vand.u32 4294901760, %v433_v0  ;;  %v444_v49 = vld [vmem:[%s9250_s8 + $0x70] sm:$0xff] }
  0x3d   : > { %7759 = vmatprep.subr.bf16.mxu0 %v7758_v59  ;;  %7751 = vmatprep.subr.bf16.mxu1 %v9330_v7  ;;  %v1027_v17 = vand.u32 4294901760, %v437_v2  ;;  %v7764_v27 = vpack.c.bf16 %v9269_v24, %v9267_v22  ;;  %v1025_v36 = vand.u32 4294901760, %v432_v8  ;;  %v1029_v37 = vand.u32 4294901760, %v436_v9 }
  0x3e   : > { %v596_v14 = vand.u32 4294901760, %v9328_v6  ;;  %v591_v23 = vsub.f32 %v9320_v62, %v590_v10  ;;  %v9354_v40 = vsub.f32 %v433_v0, %v1023_v16  ;;  %v1031_v42 = vand.u32 4294901760, %v441_v13 }
  0x3f   : > { %v9356_v41 = vsub.f32 %v437_v2, %v1027_v17  ;;  %v9360_v46 = vsub.f32 %v432_v8, %v1025_v36  ;;  %v9362_v47 = vsub.f32 %v436_v9, %v1029_v37  ;;  %v1035_v48 = vand.u32 4294901760, %v445_v18 }
  0x40   : > { %7761 = vmatpush1.bf16.msra.mxu0 %v7760_v5  ;;  %v597_v38 = vsub.f32 %v9328_v6, %v596_v14  ;;  %v592_v45 = vand.u32 4294901760, %v591_v23  ;;  %7753 = vmatpush1.bf16.msra.mxu1 %v9336_v12  ;;  %v7766_v51 = vpack.c.bf16 %v9273_v26, %v9271_v25  ;;  %v7768_v52 = vpack.c.bf16 %v9283_v35, %v9278_v31  ;;  %v9494_v26 = vld [vmem:[%s12478_s4 + $0x80] sm:$0xff]  ;;  %v9514_v31 = vld [vmem:[%s12478_s4 + $0x90] sm:$0xff] }
  0x41   : > { %471 = vmatprep.subr.mxu1 %v9313_v56  ;;  %v9370_v53 = vsub.f32 %v441_v13, %v1031_v42  ;;  %v9372_v54 = vpack.c.bf16 %v1027_v17, %v1023_v16  ;;  %v9374_v55 = vand.u32 4294901760, %v532_v11  ;;  %v9376_v58 = vsub.f32 %v445_v18, %v1035_v48  ;;  %v448_v13 = vld [vmem:[%s9250_s8 + $0x90] sm:$0xff]  ;;  %v449_v18 = vld [vmem:[%s9250_s8 + $0x98] sm:$0xff] }
  0x42   : > { %v598_v50 = vand.u32 4294901760, %v597_v38  ;;  %593 = vmatprep.subr.mxu0 %v592_v45  ;;  %v1033_v59 = vand.u32 4294901760, %v440_v44  ;;  %v1037_v60 = vand.u32 4294901760, %v444_v49  ;;  %v12487_v0 = vand.u32 4294901760, %v9354_v40 }
  0x43   : > { %v12486_v2 = vand.u32 4294901760, %v9356_v41  ;;  %v12484_v5 = vand.u32 4294901760, %v9360_v46  ;;  %v9382_v8 = vpack.c.bf16 %v1029_v37, %v1025_v36  ;;  %v9384_v9 = vpack.c.bf16 %v1035_v48, %v1031_v42 }
  0x44   : > { %599 = vmatpush1.msra.mxu0 %v598_v50  ;;  %v9386_v11 = vsub.f32 %v440_v44, %v1033_v59  ;;  %v12483_v16 = vand.u32 4294901760, %v9362_v47  ;;  %473 = vmatpush1.msra.mxu1 %v9317_v61  ;;  %v9391_v17 = vsub.f32 %v444_v49, %v1037_v60  ;;  %v12482_v36 = vand.u32 4294901760, %v9370_v53 }
  0x45   : > { %7763 = vmatprep.subr.bf16.mxu0 %v7762_v15  ;;  %656 = vmatmul.mubr.f32.vlgmr.msra.gmra.mrb[0].mxu0 %v9242_v3  ;;  %v1112_v15 = vsub.f32 %v9354_v40, %v12487_v0  ;;  %v1124_v23 = vsub.f32 %v9356_v41, %v12486_v2  ;;  %v12485_v38 = vand.u32 4294901760, %v9376_v58  ;;  %v9411_v42 = vand.u32 4294901760, %v448_v13 }
  0x46   : > { %7765 = vmatpush1.bf16.msra.mxu0 %v7764_v27  ;;  %7795 = vmatprep.subr.bf16.mxu1 %v9372_v54  ;;  %v1118_v27 = vsub.f32 %v9360_v46, %v12484_v5  ;;  %v1130_v37 = vsub.f32 %v9362_v47, %v12483_v16  ;;  %v1136_v44 = vsub.f32 %v9370_v53, %v12482_v36  ;;  %v9419_v48 = vand.u32 4294901760, %v449_v18 }
  0x47   : > { %7767 = vmatprep.subr.bf16.mxu0 %v7766_v51  ;;  %534 = vmatmul.mubr.f32.vlgmr.msra.gmra.mrb[0].mxu1 %v9374_v55  ;;  %v9417_v45 = vpack.c.bf16 %v1037_v60, %v1033_v59  ;;  %v1148_v49 = vsub.f32 %v9376_v58, %v12485_v38  ;;  %v1141_v50 = vand.u32 4294901760, %v9386_v11  ;;  %v9428_v51 = vsub.f32 %v448_v13, %v9411_v42 }
  0x48   : > { %746 = vmatprep.mubr.f32.mxu0 %v12507_v1  ;;  %7797 = vmatpush1.bf16.msra.mxu1 %v9382_v8  ;;  %v1113_v36 = vand.u32 4294901760, %v1112_v15  ;;  %v1125_v16 = vand.u32 4294901760, %v1124_v23  ;;  %v12488_v59 = vand.u32 4294901760, %v9391_v17  ;;  %v1119_v60 = vand.u32 4294901760, %v1118_v27 }
  0x49   : > { %1097 = vmatprep.mubr.f32.mxu1 %v12507_v1  ;;  %7799 = vmatprep.subr.bf16.mxu1 %v9384_v9  ;;  %v1131_v5 = vand.u32 4294901760, %v1130_v37  ;;  %v1142_v38 = vsub.f32 %v9386_v11, %v1141_v50  ;;  %v9436_v2 = vsub.f32 %v449_v18, %v9419_v48  ;;  %v1149_v0 = vand.u32 4294901760, %v1148_v49 }
  0x4a   : > { %7769 = vmatpush1.bf16.msra.mxu0 %v7768_v52  ;;  %v1137_v52 = vand.u32 4294901760, %v1136_v44  ;;  %v1154_v13 = vsub.f32 %v9391_v17, %v12488_v59  ;;  %v7802_v23 = vpack.c.bf16 %v1125_v16, %v1113_v36  ;;  %v1165_v44 = vand.u32 4294901760, %v9428_v51 }
  0x4b   : > { %688 = vmatprep.subr.mxu0 %v9320_v62  ;;  %v1159_v15 = vand.u32 4294901760, %v9436_v2  ;;  %v7804_v18 = vpack.c.bf16 %v1131_v5, %v1119_v60  ;;  %v1143_v27 = vand.u32 4294901760, %v1142_v38  ;;  %v7778_v36 = vpack.c.bf16 %v554_v29, %v542_v28  ;;  %v9499_v28 = vld [vmem:[%s12478_s4 + $0x88] sm:$0xff]  ;;  %v9504_v29 = vld [vmem:[%s12478_s4] sm:$0xff]  ;;  %v9537_v62 = vld [vmem:[%s12478_s4 + $0x10] sm:$0xff] }
  0x4c   : > { %7801 = vmatpush1.bf16.msra.mxu1 %v9417_v45  ;;  %v1155_v37 = vand.u32 4294901760, %v1154_v13  ;;  %v7806_v49 = vpack.c.bf16 %v1149_v0, %v1137_v52  ;;  %v1166_v16 = vsub.f32 %v9428_v51, %v1165_v44  ;;  %v7782_v38 = vpack.c.bf16 %v578_v34, %v566_v33  ;;  %v9569_v52 = vld [vmem:[%s12478_s4 + $0xa8] sm:$0xff] }
  0x4d   : > { %1040 = vmatprep.subr.mxu1 %v9419_v48  ;;  %v1160_v59 = vsub.f32 %v9436_v2, %v1159_v15  ;;  %v7810_v20 = vpack.c.bf16 %v9356_v41, %v9354_v40  ;;  %v7812_v21 = vpack.c.bf16 %v9362_v47, %v9360_v46  ;;  %v7784_v22 = vpack.c.bf16 %v584_v43, %v572_v39 }
  0x4e   : > { %691 = vmatpush1.msra.mxu0 %v9328_v6  ;;  %v7808_v5 = vpack.c.bf16 %v1155_v37, %v1143_v27  ;;  %v1167_v60 = vand.u32 4294901760, %v1166_v16  ;;  %v7814_v24 = vpack.c.bf16 %v9376_v58, %v9370_v53  ;;  %v7816_v25 = vpack.c.bf16 %v9391_v17, %v9386_v11  ;;  %v9611_v16 = vld [vmem:[%s12478_s4 + $0xb0] sm:$0xff] }
  0x4f   : > { %7771 = vmatprep.subr.bf16.mxu0 %v9315_v57  ;;  %749 = vmatmul.mubr.f32.vlgmr.msra.gmra.mrb[0].mxu0 %v9245_v4  ;;  %v1161_v0 = vand.u32 4294901760, %v1160_v59  ;;  %v12506_v33 = vand.u32 4294901760, %v9494_v26  ;;  %v12505_v34 = vand.u32 4294901760, %v9499_v28  ;;  %v12502_v35 = vand.u32 4294901760, %v9504_v29 }
  0x50   : > { %7773 = vmatpush1.bf16.msra.mxu0 %v9323_v63  ;;  %829 = vmatprep.mubr.f32.mxu0 %v12507_v1  ;;  %v12494_v43 = vand.u32 4294901760, %v9514_v31 }
  0x51   : > { %7775 = vmatprep.subr.bf16.mxu0 %v9330_v7  ;;  %1042 = vmatpush1.msra.mxu1 %v9411_v42  ;;  %v9554_v6 = vsub.f32 %v9499_v28, %v12505_v34 }
  0x52   : > { %7803 = vmatprep.subr.bf16.mxu1 %v7802_v23  ;;  %1103 = vmatmul.mubr.f32.vlgmr.msra.gmra.mrb[2].mxu1 %v9374_v55  ;;  %v7780_v55 = vpack.c.bf16 %v560_v32, %v548_v30  ;;  %v9509_v30 = vld [vmem:[%s12478_s4 + $0x8] sm:$0xff]  ;;  %v9519_v32 = vld [vmem:[%s12478_s4 + $0x98] sm:$0xff]  ;;  %v9581_v23 = vsub.f32 %v9514_v31, %v12494_v43 }
  0x53   : > { %7805 = vmatpush1.bf16.msra.mxu1 %v7804_v18  ;;  %1223 = vmatprep.mubr.f32.mxu1 %v12507_v1  ;;  %v12495_v39 = vand.u32 4294901760, %v9509_v30  ;;  %v12491_v59 = vand.u32 4294901760, %v9519_v32 }
  0x54   : > { %7777 = vmatpush1.bf16.msra.mxu0 %v9336_v12  ;;  %7807 = vmatprep.subr.bf16.mxu1 %v7806_v49  ;;  %v12493_v49 = vand.u32 4294901760, %v9569_v52 }
  0x55   : > { %772 = vmatprep.subr.mxu0 %v9313_v56  ;;  %v9576_v13 = vsub.f32 %v9509_v30, %v12495_v39  ;;  %v9586_v18 = vsub.f32 %v9519_v32, %v12491_v59  ;;  %v9664_v39 = vld [vmem:[%s12478_s4 + $0x30] sm:$0xff] }
  0x57   : > { %7809 = vmatpush1.bf16.msra.mxu1 %v7808_v5  ;;  %v9599_v5 = vld [vmem:[%s12478_s4 + $0x20] sm:$0xff] }
  0x58   : > { %774 = vmatpush1.msra.mxu0 %v9317_v61  ;;  %1162 = vmatprep.subr.mxu1 %v1161_v0  ;;  %v9616_v0 = vld [vmem:[%s12478_s4 + $0xb8] sm:$0xff] }
  0x59   : > { %7779 = vmatprep.subr.bf16.mxu0 %v7778_v36  ;;  %833 = vmatmul.mubr.f32.vlgmr.msra.gmra.mrb[0].mxu0 %v9261_v19 }
  0x5a   : > { %7781 = vmatpush1.bf16.msra.mxu0 %v7780_v55  ;;  %933 = vmatprep.mubr.f32.mxu0 %v12507_v1  ;;  %v7910_v55 = vpack.c.bf16 %v9586_v18, %v9581_v23 }
  0x5b   : > { %7783 = vmatprep.subr.bf16.mxu0 %v7782_v38  ;;  %1168 = vmatpush1.msra.mxu1 %v1167_v60 }
  0x5c   : > { %7811 = vmatprep.subr.bf16.mxu1 %v7810_v20  ;;  %1225 = vmatmul.mubr.f32.vlgmr.msra.gmra.mrb[2].mxu1 %v9242_v3 }
  0x5d   : > { %7813 = vmatpush1.bf16.msra.mxu1 %v7812_v21  ;;  %1315 = vmatprep.mubr.f32.mxu1 %v12507_v1 }
  0x5e   : > { %7785 = vmatpush1.bf16.msra.mxu0 %v7784_v22  ;;  %7815 = vmatprep.subr.bf16.mxu1 %v7814_v24  ;;  %v9646_v22 = vsub.f32 %v9569_v52, %v12493_v49  ;;  %v12496_v24 = vand.u32 4294901760, %v9611_v16  ;;  %v12731_v49 = vand.u32 4294901760, %v9362_v47 }
  0x5f   : > { %874 = vmatprep.subr.mxu0 %v590_v10  ;;  %v9542_v10 = vld [vmem:[%s12478_s4 + $0x18] sm:$0xff] }
  0x60   : > { %v12489_v27 = vand.u32 4294901760, %v9542_v10 }
  0x61   : > { %7817 = vmatpush1.bf16.msra.mxu1 %v7816_v25  ;;  %v12497_v25 = vand.u32 4294901760, %v9616_v0 }
  0x62   : > { %878 = vmatpush1.msra.mxu0 %v596_v14  ;;  %1257 = vmatprep.subr.mxu1 %v9436_v2  ;;  %v9559_v14 = vsub.f32 %v9504_v29, %v12502_v35  ;;  %v9633_v60 = vsub.f32 %v9542_v10, %v12489_v27  ;;  %v12728_v27 = vand.u32 4294901760, %v9354_v40  ;;  %v12732_v40 = vand.u32 4294901760, %v9370_v53  ;;  %v9690_v53 = vld [vmem:[%s12478_s4 + $0xc0] sm:$0xff]  ;;  %v9771_v35 = vld [vmem:[%s12478_s4 + $0x50] sm:$0xff] }
  0x63   : > { %7787 = vmatprep.subr.bf16.mxu0 %v9315_v57  ;;  %935 = vmatmul.mubr.f32.vlgmr.msra.gmra.mrb[0].mxu0 %v9242_v3  ;;  %v9549_v57 = vsub.f32 %v9494_v26, %v12506_v33  ;;  %v1634_v33 = vand.u32 4294901760, %v9771_v35 }
  0x64   : > { %7789 = vmatpush1.bf16.msra.mxu0 %v9323_v63  ;;  %1015 = vmatprep.mubr.f32.mxu0 %v12507_v1  ;;  %v9564_v63 = vld [vmem:[%s12478_s4 + $0xa0] sm:$0xff] }
  0x65   : > { %7791 = vmatprep.subr.bf16.mxu0 %v9330_v7  ;;  %1260 = vmatpush1.msra.mxu1 %v9428_v51  ;;  %v12490_v7 = vand.u32 4294901760, %v9537_v62  ;;  %v12492_v37 = vand.u32 4294901760, %v9564_v63  ;;  %v7906_v36 = vpack.c.bf16 %v9554_v6, %v9549_v57 }
  0x66   : > { %7819 = vmatprep.subr.bf16.mxu1 %v9372_v54  ;;  %1318 = vmatmul.mubr.f32.vlgmr.msra.gmra.mrb[2].mxu1 %v9245_v4  ;;  %v9604_v4 = vld [vmem:[%s12478_s4 + $0x28] sm:$0xff] }
  0x67   : > { %7821 = vmatpush1.bf16.msra.mxu1 %v9382_v8  ;;  %1398 = vmatprep.mubr.f32.mxu1 %v12507_v1  ;;  %v9628_v38 = vsub.f32 %v9537_v62, %v12490_v7  ;;  %v12498_v20 = vand.u32 4294901760, %v9604_v4  ;;  %v9641_v21 = vsub.f32 %v9564_v63, %v12492_v37  ;;  %v12729_v7 = vand.u32 4294901760, %v9356_v41 }
  0x68   : > { %7793 = vmatpush1.bf16.msra.mxu0 %v9336_v12  ;;  %7823 = vmatprep.subr.bf16.mxu1 %v9384_v9  ;;  %v7908_v12 = vpack.c.bf16 %v9576_v13, %v9559_v14  ;;  %v12730_v37 = vand.u32 4294901760, %v9360_v46  ;;  %v12733_v41 = vand.u32 4294901760, %v9376_v58  ;;  %v9695_v58 = vld [vmem:[%s12478_s4 + $0xc8] sm:$0xff] }
  0x69   : > { %958 = vmatprep.subr.mxu0 %v9313_v56  ;;  %v12500_v56 = vand.u32 4294901760, %v9599_v5  ;;  %v7826_v59 = vpack.c.bf16 %v12729_v7, %v12728_v27  ;;  %v7912_v46 = vpack.c.bf16 %v9633_v60, %v9628_v38  ;;  %v9685_v27 = vsub.f32 %v9604_v4, %v12498_v20 }
  0x6a   : > { %v7828_v43 = vpack.c.bf16 %v12731_v49, %v12730_v37  ;;  %v7830_v7 = vpack.c.bf16 %v12733_v41, %v12732_v40  ;;  %v7914_v37 = vpack.c.bf16 %v9646_v22, %v9641_v21  ;;  %v9703_v49 = vsub.f32 %v9611_v16, %v12496_v24 }
  0x6b   : > { %7825 = vmatpush1.bf16.msra.mxu1 %v9417_v45  ;;  %v9680_v47 = vsub.f32 %v9599_v5, %v12500_v56  ;;  %v12734_v40 = vand.u32 4294901760, %v9391_v17  ;;  %v12504_v24 = vand.u32 4294901760, %v9690_v53  ;;  %v9735_v17 = vld [vmem:[%s12478_s4 + $0xd0] sm:$0xff] }
  0x6c   : > { %960 = vmatpush1.msra.mxu0 %v9317_v61  ;;  %1341 = vmatprep.subr.mxu1 %v9419_v48  ;;  %v9669_v61 = vld [vmem:[%s12478_s4 + $0x38] sm:$0xff]  ;;  %v1682_v56 = vand.u32 4294901760, %v9735_v17 }
  0x6d   : > { %1017 = vmatmul.mubr.f32.vlgmr.msra.gmra.mrb[0].mxu0 %v9242_v3  ;;  %7907 = vmatprep.subr.bf16.mxu0 %v7906_v36  ;;  %v9708_v36 = vsub.f32 %v9616_v0, %v12497_v25  ;;  %v7832_v41 = vpack.c.bf16 %v12734_v40, %v1141_v50  ;;  %v12503_v25 = vand.u32 4294901760, %v9695_v58  ;;  %v7916_v11 = vpack.c.bf16 %v9685_v27, %v9680_v47  ;;  %v9740_v50 = vld [vmem:[%s12478_s4 + $0xd8] sm:$0xff] }
  0x6e   : > { %7909 = vmatpush3.bf16.msra.mxu0 %v7908_v12  ;;  %v12499_v12 = vand.u32 4294901760, %v9664_v39 }
  0x6f   : > { %1343 = vmatpush1.msra.mxu1 %v9411_v42  ;;  %7911 = vmatprep.subr.bf16.mxu0 %v7910_v55  ;;  %v12501_v55 = vand.u32 4294901760, %v9669_v61 }
  0x70   : > { %7827 = vmatprep.subr.bf16.mxu1 %v7826_v59  ;;  %1402 = vmatmul.mubr.f32.vlgmr.msra.gmra.mrb[2].mxu1 %v9261_v19  ;;  %v9723_v19 = vld [vmem:[%s12478_s4 + $0x40] sm:$0xff]  ;;  %v7918_v59 = vpack.c.bf16 %v9708_v36, %v9703_v49 }
  0x71   : > { %7829 = vmatpush1.bf16.msra.mxu1 %v7828_v43  ;;  %1502 = vmatprep.mubr.f32.mxu1 %v12507_v1  ;;  %v9728_v43 = vld [vmem:[%s12478_s4 + $0x48] sm:$0xff]  ;;  %v1628_v40 = vand.u32 4294901760, %v9723_v19 }
  0x72   : > { %7831 = vmatprep.subr.bf16.mxu1 %v7830_v7  ;;  %7913 = vmatpush3.bf16.msra.mxu0 %v7912_v46  ;;  %v9747_v7 = vsub.f32 %v9664_v39, %v12499_v12  ;;  %v9752_v46 = vsub.f32 %v9669_v61, %v12501_v55  ;;  %v1631_v20 = vand.u32 4294901760, %v9728_v43  ;;  %v9764_v12 = vsub.f32 %v9695_v58, %v12503_v25 }
  0x73   : > { %7915 = vmatprep.subr.bf16.mxu0 %v7914_v37  ;;  %v9759_v37 = vsub.f32 %v9690_v53, %v12504_v24  ;;  %v1685_v55 = vand.u32 4294901760, %v9740_v50  ;;  %v9783_v24 = vsub.f32 %v9723_v19, %v1628_v40 }
  0x74   : > { %v7920_v25 = vpack.c.bf16 %v9752_v46, %v9747_v7  ;;  %v9786_v34 = vsub.f32 %v9728_v43, %v1631_v20 }
  0x75   : > { %7833 = vmatpush1.bf16.msra.mxu1 %v7832_v41  ;;  %v9778_v41 = vld [vmem:[%s12478_s4 + $0x58] sm:$0xff]  ;;  %v7922_v2 = vpack.c.bf16 %v9764_v12, %v9759_v37  ;;  %v9801_v19 = vsub.f32 %v9740_v50, %v1685_v55  ;;  %v1845_v50 = vand.u32 4294901760, %v9549_v57 }
  0x76   : > { %1443 = vmatprep.subr.mxu1 %v1159_v15  ;;  %7917 = vmatpush3.bf16.msra.mxu0 %v7916_v11  ;;  %v9796_v15 = vsub.f32 %v9735_v17, %v1682_v56  ;;  %v12509_v43 = vand.u32 4294901760, %v9778_v41  ;;  %v7924_v51 = vpack.c.bf16 %v9786_v34, %v9783_v24 }
  0x77   : > { %7919 = vmatprep.subr.bf16.mxu0 %v7918_v59  ;;  %v12737_v59 = vand.u32 4294901760, %v9504_v29  ;;  %v12742_v29 = vand.u32 4294901760, %v9542_v10  ;;  %v12747_v10 = vand.u32 4294901760, %v9611_v16  ;;  %v9891_v16 = vpack.c.bf16 %v1631_v20, %v1628_v40  ;;  %v338_v20 = vld [vmem:[%s12478_s4 + $0x68] sm:$0xff] }
  0x79   : > { %1447 = vmatpush1.msra.mxu1 %v1165_v44  ;;  %v7926_v44 = vpack.c.bf16 %v9801_v19, %v9796_v15  ;;  %12756 = vst [vmem:[#allocation13_spill] sm:$0xff] %v9891_v16 }
  0x7a   : > { %7835 = vmatprep.subr.bf16.mxu1 %v9372_v54  ;;  %1504 = vmatmul.mubr.f32.vlgmr.msra.gmra.mrb[2].mxu1 %v9242_v3  ;;  %v9816_v54 = vsub.f32 %v9771_v35, %v1634_v33  ;;  %v1852_v35 = vand.u32 4294901760, %v9554_v6 }
  0x7b   : > { %7837 = vmatpush1.bf16.msra.mxu1 %v9382_v8  ;;  %1584 = vmatprep.mubr.f32.mxu1 %v12507_v1  ;;  %v9821_v8 = vsub.f32 %v9778_v41, %v12509_v43 }
  0x7c   : > { %7839 = vmatprep.subr.bf16.mxu1 %v9384_v9  ;;  %7921 = vmatpush3.bf16.msra.mxu0 %v7920_v25  ;;  %v12735_v9 = vand.u32 4294901760, %v9494_v26  ;;  %v12736_v25 = vand.u32 4294901760, %v9499_v28  ;;  %v12741_v28 = vand.u32 4294901760, %v9537_v62 }
  0x7d   : > { %7923 = vmatprep.subr.bf16.mxu0 %v7922_v2  ;;  %v12738_v2 = vand.u32 4294901760, %v9509_v30  ;;  %v7928_v43 = vpack.c.bf16 %v9821_v8, %v9816_v54 }
  0x7e   : > { %v9829_v11 = vpack.c.bf16 %v12736_v25, %v12735_v9  ;;  %v9853_v30 = vpack.c.bf16 %v12742_v29, %v12741_v28  ;;  %v355_v29 = vld [vmem:[%s12478_s4 + $0xf0] sm:$0xff] }
  0x7f   : > { %7841 = vmatpush1.bf16.msra.mxu1 %v9417_v45  ;;  %v9835_v1 = vpack.c.bf16 %v12738_v2, %v12737_v59  ;;  %v12739_v45 = vand.u32 4294901760, %v9514_v31  ;;  %v12743_v31 = vand.u32 4294901760, %v9564_v63  ;;  %v12750_v63 = vand.u32 4294901760, %v9664_v39  ;;  %v353_v39 = vld [vmem:[%s12478_s4 + $0xe0] sm:$0xff] }
  0x80   : > { %1527 = vmatprep.subr.mxu1 %v9419_v48  ;;  %7925 = vmatpush3.bf16.msra.mxu0 %v7924_v51  ;;  %v12740_v48 = vand.u32 4294901760, %v9519_v32  ;;  %v12744_v32 = vand.u32 4294901760, %v9569_v52  ;;  %v12746_v51 = vand.u32 4294901760, %v9604_v4  ;;  %v12751_v52 = vand.u32 4294901760, %v9669_v61 }
  0x81   : > { %7927 = vmatprep.subr.bf16.mxu0 %v7926_v44  ;;  %v12754_v4 = vand.u32 4294901760, %v9695_v58  ;;  %v1688_v61 = vand.u32 4294901760, %v353_v39  ;;  %v337_v58 = vld [vmem:[%s12478_s4 + $0x60] sm:$0xff]  ;;  %v1643_v59 = vand.u32 4294901760, %v338_v20 }
  0x82   : > { %v9843_v26 = vpack.c.bf16 %v12740_v48, %v12739_v45  ;;  %v9881_v9 = vpack.c.bf16 %v12751_v52, %v12750_v63  ;;  %v1640_v40 = vand.u32 4294901760, %v337_v58 }
  0x83   : > { %1529 = vmatpush1.msra.mxu1 %v9411_v42  ;;  %v9860_v42 = vpack.c.bf16 %v12744_v32, %v12743_v31  ;;  %v1928_v2 = vsub.f32 %v353_v39, %v1688_v61  ;;  %v1823_v28 = vsub.f32 %v338_v20, %v1643_v59  ;;  %v356_v31 = vld [vmem:[%s12478_s4 + $0xf8] sm:$0xff] }
  0x84   : > { %1586 = vmatmul.mubr.f32.vlgmr.msra.gmra.mrb[2].mxu1 %v9242_v3  ;;  %7843 = vmatprep.subr.bf16.mxu1 %v9829_v11  ;;  %v12745_v3 = vand.u32 4294901760, %v9599_v5  ;;  %12752 = vst [vmem:[#allocation11_spill] sm:$0xff] %v9881_v9  ;;  %v12753_v5 = vand.u32 4294901760, %v9690_v53  ;;  %v1816_v48 = vsub.f32 %v337_v58, %v1640_v40  ;;  %v12758_v58 = vand.u32 4294901760, %v9778_v41 }
  0x85   : > { %7845 = vmatpush3.bf16.msra.mxu1 %v9835_v1  ;;  %7929 = vmatpush3.bf16.msra.mxu0 %v7928_v43  ;;  %v12748_v43 = vand.u32 4294901760, %v9616_v0  ;;  %v354_v0 = vld [vmem:[%s12478_s4 + $0xe8] sm:$0xff] }
  0x86   : > { %7847 = vmatprep.subr.bf16.mxu1 %v9843_v26  ;;  %v9867_v62 = vpack.c.bf16 %v12746_v51, %v12745_v3  ;;  %v9888_v25 = vpack.c.bf16 %v12754_v4, %v12753_v5  ;;  %v1691_v53 = vand.u32 4294901760, %v354_v0  ;;  %v1694_v3 = vand.u32 4294901760, %v355_v29 }
  0x87   : > { %v9874_v44 = vpack.c.bf16 %v12748_v43, %v12747_v10  ;;  %v1697_v51 = vand.u32 4294901760, %v356_v31  ;;  %v339_v10 = vld [vmem:[%s12478_s4 + $0x70] sm:$0xff]  ;;  %v340_v43 = vld [vmem:[%s12478_s4 + $0x78] sm:$0xff]  ;;  %v7932_v63 = vpack.c.bf16 %v1823_v28, %v1816_v48  ;;  %v9923_v4 = vpack.c.bf16 %v1685_v55, %v1682_v56 }
  0x88   : > { %12755 = vst [vmem:[#allocation12_spill] sm:$0xff] %v9888_v25  ;;  %v1935_v45 = vsub.f32 %v354_v0, %v1691_v53  ;;  %v1646_v52 = vand.u32 4294901760, %v339_v10  ;;  %v1649_v5 = vand.u32 4294901760, %v340_v43  ;;  %v1942_v39 = vsub.f32 %v355_v29, %v1694_v3 }
  0x89   : > { %7849 = vmatpush3.bf16.msra.mxu1 %v9853_v30  ;;  %12749 = vst [vmem:[#allocation10_spill] sm:$0xff] %v9874_v44  ;;  %12757 = vst [vmem:[#allocation14_spill] sm:$0xff] %v9923_v4  ;;  %v1949_v0 = vsub.f32 %v356_v31, %v1697_v51  ;;  %v9929_v20 = vpack.c.bf16 %v12758_v58, %v1634_v33  ;;  %v9933_v56 = vpack.c.bf16 %v1691_v53, %v1688_v61 }
  0x8a   : > { %7851 = vmatprep.subr.bf16.mxu1 %v9860_v42  ;;  %v7930_v32 = vpack.c.bf16 %v1935_v45, %v1928_v2  ;;  %v9935_v55 = vpack.c.bf16 %v1643_v59, %v1640_v40  ;;  %v7970_v33 = vpack.c.bf16 %v1852_v35, %v1845_v50  ;;  %v9941_v41 = vpack.c.bf16 %v1697_v51, %v1694_v3 }
  0x8b   : > { %12759 = vst [vmem:[#allocation15_spill] sm:$0xff] %v9929_v20  ;;  %12760 = vst [vmem:[#allocation16_spill] sm:$0xff] %v9933_v56  ;;  %v1846_v29 = vsub.f32 %v9549_v57, %v1845_v50  ;;  %v9944_v31 = vpack.c.bf16 %v1649_v5, %v1646_v52  ;;  %v1853_v61 = vsub.f32 %v9554_v6, %v1852_v35  ;;  %v1824_v58 = vand.u32 4294901760, %v1823_v28 }
  0x8c   : > { %7931 = vmatprep.subr.bf16.mxu0 %v7930_v32  ;;  %v7934_v32 = vpack.c.bf16 %v1949_v0, %v1942_v39  ;;  %12761 = vst [vmem:[#allocation17_spill] sm:$0xff] %v9935_v55  ;;  %12762 = vst [vmem:[#allocation18_spill] sm:$0xff] %v9941_v41  ;;  %v1943_v57 = vand.u32 4294901760, %v1942_v39 }
  0x8d   : > { %7853 = vmatpush3.bf16.msra.mxu1 %v9867_v62  ;;  %7933 = vmatpush3.bf16.msra.mxu0 %v7932_v63  ;;  %12763 = vst [vmem:[#allocation19_spill] sm:$0xff] %v9944_v31  ;;  %v1847_v53 = vand.u32 4294901760, %v1846_v29  ;;  %v1854_v40 = vand.u32 4294901760, %v1853_v61  ;;  %v1817_v63 = vand.u32 4294901760, %v1816_v48  ;;  %v1825_v61 = vsub.f32 %v1823_v28, %v1824_v58 }
  0x8e   : > { %7855 = vmatprep.subr.bf16.mxu1 %v9874_v44  ;;  %7935 = vmatprep.subr.bf16.mxu0 %v7934_v32  ;;  %v1782_v44 = vand.u32 4294901760, %v9752_v46 }
  0x8f   : > { %v7874_v59 = vpack.c.bf16 %v1854_v40, %v1847_v53  ;;  %v9951_v51 = vpack.c.bf16 %v1824_v58, %v1817_v63  ;;  %v1818_v29 = vsub.f32 %v1816_v48, %v1817_v63  ;;  %v1733_v63 = vand.u32 4294901760, %v9559_v14 }
  0x90   : > { %v1873_v58 = vand.u32 4294901760, %v9641_v21 }
  0x91   : > { %7857 = vmatpush3.bf16.msra.mxu1 %v9881_v9  ;;  %v1819_v40 = vand.u32 4294901760, %v1818_v29 }
  0x92   : > { %7859 = vmatprep.subr.bf16.mxu1 %v9888_v25  ;;  %v1837_v25 = vsub.f32 %v340_v43, %v1649_v5  ;;  %v1936_v43 = vand.u32 4294901760, %v1935_v45 }
  0x94   : > { %v1838_v6 = vand.u32 4294901760, %v1837_v25  ;;  %v1937_v50 = vsub.f32 %v1935_v45, %v1936_v43 }
  0x95   : > { %7861 = vmatpush3.bf16.msra.mxu1 %v9891_v16  ;;  %v1830_v16 = vsub.f32 %v339_v10, %v1646_v52  ;;  %v1929_v10 = vand.u32 4294901760, %v1928_v2  ;;  %v1950_v52 = vand.u32 4294901760, %v1949_v0 }
  0x96   : > { %7863 = vmatprep.subr.bf16.mxu1 %v9923_v4  ;;  %v1938_v53 = vand.u32 4294901760, %v1937_v50  ;;  %v1839_v9 = vsub.f32 %v1837_v25, %v1838_v6 }
  0x97   : > { %v7936_v17 = vpack.c.bf16 %v1837_v25, %v1830_v16  ;;  %v9949_v3 = vpack.c.bf16 %v1936_v43, %v1929_v10  ;;  %v1831_v5 = vand.u32 4294901760, %v1830_v16  ;;  %v1930_v32 = vsub.f32 %v1928_v2, %v1929_v10 }
  0x98   : > { %v1840_v43 = vand.u32 4294901760, %v1839_v9  ;;  %v1747_v25 = vand.u32 4294901760, %v9628_v38  ;;  %v1754_v9 = vand.u32 4294901760, %v9633_v60 }
  0x99   : > { %7865 = vmatpush3.bf16.msra.mxu1 %v9929_v20  ;;  %7937 = vmatpush3.bf16.msra.mxu0 %v7936_v17  ;;  %v9953_v17 = vpack.c.bf16 %v1950_v52, %v1943_v57  ;;  %v9955_v35 = vpack.c.bf16 %v1838_v6, %v1831_v5 }
  0x9a   : > { %7867 = vmatprep.subr.bf16.mxu1 %v9933_v56  ;;  %7971 = vmatprep.subr.bf16.mxu0 %v7970_v33  ;;  %v1931_v33 = vand.u32 4294901760, %v1930_v32  ;;  %v1832_v56 = vsub.f32 %v1830_v16, %v1831_v5 }
  0x9c   : > { %v1833_v10 = vand.u32 4294901760, %v1832_v56  ;;  %v1866_v56 = vand.u32 4294901760, %v9586_v18 }
  0x9d   : > { %7869 = vmatpush3.bf16.msra.mxu1 %v9935_v55  ;;  %v9957_v55 = vpack.c.bf16 %v1938_v53, %v1931_v33  ;;  %v1748_v33 = vsub.f32 %v9628_v38, %v1747_v25 }
  0x9e   : > { %7871 = vmatprep.subr.bf16.mxu1 %v9941_v41  ;;  %v1951_v41 = vsub.f32 %v1949_v0, %v1950_v52  ;;  %v9963_v32 = vpack.c.bf16 %v1840_v43, %v1833_v10  ;;  %v1734_v0 = vsub.f32 %v9559_v14, %v1733_v63  ;;  %v1761_v52 = vand.u32 4294901760, %v9680_v47 }
  0x9f   : > { %v1768_v14 = vand.u32 4294901760, %v9685_v27  ;;  %v1867_v5 = vsub.f32 %v9586_v18, %v1866_v56 }
  0xa0   : > { %v1952_v2 = vand.u32 4294901760, %v1951_v41 }
  0xa1   : > { %7873 = vmatpush3.bf16.msra.mxu1 %v9944_v31  ;;  %v1944_v31 = vsub.f32 %v1942_v39, %v1943_v57  ;;  %v1740_v39 = vand.u32 4294901760, %v9576_v13  ;;  %v1880_v57 = vand.u32 4294901760, %v9646_v22 }
  0xa2   : > { %7875 = vmatprep.subr.bf16.mxu1 %v7874_v59  ;;  %v1826_v59 = vand.u32 4294901760, %v1825_v61 }
  0xa3   : > { %v1945_v4 = vand.u32 4294901760, %v1944_v31  ;;  %v1741_v16 = vsub.f32 %v9576_v13, %v1740_v39  ;;  %v1859_v31 = vand.u32 4294901760, %v9581_v23  ;;  %v7972_v50 = vpack.c.bf16 %v1740_v39, %v1733_v63 }
  0xa4   : > { %v9959_v20 = vpack.c.bf16 %v1826_v59, %v1819_v40  ;;  %v7976_v40 = vpack.c.bf16 %v1754_v9, %v1747_v25  ;;  %v1755_v59 = vsub.f32 %v9633_v60, %v1754_v9  ;;  %v9987_v43 = vpack.c.bf16 %v1880_v57, %v1873_v58 }
  0xa5   : > { %v9961_v45 = vpack.c.bf16 %v1952_v2, %v1945_v4  ;;  %v1735_v4 = vand.u32 4294901760, %v1734_v0  ;;  %v1742_v41 = vand.u32 4294901760, %v1741_v16  ;;  %v1860_v13 = vsub.f32 %v9581_v23, %v1859_v31 }
  0xa6   : > { %v7974_v53 = vpack.c.bf16 %v1866_v56, %v1859_v31  ;;  %v9989_v23 = vpack.c.bf16 %v1768_v14, %v1761_v52  ;;  %v1868_v63 = vand.u32 4294901760, %v1867_v5  ;;  %v1887_v0 = vand.u32 4294901760, %v9703_v49 }
  0xa7   : > { %v9985_v10 = vpack.c.bf16 %v1742_v41, %v1735_v4  ;;  %v1756_v56 = vand.u32 4294901760, %v1755_v59  ;;  %v1894_v25 = vand.u32 4294901760, %v9708_v36  ;;  %v1775_v41 = vand.u32 4294901760, %v9747_v7 }
 0x11a   : > { %v535_v48 = vpop.f32.mrb[0].mxu1 }
 0x11b   : > { %v537_v28 = vpop.f32.mrb[1].mxu1 }
 0x140   : > { %v1018_v6 = vpop.f32.mrb[0].mxu0 }
 0x141   : > { %v9980_v29 = vadd.f32 %v1018_v6, %v535_v48  ;;  %v1020_v61 = vpop.f32.mrb[1].mxu0  ;;  %v1861_v48 = vand.u32 4294901760, %v1860_v13  ;;  %v1874_v13 = vsub.f32 %v9641_v21, %v1873_v58  ;;  %v7982_v58 = vpack.c.bf16 %v1894_v25, %v1887_v0 }
 0x142   : > { %v9983_v2 = vadd.f32 %v1020_v61, %v537_v28  ;;  %v1749_v28 = vand.u32 4294901760, %v1748_v33  ;;  %v1881_v33 = vsub.f32 %v9646_v22, %v1880_v57  ;;  %v1762_v61 = vsub.f32 %v9680_v47, %v1761_v52 }
 0x143   : > { %12764 = vst [vmem:[#allocation20_spill] sm:$0xff] %v9980_v29  ;;  %v9992_v18 = vand.u32 4294901760, %v9980_v29  ;;  %v1592_v38 = vmul.f32 %v9980_v29, %v9980_v29  ;;  %v1769_v47 = vsub.f32 %v9685_v27, %v1768_v14  ;;  %v1908_v22 = vand.u32 4294901760, %v9764_v12 }
 0x144   : > { %12765 = vst [vmem:[#allocation21_spill] sm:$0xff] %v9983_v2  ;;  %v9997_v39 = vand.u32 4294901760, %v9983_v2  ;;  %v1593_v60 = vmul.f32 %v9983_v2, %v9983_v2  ;;  %v1888_v14 = vsub.f32 %v9703_v49, %v1887_v0  ;;  %v10060_v49 = vld [vmem:[%s12478_s4 + $0x108] sm:$0xff]  ;;  %v7984_v0 = vpack.c.bf16 %v1782_v44, %v1775_v41 }
 0x145   : > { %v10004_v16 = vsub.f32 %v9980_v29, %v9992_v18  ;;  %v10006_v31 = vand.u32 4294901760, %v1592_v38  ;;  %v7878_v29 = vpack.c.bf16 %v1868_v63, %v1861_v48  ;;  %v1875_v48 = vand.u32 4294901760, %v1874_v13 }
 0x146   : > { %v10011_v9 = vsub.f32 %v9983_v2, %v9997_v39  ;;  %v10013_v4 = vand.u32 4294901760, %v1593_v60  ;;  %v1882_v63 = vand.u32 4294901760, %v1881_v33  ;;  %v1770_v13 = vand.u32 4294901760, %v1769_v47 }
 0x147   : > { %12766 = vst [vmem:[#allocation22_spill] sm:$0xff] %v10004_v16  ;;  %v10018_v5 = vsub.f32 %v1592_v38, %v10006_v31  ;;  %v12532_v6 = vand.u32 4294901760, %v10004_v16  ;;  %v7880_v38 = vpack.c.bf16 %v1756_v56, %v1749_v28  ;;  %v1776_v33 = vsub.f32 %v9747_v7, %v1775_v41 }
 0x148   : > { %2099 = vmatprep.mubr.f32.mxu0 %v10011_v9  ;;  %v10025_v59 = vsub.f32 %v1593_v60, %v10013_v4  ;;  %v12557_v2 = vand.u32 4294901760, %v10011_v9  ;;  %v1763_v60 = vand.u32 4294901760, %v1762_v61  ;;  %v10055_v61 = vld [vmem:[%s12478_s4 + $0x100] sm:$0xff]  ;;  %v7882_v7 = vpack.c.bf16 %v1882_v63, %v1875_v48 }
 0x149   : > { %2102 = vmatmul.mubr.f32.vlgmr.msra.gmra.mrb[2].mxu0 %v10004_v16  ;;  %v1708_v21 = vsub.f32 %v10004_v16, %v12532_v6  ;;  %v1901_v6 = vand.u32 4294901760, %v9759_v37  ;;  %v1796_v47 = vand.u32 4294901760, %v9786_v34  ;;  %v12535_v41 = vand.u32 4294901760, %v10055_v61 }
 0x14a   : > { %7973 = vmatpush3.bf16.msra.mxu0 %v7972_v50  ;;  %2108 = vmatprep.mubr.f32.mxu0 %v10025_v59  ;;  %v1702_v57 = vsub.f32 %v10011_v9, %v12557_v2  ;;  %v12556_v52 = vand.u32 4294901760, %v10025_v59  ;;  %v1895_v50 = vsub.f32 %v9708_v36, %v1894_v25  ;;  %v1789_v25 = vand.u32 4294901760, %v9783_v24 }
 0x14b   : > { %7975 = vmatprep.subr.bf16.mxu0 %v7974_v53  ;;  %v1709_v28 = vand.u32 4294901760, %v1708_v21  ;;  %v12767_v53 = vand.u32 4294901760, %v10018_v5  ;;  %v1783_v21 = vsub.f32 %v9752_v46, %v1782_v44  ;;  %v7884_v44 = vpack.c.bf16 %v1770_v13, %v1763_v60 }
 0x14c   : > { %v1703_v16 = vand.u32 4294901760, %v1702_v57  ;;  %v1717_v27 = vsub.f32 %v10025_v59, %v12556_v52  ;;  %v1902_v57 = vsub.f32 %v9759_v37, %v1901_v6  ;;  %v7986_v48 = vpack.c.bf16 %v1908_v22, %v1901_v6 }
 0x14d   : > { %2111 = vmatmul.mubr.f32.gmra.mrb[4].mxu0 %v10018_v5  ;;  %v1723_v56 = vsub.f32 %v10018_v5, %v12767_v53  ;;  %v1909_v53 = vsub.f32 %v9764_v12, %v1908_v22  ;;  %v1777_v63 = vand.u32 4294901760, %v1776_v33  ;;  %v1784_v37 = vand.u32 4294901760, %v1783_v21  ;;  %v10107_v33 = vld [vmem:[%s12478_s4 + $0x120] sm:$0xff] }
 0x14e   : > { %7977 = vmatpush3.bf16.msra.mxu0 %v7976_v40  ;;  %1704 = vmatprep.mubr.f32.mxu1 %v1703_v16  ;;  %v1718_v36 = vand.u32 4294901760, %v1717_v27  ;;  %v1889_v40 = vand.u32 4294901760, %v1888_v14  ;;  %v1896_v16 = vand.u32 4294901760, %v1895_v50  ;;  %v12534_v27 = vand.u32 4294901760, %v10060_v49  ;;  %v10079_v50 = vld [vmem:[%s12478_s4 + $0x110] sm:$0xff] }
 0x14f   : > { %2396 = vmatprep.mubr.f32.mxu0 %v9997_v39  ;;  %1710 = vmatmul.mubr.f32.vlgmr.msra.gmra.mrb[4].mxu1 %v1709_v28  ;;  %v1724_v46 = vand.u32 4294901760, %v1723_v56  ;;  %v1915_v12 = vand.u32 4294901760, %v9796_v15  ;;  %v1790_v14 = vsub.f32 %v9783_v24, %v1789_v25  ;;  %v1910_v6 = vand.u32 4294901760, %v1909_v53 }
 0x150   : > { %7877 = vmatpush3.bf16.msra.mxu1 %v9985_v10  ;;  %1719 = vmatprep.mubr.f32.mxu1 %v1718_v36  ;;  %v1922_v10 = vand.u32 4294901760, %v9801_v19  ;;  %v1797_v22 = vsub.f32 %v9786_v34, %v1796_v47  ;;  %v7886_v24 = vpack.c.bf16 %v1896_v16, %v1889_v40  ;;  %v1810_v60 = vand.u32 4294901760, %v9821_v8  ;;  %v10112_v36 = vld [vmem:[%s12478_s4 + $0x128] sm:$0xff] }
 0x151   : > { %7979 = vmatprep.subr.bf16.mxu0 %v9987_v43  ;;  %7879 = vmatprep.subr.bf16.mxu1 %v7878_v29  ;;  %v10084_v29 = vld [vmem:[%s12478_s4 + $0x118] sm:$0xff]  ;;  %v1803_v43 = vand.u32 4294901760, %v9816_v54  ;;  %v10093_v28 = vsub.f32 %v10055_v61, %v12535_v41  ;;  %v1916_v56 = vsub.f32 %v9796_v15, %v1915_v12  ;;  %12768 = vst [vmem:[#allocation23_spill] sm:$0xff] %v10112_v36 }
 0x152   : > { %7981 = vmatpush3.bf16.msra.mxu0 %v9989_v23  ;;  %v1903_v23 = vand.u32 4294901760, %v1902_v57  ;;  %v1923_v34 = vsub.f32 %v9801_v19, %v1922_v10  ;;  %v12553_v13 = vand.u32 4294901760, %v10084_v29  ;;  %v7988_v21 = vpack.c.bf16 %v1796_v47, %v1789_v25 }
 0x153   : > { %1725 = vmatmul.mubr.f32.gmra.mrb[6].mxu1 %v1724_v46  ;;  %7983 = vmatprep.subr.bf16.mxu0 %v7982_v58  ;;  %v10098_v58 = vsub.f32 %v10060_v49, %v12534_v27  ;;  %v7990_v15 = vpack.c.bf16 %v1922_v10, %v1915_v12  ;;  %v1791_v57 = vand.u32 4294901760, %v1790_v14  ;;  %v1798_v40 = vand.u32 4294901760, %v1797_v22 }
 0x154   : > { %7881 = vmatpush3.bf16.msra.mxu1 %v7880_v38  ;;  %1955 = vmatprep.mubr.f32.mxu1 %v9997_v39  ;;  %v12554_v38 = vand.u32 4294901760, %v10079_v50  ;;  %v7890_v53 = vpack.c.bf16 %v1910_v6, %v1903_v23  ;;  %v1804_v16 = vsub.f32 %v9816_v54, %v1803_v43  ;;  %v1811_v46 = vsub.f32 %v9821_v8, %v1810_v60  ;;  %v10142_v23 = vld [vmem:[%s12478_s4 + $0x138] sm:$0xff] }
 0x155   : > { %7883 = vmatprep.subr.bf16.mxu1 %v7882_v7  ;;  %v7888_v7 = vpack.c.bf16 %v1784_v37, %v1777_v63  ;;  %v12541_v41 = vand.u32 4294901760, %v10093_v28  ;;  %v12547_v25 = vand.u32 4294901760, %v10107_v33  ;;  %v12546_v47 = vand.u32 4294901760, %v10112_v36  ;;  %v10137_v37 = vld [vmem:[%s12478_s4 + $0x130] sm:$0xff]  ;;  %12770 = vst [vmem:[#allocation25_spill] sm:$0xff] %v10142_v23 }
 0x156   : > { %7985 = vmatpush3.bf16.msra.mxu0 %v7984_v0  ;;  %v12538_v0 = vand.u32 4294901760, %v10098_v58  ;;  %v1924_v63 = vand.u32 4294901760, %v1923_v34  ;;  %v10127_v54 = vsub.f32 %v10079_v50, %v12554_v38  ;;  %v10132_v8 = vsub.f32 %v10084_v29, %v12553_v13  ;;  %12769 = vst [vmem:[#allocation24_spill] sm:$0xff] %v10137_v37 }
 0x157   : > { %7987 = vmatprep.subr.bf16.mxu0 %v7986_v48  ;;  %v10114_v19 = vpop.f32.mrb[2].mxu1  ;;  %v1917_v48 = vand.u32 4294901760, %v1916_v56  ;;  %v7892_v12 = vpack.c.bf16 %v1798_v40, %v1791_v57  ;;  %v1805_v10 = vand.u32 4294901760, %v1804_v16  ;;  %v1812_v14 = vand.u32 4294901760, %v1811_v46 }
 0x158   : > { %7885 = vmatpush3.bf16.msra.mxu1 %v7884_v44  ;;  %v10118_v27 = vpop.f32.mrb[3].mxu1  ;;  %v7992_v44 = vpack.c.bf16 %v1810_v60, %v1803_v43  ;;  %v2644_v6 = vsub.f32 %v10093_v28, %v12541_v41  ;;  %v2651_v43 = vsub.f32 %v10098_v58, %v12538_v0  ;;  %v10153_v22 = vsub.f32 %v10107_v33, %v12547_v25 }
 0x159   : > { %7887 = vmatprep.subr.bf16.mxu1 %v7886_v24  ;;  %v10158_v24 = vsub.f32 %v10112_v36, %v12546_v47  ;;  %v7894_v60 = vpack.c.bf16 %v1924_v63, %v1917_v48  ;;  %v12537_v56 = vand.u32 4294901760, %v10127_v54  ;;  %v12536_v34 = vand.u32 4294901760, %v10132_v8 }
 0x15a   : > { %7989 = vmatpush3.bf16.msra.mxu0 %v7988_v21  ;;  %v12544_v21 = vand.u32 4294901760, %v10137_v37  ;;  %v7896_v57 = vpack.c.bf16 %v1812_v14, %v1805_v10  ;;  %v2645_v40 = vand.u32 4294901760, %v2644_v6  ;;  %v2652_v16 = vand.u32 4294901760, %v2651_v43  ;;  %v10200_v6 = vld [vmem:[%s12478_s4 + $0x150] sm:$0xff]  ;;  %v10205_v43 = vld [vmem:[%s12478_s4 + $0x158] sm:$0xff] }
 0x15b   : > { %7991 = vmatprep.subr.bf16.mxu0 %v7990_v15  ;;  %v10167_v15 = vld [vmem:[%s12478_s4 + $0x140] sm:$0xff]  ;;  %v12540_v46 = vand.u32 4294901760, %v10153_v22  ;;  %v12539_v48 = vand.u32 4294901760, %v10158_v24  ;;  %v2658_v63 = vsub.f32 %v10127_v54, %v12537_v56  ;;  %12773 = vst [vmem:[#allocation28_spill] sm:$0xff] %v10200_v6  ;;  %12774 = vst [vmem:[#allocation29_spill] sm:$0xff] %v10205_v43 }
 0x15c   : > { %7889 = vmatpush3.bf16.msra.mxu1 %v7888_v7  ;;  %v12543_v7 = vand.u32 4294901760, %v10142_v23  ;;  %12771 = vst [vmem:[#allocation26_spill] sm:$0xff] %v10167_v15 }
 0x15d   : > { %7891 = vmatprep.subr.bf16.mxu1 %v7890_v53  ;;  %v10173_v53 = vld [vmem:[%s12478_s4 + $0x148] sm:$0xff]  ;;  %v2659_v56 = vand.u32 4294901760, %v2658_v63  ;;  %v12551_v63 = vand.u32 4294901760, %v10200_v6 }
 0x15e   : > { %7993 = vmatpush3.bf16.msra.mxu0 %v7992_v44  ;;  %12772 = vst [vmem:[#allocation27_spill] sm:$0xff] %v10173_v53  ;;  %v10186_v44 = vsub.f32 %v10137_v37, %v12544_v21  ;;  %v10193_v10 = vsub.f32 %v10142_v23, %v12543_v7  ;;  %v12545_v14 = vand.u32 4294901760, %v10173_v53  ;;  %v10245_v21 = vsel %vm1596_vm1, %v10118_v27, 0 }
 0x15f   : > { %7995 = vmatprep.subr.bf16.mxu0 %v9949_v3  ;;  %v2665_v3 = vsub.f32 %v10132_v8, %v12536_v34  ;;  %v10216_v34 = vld [vmem:[%s12478_s4 + $0x160] sm:$0xff] }
 0x160   : > { %7893 = vmatpush3.bf16.msra.mxu1 %v7892_v12  ;;  %v12542_v12 = vand.u32 4294901760, %v10167_v15  ;;  %12775 = vst [vmem:[#allocation30_spill] sm:$0xff] %v10216_v34  ;;  %v12552_v41 = vand.u32 4294901760, %v10216_v34 }
 0x161   : > { %7895 = vmatprep.subr.bf16.mxu1 %v7894_v60  ;;  %v2672_v60 = vsub.f32 %v10153_v22, %v12540_v46  ;;  %v2666_v0 = vand.u32 4294901760, %v2665_v3  ;;  %v12550_v3 = vand.u32 4294901760, %v10205_v43  ;;  %v12560_v46 = vmov 0.0|0.0  }
 0x162   : > { %7997 = vmatpush3.bf16.msra.mxu0 %v9951_v51  ;;  %v8071_v51 = vpack.c.bf16 %v2652_v16, %v2645_v40  ;;  %v10223_v40 = vsub.f32 %v10167_v15, %v12542_v12  ;;  %v10228_v16 = vld [vmem:[%s12478_s4 + $0x168] sm:$0xff] }
 0x163   : > { %7999 = vmatprep.subr.bf16.mxu0 %v9953_v17  ;;  %v2679_v17 = vsub.f32 %v10158_v24, %v12539_v48  ;;  %12776 = vst [vmem:[#allocation31_spill] sm:$0xff] %v10228_v16  ;;  %v12548_v48 = vand.u32 4294901760, %v10193_v10  ;;  %v2673_v12 = vand.u32 4294901760, %v2672_v60  ;;  %v12555_v7 = vand.u32 4294901760, %v10228_v16  ;;  %v10261_v60 = vld [vmem:[%s12478_s4 + $0x178] sm:$0xff] }
 0x164   : > { %7897 = vmatpush3.bf16.msra.mxu1 %v7896_v57  ;;  %v12549_v57 = vand.u32 4294901760, %v10186_v44  ;;  %v12559_v25 = vand.u32 4294901760, %v10223_v40  ;;  %12778 = vst [vmem:[#allocation33_spill] sm:$0xff] %v10261_v60 }
 0x165   : > { %7899 = vmatprep.subr.bf16.mxu1 %v9957_v55  ;;  %v10235_v55 = vsub.f32 %v10173_v53, %v12545_v14  ;;  %v8074_v14 = vpack.c.bf16 %v2666_v0, %v2659_v56  ;;  %v10271_v56 = vsub.f32 %v10200_v6, %v12551_v63  ;;  %v12565_v63 = vand.u32 4294901760, %v10261_v60 }
 0x166   : > { %8001 = vmatpush3.bf16.msra.mxu0 %v9955_v35  ;;  %v2680_v35 = vand.u32 4294901760, %v2679_v17  ;;  %v2686_v47 = vsub.f32 %v10186_v44, %v12549_v57  ;;  %v10276_v17 = vsub.f32 %v10205_v43, %v12550_v3  ;;  %v10291_v57 = vsub.f32 %v10228_v16, %v12555_v7 }
 0x167   : > { %8070 = vmatprep.subr.bf16.mxu0 %v12560_v46  ;;  %v12558_v0 = vand.u32 4294901760, %v10235_v55  ;;  %v2700_v38 = vsub.f32 %v10223_v40, %v12559_v25  ;;  %v12566_v52 = vand.u32 4294901760, %v10271_v56 }
 0x168   : > { %7901 = vmatpush3.bf16.msra.mxu1 %v9959_v20  ;;  %v10256_v20 = vld [vmem:[%s12478_s4 + $0x170] sm:$0xff]  ;;  %v2687_v13 = vand.u32 4294901760, %v2686_v47  ;;  %v10309_v47 = vld [vmem:[%s12478_s4 + $0x180] sm:$0xff] }
 0x169   : > { %2398 = vmatmul.mubr.f32.vlgmr.msra.gmra.mrb[6].mxu0 %v9992_v18  ;;  %7903 = vmatprep.subr.bf16.mxu1 %v9961_v45  ;;  %12777 = vst [vmem:[#allocation32_spill] sm:$0xff] %v10256_v20  ;;  %v2693_v45 = vsub.f32 %v10193_v10, %v12548_v48  ;;  %v10285_v48 = vand.u32 4294901760, %v10245_v21  ;;  %v12562_v3 = vand.u32 4294901760, %v10256_v20  ;;  %v2707_v7 = vsub.f32 %v10235_v55, %v12558_v0 }
 0x16a   : > { %2403 = vmatprep.mubr.f32.mxu0 %v10013_v4  ;;  %8072 = vmatpush1.bf16.msra.mxu0 %v8071_v51  ;;  %v10282_v51 = vsub.f32 %v10216_v34, %v12552_v41  ;;  %v8077_v41 = vpack.c.bf16 %v2680_v35, %v2673_v12  ;;  %12779 = vst [vmem:[#allocation34_spill] sm:$0xff] %v10309_v47  ;;  %v10314_v12 = vld [vmem:[%s12478_s4 + $0x188] sm:$0xff]  ;;  %v2701_v25 = vand.u32 4294901760, %v2700_v38  ;;  %v10349_v38 = vld [vmem:[%s12478_s4 + $0x198] sm:$0xff] }
 0x16b   : > { %8073 = vmatprep.subr.bf16.mxu0 %v12560_v46  ;;  %12780 = vst [vmem:[#allocation35_spill] sm:$0xff] %v10314_v12  ;;  %v10330_v0 = vsub.f32 %v10261_v60, %v12565_v63  ;;  %v2708_v35 = vand.u32 4294901760, %v2707_v7  ;;  %v10344_v63 = vld [vmem:[%s12478_s4 + $0x190] sm:$0xff]  ;;  %12783 = vst [vmem:[#allocation37_spill] sm:$0xff] %v10349_v38  ;;  %v12788_v60 = vand.u32 4294901760, %v10309_v47 }
 0x16c   : > { %7905 = vmatpush3.bf16.msra.mxu1 %v9963_v32  ;;  %v2694_v32 = vand.u32 4294901760, %v2693_v45  ;;  %v10325_v45 = vsub.f32 %v10256_v20, %v12562_v3  ;;  %v2714_v3 = vsub.f32 %v10271_v56, %v12566_v52  ;;  %v12781_v20 = vand.u32 4294901760, %v10276_v17  ;;  %12782 = vst [vmem:[#allocation36_spill] sm:$0xff] %v10344_v63 }
 0x16d   : > { %2405 = vmatmul.mubr.f32.gmra.mrb[8].mxu0 %v10006_v31  ;;  %7939 = vmatprep.subr.bf16.mxu1 %v9829_v11  ;;  %v12786_v7 = vand.u32 4294901760, %v10282_v51  ;;  %v10368_v34 = vsub.f32 %v10309_v47, %v12788_v60  ;;  %v8083_v2 = vpack.c.bf16 %v2708_v35, %v2701_v25  ;;  %v10381_v60 = vld [vmem:[%s12478_s4 + $0x1a0] sm:$0xff]  ;;  %v12797_v6 = vand.u32 4294901760, %v10344_v63  ;;  %v10414_v47 = vld [vmem:[%s12478_s4 + $0x1b0] sm:$0xff] }
 0x16e   : > { %8075 = vmatpush1.bf16.msra.mxu0 %v8074_v14  ;;  %2825 = vmatprep.mubr.f32.mxu0 %v10285_v48  ;;  %v8080_v14 = vpack.c.bf16 %v2694_v32, %v2687_v13  ;;  %v2721_v16 = vsub.f32 %v10276_v17, %v12781_v20  ;;  %v12785_v13 = vand.u32 4294901760, %v10011_v9  ;;  %v12787_v32 = vand.u32 4294901760, %v10291_v57  ;;  %12792 = vst [vmem:[#allocation40_spill] sm:$0xff] %v10381_v60  ;;  %v12796_v35 = vld [vmem:[#allocation10_spill] sm:$0xff] }
 0x16f   : > { %1957 = vmatmul.mubr.f32.vlgmr.msra.gmra.mrb[8].mxu1 %v9992_v18  ;;  %8076 = vmatprep.subr.bf16.mxu0 %v12560_v46  ;;  %v2728_v20 = vsub.f32 %v10282_v51, %v12786_v7  ;;  %12789 = vst [vmem:[#allocation38_spill] sm:$0xff] %v10368_v34  ;;  %v12790_v9 = vand.u32 4294901760, %v10314_v12  ;;  %v2715_v43 = vand.u32 4294901760, %v2714_v3  ;;  %v12794_v25 = vand.u32 4294901760, %v10325_v45  ;;  %12801 = vst [vmem:[#allocation43_spill] sm:$0xff] %v10414_v47 }
 0x170   : > { %1962 = vmatprep.mubr.f32.mxu1 %v10013_v4  ;;  %7941 = vmatpush3.bf16.msra.mxu1 %v9835_v1  ;;  %v2735_v52 = vsub.f32 %v10291_v57, %v12787_v32  ;;  %v2722_v46 = vand.u32 4294901760, %v2721_v16  ;;  %v12795_v3 = vand.u32 4294901760, %v10330_v0  ;;  %v10401_v53 = vsub.f32 %v10344_v63, %v12797_v6  ;;  %v10419_v6 = vld [vmem:[%s12478_s4 + $0x1b8] sm:$0xff] }
 0x171   : > { %7943 = vmatprep.subr.bf16.mxu1 %v9843_v26  ;;  %v2729_v7 = vand.u32 4294901760, %v2728_v20  ;;  %v2742_v16 = vsub.f32 %v10325_v45, %v12794_v25  ;;  %12802 = vst [vmem:[#allocation44_spill] sm:$0xff] %v10419_v6  ;;  %v12806_v36 = vand.u32 4294901760, %v10381_v60 }
 0x172   : > { %8078 = vmatpush1.bf16.msra.mxu0 %v8077_v41  ;;  %v12784_v41 = vmov 0.0|0.0   ;;  %v2736_v32 = vand.u32 4294901760, %v2735_v52  ;;  %12798 = vst [vmem:[#allocation10_spill] sm:$0xff] %v10401_v53  ;;  %v12799_v52 = vand.u32 4294901760, %v10349_v38  ;;  %v8086_v25 = vpack.c.bf16 %v2722_v46, %v2715_v43 }
 0x173   : > { %1964 = vmatmul.mubr.f32.gmra.mrb[10].mxu1 %v10006_v31  ;;  %8079 = vmatprep.subr.bf16.mxu0 %v12784_v41  ;;  %v2743_v46 = vand.u32 4294901760, %v2742_v16 }
 0x174   : > { %7945 = vmatpush3.bf16.msra.mxu1 %v9853_v30  ;;  %2215 = vmatprep.mubr.f32.mxu1 %v12785_v13  ;;  %v10373_v13 = vsub.f32 %v10314_v12, %v12790_v9  ;;  %v10386_v9 = vld [vmem:[%s12478_s4 + $0x1a8] sm:$0xff]  ;;  %v12580_v12 = vand.u32 4294901760, %v10368_v34  ;;  %v10406_v20 = vsub.f32 %v10349_v38, %v12799_v52 }
 0x175   : > { %7947 = vmatprep.subr.bf16.mxu1 %v9860_v42  ;;  %12793 = vst [vmem:[#allocation41_spill] sm:$0xff] %v10386_v9  ;;  %v12803_v52 = vld [vmem:[#allocation11_spill] sm:$0xff] }
 0x176   : > { %12791 = vst [vmem:[#allocation39_spill] sm:$0xff] %v10373_v13  ;;  %8081 = vmatpush1.bf16.msra.mxu0 %v8080_v14  ;;  %v2749_v14 = vsub.f32 %v10330_v0, %v12795_v3  ;;  %12800 = vst [vmem:[#allocation42_spill] sm:$0xff] %v10406_v20  ;;  %v12804_v3 = vld [vmem:[#allocation12_spill] sm:$0xff]  ;;  %v2756_v15 = vsub.f32 %v10368_v34, %v12580_v12  ;;  %v12805_v38 = vand.u32 4294901760, %v10373_v13  ;;  %v12813_v34 = vand.u32 4294901760, %v10414_v47 }
 0x177   : > { %8082 = vmatprep.subr.bf16.mxu0 %v12784_v41 }
 0x178   : > { %7949 = vmatpush3.bf16.msra.mxu1 %v9867_v62  ;;  %v2750_v43 = vand.u32 4294901760, %v2749_v14  ;;  %v2763_v63 = vsub.f32 %v10373_v13, %v12805_v38  ;;  %v12809_v38 = vld [vmem:[#allocation13_spill] sm:$0xff]  ;;  %v2757_v23 = vand.u32 4294901760, %v2756_v15  ;;  %v12814_v15 = vand.u32 4294901760, %v10419_v6 }
 0x179   : > { %7951 = vmatprep.subr.bf16.mxu1 %v12796_v35 }
 0x17a   : > { %8084 = vmatpush1.bf16.msra.mxu0 %v8083_v2  ;;  %v8089_v2 = vpack.c.bf16 %v2736_v32, %v2729_v7  ;;  %v10434_v7 = vsub.f32 %v10381_v60, %v12806_v36  ;;  %v12807_v32 = vand.u32 4294901760, %v10386_v9  ;;  %v8092_v37 = vpack.c.bf16 %v2750_v43, %v2743_v46  ;;  %v12815_v43 = vld [vmem:[#allocation15_spill] sm:$0xff] }
 0x17b   : > { %8085 = vmatprep.subr.bf16.mxu0 %v12784_v41  ;;  %v2764_v13 = vand.u32 4294901760, %v2763_v63  ;;  %v12811_v36 = vand.u32 4294901760, %v10401_v53  ;;  %v10457_v46 = vsub.f32 %v10414_v47, %v12813_v34  ;;  %v10462_v63 = vsub.f32 %v10419_v6, %v12814_v15 }
 0x17c   : > { %7953 = vmatpush3.bf16.msra.mxu1 %v12803_v52  ;;  %v10439_v16 = vsub.f32 %v10386_v9, %v12807_v32  ;;  %v12812_v32 = vand.u32 4294901760, %v10406_v20  ;;  %v12817_v14 = vand.u32 4294901760, %v10434_v7 }
 0x17d   : > { %7955 = vmatprep.subr.bf16.mxu1 %v12804_v3  ;;  %v2770_v60 = vsub.f32 %v10401_v53, %v12811_v36  ;;  %v12816_v36 = vld [vmem:[#allocation16_spill] sm:$0xff]  ;;  %v2797_v15 = vand.u32 4294901760, %v10457_v46  ;;  %v12595_v6 = vand.u32 4294901760, %v10462_v63  ;;  %v12819_v53 = vld [vmem:[#allocation17_spill] sm:$0xff] }
 0x17e   : > { %8087 = vmatpush1.bf16.msra.mxu0 %v8086_v25  ;;  %12808 = vst [vmem:[#allocation11_spill] sm:$0xff] %v10439_v16  ;;  %v12810_v25 = vld [vmem:[#allocation14_spill] sm:$0xff]  ;;  %v2777_v9 = vsub.f32 %v10406_v20, %v12812_v32  ;;  %v2784_v34 = vsub.f32 %v10434_v7, %v12817_v14  ;;  %v12818_v47 = vand.u32 4294901760, %v10439_v16  ;;  %v12821_v14 = vld [vmem:[#allocation19_spill] sm:$0xff] }
 0x17f   : > { %8088 = vmatprep.subr.bf16.mxu0 %v12784_v41  ;;  %v2771_v32 = vand.u32 4294901760, %v2770_v60 }
 0x180   : > { %7957 = vmatpush3.bf16.msra.mxu1 %v12809_v38  ;;  %v2778_v12 = vand.u32 4294901760, %v2777_v9  ;;  %v2791_v20 = vsub.f32 %v10439_v16, %v12818_v47  ;;  %v2798_v9 = vsub.f32 %v10457_v46, %v2797_v15  ;;  %v2805_v47 = vsub.f32 %v10462_v63, %v12595_v6 }
 0x181   : > { %7959 = vmatprep.subr.bf16.mxu1 %v12810_v25  ;;  %v1595_v6 = vmul.f32 %v10118_v27, %v10118_v27 }
 0x182   : > { %8090 = vmatpush1.bf16.msra.mxu0 %v8089_v2  ;;  %v8095_v2 = vpack.c.bf16 %v2764_v13, %v2757_v23  ;;  %v12820_v23 = vld [vmem:[#allocation18_spill] sm:$0xff]  ;;  %v8098_v13 = vpack.c.bf16 %v2778_v12, %v2771_v32  ;;  %v2792_v60 = vand.u32 4294901760, %v2791_v20  ;;  %v2799_v12 = vand.u32 4294901760, %v2798_v9  ;;  %v12834_v9 = vld [vmem:[#allocation39_spill] sm:$0xff] }
 0x183   : > { %8091 = vmatprep.subr.bf16.mxu0 %v12784_v41  ;;  %v12822_v32 = vld [vmem:[#allocation22_spill] sm:$0xff] }
 0x184   : > { %7961 = vmatpush3.bf16.msra.mxu1 %v12815_v43  ;;  %v12823_v20 = vand.u32 4294901760, %v12822_v32 }
 0x185   : > { %7963 = vmatprep.subr.bf16.mxu1 %v12816_v36 }
 0x186   : > { %8093 = vmatpush1.bf16.msra.mxu0 %v8092_v37  ;;  %v2785_v37 = vand.u32 4294901760, %v2784_v34  ;;  %v12824_v34 = vand.u32 4294901760, %v10025_v59  ;;  %v10502_v59 = vsel %vm1596_vm1, %v1595_v6, 0  ;;  %v8122_v6 = vpack.c.bf16 %v10276_v17, %v10271_v56 }
 0x187   : > { %8094 = vmatprep.subr.bf16.mxu0 %v12784_v41 }
 0x188   : > { %7965 = vmatpush3.bf16.msra.mxu1 %v12819_v53  ;;  %v8101_v16 = vpack.c.bf16 %v2792_v60, %v2785_v37  ;;  %v8128_v37 = vpack.c.bf16 %v10330_v0, %v10325_v45  ;;  %v12833_v60 = vld [vmem:[#allocation38_spill] sm:$0xff] }
 0x189   : > { %7967 = vmatprep.subr.bf16.mxu1 %v12820_v23 }
 0x18a   : > { %8096 = vmatpush1.bf16.msra.mxu0 %v8095_v2  ;;  %v2806_v2 = vand.u32 4294901760, %v2805_v47  ;;  %v8131_v47 = vpack.c.bf16 %v12834_v9, %v12833_v60 }
 0x18b   : > { %8097 = vmatprep.subr.bf16.mxu0 %v12784_v41 }
 0x18c   : > { %7969 = vmatpush3.bf16.msra.mxu1 %v12821_v14 }
 0x18d   : > { %8003 = vmatprep.subr.bf16.mxu1 %v9829_v11  ;;  %v8104_v11 = vpack.c.bf16 %v2806_v2, %v2799_v12  ;;  %v12837_v12 = vld [vmem:[#allocation25_spill] sm:$0xff] }
 0x18e   : > { %8099 = vmatpush1.bf16.msra.mxu0 %v8098_v13  ;;  %v12825_v13 = vand.u32 4294901760, %v10018_v5  ;;  %v10512_v5 = vand.u32 4294901760, %v10114_v19  ;;  %v12838_v2 = vand.u32 4294901760, %v12837_v12  ;;  %v12856_v12 = vld [vmem:[#allocation33_spill] sm:$0xff] }
 0x18f   : > { %2219 = vmatmul.mubr.f32.vlgmr.msra.gmra.mrb[12].mxu1 %v12823_v20  ;;  %8100 = vmatprep.subr.bf16.mxu0 %v12784_v41  ;;  %v12840_v20 = vld [vmem:[#allocation42_spill] sm:$0xff] }
 0x190   : > { %2226 = vmatprep.mubr.f32.mxu1 %v12824_v34  ;;  %8005 = vmatpush3.bf16.msra.mxu1 %v9835_v1  ;;  %v8107_v1 = vpack.c.bf16 %v10098_v58, %v10093_v28 }
 0x191   : > { %8007 = vmatprep.subr.bf16.mxu1 %v9843_v26  ;;  %v10509_v26 = vmul.f32 %v10114_v19, %v10114_v19 }
 0x192   : > { %8102 = vmatpush1.bf16.msra.mxu0 %v8101_v16  ;;  %v12826_v16 = vand.u32 4294901760, %v10055_v61  ;;  %v12828_v61 = vand.u32 4294901760, %v10079_v50 }
 0x193   : > { %2230 = vmatmul.mubr.f32.gmra.mrb[14].mxu1 %v12825_v13  ;;  %8103 = vmatprep.subr.bf16.mxu0 %v12784_v41 }
 0x194   : > { %8009 = vmatpush3.bf16.msra.mxu1 %v9853_v30  ;;  %2507 = vmatprep.mubr.f32.mxu1 %v9997_v39  ;;  %v10516_v30 = vand.u32 4294901760, %v10502_v59  ;;  %v10525_v39 = vand.u32 4294901760, %v10509_v26 }
 0x195   : > { %8011 = vmatprep.subr.bf16.mxu1 %v9860_v42  ;;  %v8110_v42 = vpack.c.bf16 %v10132_v8, %v10127_v54 }
 0x196   : > { %8105 = vmatpush1.bf16.msra.mxu0 %v8104_v11  ;;  %v12841_v11 = vld [vmem:[#allocation26_spill] sm:$0xff] }
 0x197   : > { %8106 = vmatprep.subr.bf16.mxu0 %v12784_v41  ;;  %v12842_v13 = vand.u32 4294901760, %v12841_v11  ;;  %v2631_v11 = vsub.f32 %v10509_v26, %v10525_v39  ;;  %v12862_v26 = vld [vmem:[#allocation36_spill] sm:$0xff] }
 0x198   : > { %8013 = vmatpush3.bf16.msra.mxu1 %v9867_v62  ;;  %v10531_v62 = vsub.f32 %v10245_v21, %v10285_v48  ;;  %v8116_v21 = vpack.c.bf16 %v10193_v10, %v10186_v44 }
 0x199   : > { %2827 = vmatmul.mubr.f32.vlgmr.msra.gmra.mrb[10].mxu0 %v10512_v5  ;;  %8015 = vmatprep.subr.bf16.mxu1 %v12796_v35  ;;  %v8113_v35 = vpack.c.bf16 %v10158_v24, %v10153_v22 }
 0x19a   : > { %2832 = vmatprep.mubr.f32.mxu0 %v10516_v30  ;;  %8108 = vmatpush1.bf16.msra.mxu0 %v8107_v1  ;;  %v12843_v1 = vld [vmem:[#allocation27_spill] sm:$0xff] }
 0x19b   : > { %8109 = vmatprep.subr.bf16.mxu0 %v12784_v41 }
 0x19c   : > { %8017 = vmatpush3.bf16.msra.mxu1 %v12803_v52  ;;  %v2611_v52 = vand.u32 4294901760, %v10531_v62 }
 0x19d   : > { %2834 = vmatmul.mubr.f32.gmra.mrb[12].mxu0 %v10525_v39  ;;  %8019 = vmatprep.subr.bf16.mxu1 %v12804_v3  ;;  %v8119_v3 = vpack.c.bf16 %v10235_v55, %v10223_v40 }
 0x19e   : > { %8111 = vmatpush1.bf16.msra.mxu0 %v8110_v42  ;;  %2953 = vmatprep.mubr.f32.mxu0 %v10531_v62  ;;  %v12844_v42 = vand.u32 4294901760, %v12843_v1  ;;  %v12860_v1 = vld [vmem:[#allocation35_spill] sm:$0xff] }
 0x19f   : > { %8112 = vmatprep.subr.bf16.mxu0 %v12784_v41 }
 0x1a0   : > { %8021 = vmatpush3.bf16.msra.mxu1 %v12809_v38  ;;  %v12827_v38 = vand.u32 4294901760, %v10060_v49  ;;  %v12829_v49 = vand.u32 4294901760, %v10084_v29 }
 0x1a1   : > { %8023 = vmatprep.subr.bf16.mxu1 %v12810_v25 }
 0x1a2   : > { %8114 = vmatpush1.bf16.msra.mxu0 %v8113_v35  ;;  %v10560_v25 = vpack.c.bf16 %v12827_v38, %v12826_v16  ;;  %v10610_v35 = vpack.c.bf16 %v12844_v42, %v12842_v13  ;;  %v12848_v38 = vld [vmem:[#allocation29_spill] sm:$0xff]  ;;  %v12861_v42 = vand.u32 4294901760, %v12860_v1  ;;  %v2632_v1 = vand.u32 4294901760, %v2631_v11 }
 0x1a3   : > { %8115 = vmatprep.subr.bf16.mxu0 %v12784_v41 }
 0x1a4   : > { %8025 = vmatpush3.bf16.msra.mxu1 %v12815_v43  ;;  %v2612_v43 = vsub.f32 %v10531_v62, %v2611_v52  ;;  %v12866_v62 = vld [vmem:[#allocation40_spill] sm:$0xff] }
 0x1a5   : > { %8027 = vmatprep.subr.bf16.mxu1 %v12816_v36  ;;  %v10576_v36 = vpack.c.bf16 %v12829_v49, %v12828_v61  ;;  %v8140_v61 = vpack.c.bf16 %v10462_v63, %v10457_v46  ;;  %v12850_v49 = vld [vmem:[#allocation30_spill] sm:$0xff] }
 0x1a6   : > { %8117 = vmatpush1.bf16.msra.mxu0 %v8116_v21  ;;  %v12845_v21 = vld [vmem:[#allocation11_spill] sm:$0xff] }
 0x1a7   : > { %8118 = vmatprep.subr.bf16.mxu0 %v12784_v41 }
 0x1a8   : > { %8029 = vmatpush3.bf16.msra.mxu1 %v12819_v53  ;;  %v8125_v53 = vpack.c.bf16 %v10291_v57, %v10282_v51 }
 0x1a9   : > { %8031 = vmatprep.subr.bf16.mxu1 %v12820_v23  ;;  %v2613_v23 = vand.u32 4294901760, %v2612_v43 }
 0x1aa   : > { %8120 = vmatpush1.bf16.msra.mxu0 %v8119_v3  ;;  %v8137_v3 = vpack.c.bf16 %v12845_v21, %v10434_v7 }
 0x1ab   : > { %8121 = vmatprep.subr.bf16.mxu0 %v12784_v41 }
 0x1ac   : > { %8033 = vmatpush3.bf16.msra.mxu1 %v12821_v14 }
 0x1ad   : > { %8034 = vmatprep.subr.bf16.mxu1 %v12784_v41 }
 0x1ae   : > { %8123 = vmatpush1.bf16.msra.mxu0 %v8122_v6  ;;  %v12846_v6 = vld [vmem:[#allocation28_spill] sm:$0xff] }
 0x1af   : > { %2509 = vmatmul.mubr.f32.vlgmr.msra.gmra.mrb[16].mxu1 %v9992_v18  ;;  %8124 = vmatprep.subr.bf16.mxu0 %v12784_v41  ;;  %v12830_v18 = vand.u32 4294901760, %v10107_v33  ;;  %v12839_v33 = vld [vmem:[#allocation10_spill] sm:$0xff]  ;;  %v12847_v16 = vand.u32 4294901760, %v12846_v6  ;;  %v12863_v6 = vand.u32 4294901760, %v12862_v26 }
 0x1b0   : > { %2514 = vmatprep.mubr.f32.mxu1 %v10013_v4  ;;  %8036 = vmatpush1.bf16.msra.mxu1 %v10560_v25  ;;  %v12831_v4 = vld [vmem:[#allocation23_spill] sm:$0xff]  ;;  %v8134_v34 = vpack.c.bf16 %v12840_v20, %v12839_v33 }
 0x1b1   : > { %8037 = vmatprep.subr.bf16.mxu1 %v12784_v41  ;;  %v12832_v50 = vand.u32 4294901760, %v12831_v4 }
 0x1b2   : > { %8126 = vmatpush1.bf16.msra.mxu0 %v8125_v53  ;;  %v12849_v53 = vand.u32 4294901760, %v12848_v38 }
 0x1b3   : > { %2516 = vmatmul.mubr.f32.gmra.mrb[18].mxu1 %v10006_v31  ;;  %8127 = vmatprep.subr.bf16.mxu0 %v12784_v41  ;;  %v10588_v29 = vpack.c.bf16 %v12832_v50, %v12830_v18  ;;  %v12835_v31 = vld [vmem:[#allocation24_spill] sm:$0xff]  ;;  %v2616_v50 = vsub.f32 %v10114_v19, %v10512_v5 }
 0x1b4   : > { %8039 = vmatpush1.bf16.msra.mxu1 %v10576_v36  ;;  %2614 = vmatprep.mubr.f32.mxu1 %v2613_v23  ;;  %v12836_v14 = vand.u32 4294901760, %v12835_v31  ;;  %v10621_v43 = vpack.c.bf16 %v12849_v53, %v12847_v16  ;;  %v12851_v23 = vand.u32 4294901760, %v12850_v49  ;;  %v12854_v31 = vld [vmem:[#allocation32_spill] sm:$0xff]  ;;  %v12864_v16 = vld [vmem:[#allocation37_spill] sm:$0xff] }
 0x1b5   : > { %8040 = vmatprep.subr.bf16.mxu1 %v12784_v41  ;;  %v12865_v38 = vand.u32 4294901760, %v12864_v16 }
 0x1b6   : > { %8129 = vmatpush1.bf16.msra.mxu0 %v8128_v37  ;;  %v10599_v32 = vpack.c.bf16 %v12838_v2, %v12836_v14  ;;  %v12852_v37 = vld [vmem:[#allocation31_spill] sm:$0xff]  ;;  %v12855_v14 = vand.u32 4294901760, %v12854_v31  ;;  %v12857_v2 = vand.u32 4294901760, %v12856_v12  ;;  %v12872_v12 = vld [vmem:[#allocation44_spill] sm:$0xff] }
 0x1b7   : > { %8130 = vmatprep.subr.bf16.mxu0 %v12784_v41  ;;  %v12853_v18 = vand.u32 4294901760, %v12852_v37  ;;  %v10669_v53 = vpack.c.bf16 %v12865_v38, %v12863_v6  ;;  %v2617_v37 = vand.u32 4294901760, %v2616_v50  ;;  %v12870_v31 = vld [vmem:[#allocation43_spill] sm:$0xff]  ;;  %v2633_v6 = vsub.f32 %v2631_v11, %v2632_v1 }
 0x1b8   : > { %8042 = vmatpush1.bf16.msra.mxu1 %v10588_v29  ;;  %v12876_v38 = vand.u32 4294901760, %v10098_v58  ;;  %v12880_v58 = vand.u32 4294901760, %v10158_v24  ;;  %v12886_v24 = vand.u32 4294901760, %v10276_v17  ;;  %v12892_v17 = vand.u32 4294901760, %v12834_v9 }
 0x1b9   : > { %8043 = vmatprep.subr.bf16.mxu1 %v12784_v41  ;;  %v10632_v4 = vpack.c.bf16 %v12853_v18, %v12851_v23 }
 0x1ba   : > { %8132 = vmatpush1.bf16.msra.mxu0 %v8131_v47  ;;  %v2625_v47 = vsub.f32 %v10502_v59, %v10516_v30  ;;  %v12858_v59 = vld [vmem:[#allocation34_spill] sm:$0xff] }
 0x1bb   : > { %8133 = vmatprep.subr.bf16.mxu0 %v12784_v41  ;;  %v12859_v13 = vand.u32 4294901760, %v12858_v59 }
 0x1bc   : > { %8045 = vmatpush1.bf16.msra.mxu1 %v10599_v32  ;;  %v2626_v18 = vand.u32 4294901760, %v2625_v47 }
 0x1bd   : > { %8046 = vmatprep.subr.bf16.mxu1 %v12784_v41 }
 0x1be   : > { %8135 = vmatpush1.bf16.msra.mxu0 %v8134_v34  ;;  %v10645_v34 = vpack.c.bf16 %v12857_v2, %v12855_v14  ;;  %v12871_v14 = vand.u32 4294901760, %v12870_v31  ;;  %v12873_v2 = vand.u32 4294901760, %v12872_v12 }
 0x1bf   : > { %8136 = vmatprep.subr.bf16.mxu0 %v12784_v41 }
 0x1c0   : > { %8048 = vmatpush1.bf16.msra.mxu1 %v10610_v35  ;;  %v10689_v59 = vpack.c.bf16 %v12873_v2, %v12871_v14  ;;  %v12884_v14 = vand.u32 4294901760, %v10235_v55  ;;  %v12890_v55 = vand.u32 4294901760, %v10330_v0 }
 0x1c1   : > { %8049 = vmatprep.subr.bf16.mxu1 %v12784_v41 }
 0x1c2   : > { %8138 = vmatpush1.bf16.msra.mxu0 %v8137_v3  ;;  %v10657_v3 = vpack.c.bf16 %v12861_v42, %v12859_v13  ;;  %v2618_v13 = vsub.f32 %v2616_v50, %v2617_v37  ;;  %v2627_v42 = vsub.f32 %v2625_v47, %v2626_v18 }
 0x1c3   : > { %8139 = vmatprep.subr.bf16.mxu0 %v12784_v41 }
 0x1c4   : > { %8051 = vmatpush1.bf16.msra.mxu1 %v10621_v43  ;;  %v2619_v26 = vand.u32 4294901760, %v2618_v13  ;;  %v2628_v16 = vand.u32 4294901760, %v2627_v42 }
 0x1c5   : > { %8052 = vmatprep.subr.bf16.mxu1 %v12784_v41 }
 0x1c6   : > { %8141 = vmatpush1.bf16.msra.mxu0 %v8140_v61  ;;  %v12868_v61 = vld [vmem:[#allocation41_spill] sm:$0xff] }
 0x1c7   : > { %8142 = vmatprep.subr.bf16.mxu0 %v12784_v41  ;;  %v12869_v49 = vand.u32 4294901760, %v12868_v61  ;;  %v12878_v61 = vand.u32 4294901760, %v10132_v8 }
 0x1c8   : > { %8054 = vmatpush1.bf16.msra.mxu1 %v10632_v4 }
 0x1c9   : > { %2956 = vmatmul.mubr.f32.vlgmr.msra.gmra.mrb[10].mxu0 %v2616_v50  ;;  %8055 = vmatprep.subr.bf16.mxu1 %v12784_v41  ;;  %v2634_v50 = vand.u32 4294901760, %v2633_v6 }
 0x1ca   : > { %2962 = vmatprep.mubr.f32.mxu0 %v2625_v47  ;;  %8144 = vmatpush1.bf16.msra.mxu0 %v10560_v25  ;;  %v12874_v47 = vmov 0.0  }
 0x1cb   : > { %8145 = vmatprep.subr.bf16.mxu0 %v12784_v41 }
 0x1cc   : > { %8057 = vmatpush1.bf16.msra.mxu1 %v10645_v34 }
 0x1cd   : > { %2965 = vmatmul.mubr.f32.gmra.mrb[12].mxu0 %v2631_v11  ;;  %8058 = vmatprep.subr.bf16.mxu1 %v12784_v41  ;;  %v12875_v11 = vand.u32 4294901760, %v10093_v28  ;;  %v12879_v28 = vand.u32 4294901760, %v10153_v22  ;;  %v12885_v22 = vand.u32 4294901760, %v10271_v56  ;;  %v12891_v56 = vand.u32 4294901760, %v12833_v60 }
 0x1ce   : > { %8147 = vmatpush1.bf16.msra.mxu0 %v10576_v36  ;;  %3061 = vmatprep.mubr.f32.mxu0 %v2611_v52  ;;  %v12867_v52 = vand.u32 4294901760, %v12866_v62  ;;  %v12896_v60 = vand.u32 4294901760, %v12845_v21 }
 0x1cf   : > { %8148 = vmatprep.subr.bf16.mxu0 %v12784_v41  ;;  %v8179_v62 = vpack.c.bf16 %v12876_v38, %v12875_v11  ;;  %v8185_v31 = vpack.c.bf16 %v12880_v58, %v12879_v28  ;;  %v8194_v2 = vpack.c.bf16 %v12886_v24, %v12885_v22  ;;  %v8203_v42 = vpack.c.bf16 %v12892_v17, %v12891_v56 }
 0x1d0   : > { %8060 = vmatpush1.bf16.msra.mxu1 %v10657_v3  ;;  %v10679_v23 = vpack.c.bf16 %v12869_v49, %v12867_v52  ;;  %v12877_v52 = vand.u32 4294901760, %v10127_v54  ;;  %v12882_v54 = vand.u32 4294901760, %v10193_v10  ;;  %v12888_v10 = vand.u32 4294901760, %v10291_v57 }
 0x1d1   : > { %8061 = vmatprep.subr.bf16.mxu1 %v12784_v41  ;;  %v12893_v57 = vand.u32 4294901760, %v12839_v33 }
 0x1d2   : > { %8150 = vmatpush1.bf16.msra.mxu0 %v10588_v29  ;;  %v8182_v49 = vpack.c.bf16 %v12878_v61, %v12877_v52 }
 0x1d3   : > { %8151 = vmatprep.subr.bf16.mxu0 %v12784_v41 }
 0x1d4   : > { %8063 = vmatpush1.bf16.msra.mxu1 %v10669_v53 }
 0x1d5   : > { %8064 = vmatprep.subr.bf16.mxu1 %v12784_v41 }
 0x1d6   : > { %8153 = vmatpush1.bf16.msra.mxu0 %v10599_v32 }
 0x1d7   : > { %8154 = vmatprep.subr.bf16.mxu0 %v12784_v41 }
 0x1d8   : > { %8066 = vmatpush1.bf16.msra.mxu1 %v10679_v23 }
 0x1d9   : > { %8067 = vmatprep.subr.bf16.mxu1 %v12784_v41 }
 0x1da   : > { %8156 = vmatpush1.bf16.msra.mxu0 %v10610_v35 }
 0x1db   : > { %8157 = vmatprep.subr.bf16.mxu0 %v12784_v41 }
 0x1dc   : > { %8069 = vmatpush1.bf16.msra.mxu1 %v10689_v59 }
 0x1de   : > { %8159 = vmatpush1.bf16.msra.mxu0 %v10621_v43 }
 0x1df   : > { %2620 = vmatmul.mubr.f32.vlgmr.msra.gmra.mrb[20].mxu1 %v2619_v26  ;;  %8160 = vmatprep.subr.bf16.mxu0 %v12784_v41 }
 0x1e0   : > { %2629 = vmatprep.mubr.f32.mxu1 %v2628_v16  ;;  %v12895_v16 = vand.u32 4294901760, %v10434_v7 }
 0x1e2   : > { %8162 = vmatpush1.bf16.msra.mxu0 %v10632_v4  ;;  %v8209_v9 = vpack.c.bf16 %v12896_v60, %v12895_v16  ;;  %v291_v60 = vlaneseq }
 0x1e3   : > { %2635 = vmatmul.mubr.f32.gmra.mrb[22].mxu1 %v2634_v50  ;;  %8163 = vmatprep.subr.bf16.mxu0 %v12784_v41 }
 0x1e4   : > { %3752 = vmatprep.mubr.f32.mxu1 %v12874_v47  ;;  %vm293_vm2 = vcmp.lt.s32.totalorder %v291_v60, 384 }
 0x1e6   : > { %8165 = vmatpush1.bf16.msra.mxu0 %v10645_v34 }
 0x1e7   : > { %8166 = vmatprep.subr.bf16.mxu0 %v12784_v41 }
 0x1ea   : > { %8168 = vmatpush1.bf16.msra.mxu0 %v10657_v3 }
 0x1eb   : > { %8169 = vmatprep.subr.bf16.mxu0 %v12784_v41 }
 0x1ee   : > { %8171 = vmatpush1.bf16.msra.mxu0 %v10669_v53 }
 0x1ef   : > { %8172 = vmatprep.subr.bf16.mxu0 %v12784_v41 }
 0x1f2   : > { %8174 = vmatpush1.bf16.msra.mxu0 %v10679_v23 }
 0x1f3   : > { %8175 = vmatprep.subr.bf16.mxu0 %v12784_v41 }
 0x1f6   : > { %8177 = vmatpush1.bf16.msra.mxu0 %v10689_v59 }
 0x1f7   : > { %8178 = vmatprep.subr.bf16.mxu0 %v12784_v41 }
 0x1f9   : > { %3065 = vmatmul.mubr.f32.vlgmr.msra.gmra.mrb[10].mxu0 %v2617_v37  ;;  %v12881_v37 = vand.u32 4294901760, %v10186_v44  ;;  %v12887_v44 = vand.u32 4294901760, %v10282_v51  ;;  %v12894_v51 = vand.u32 4294901760, %v12840_v20  ;;  %v12897_v20 = vand.u32 4294901760, %v10462_v63 }
 0x1fa   : > { %3072 = vmatprep.mubr.f32.mxu0 %v2626_v18  ;;  %8180 = vmatpush1.bf16.msra.mxu0 %v8179_v62  ;;  %v12883_v18 = vand.u32 4294901760, %v10223_v40  ;;  %v12889_v40 = vand.u32 4294901760, %v10325_v45 }
 0x1fb   : > { %8181 = vmatprep.subr.bf16.mxu0 %v12784_v41  ;;  %v8188_v8 = vpack.c.bf16 %v12882_v54, %v12881_v37  ;;  %v8197_v13 = vpack.c.bf16 %v12888_v10, %v12887_v44  ;;  %v8206_v26 = vpack.c.bf16 %v12894_v51, %v12893_v57  ;;  %v8212_v62 = vpack.c.bf16 %v12897_v20, %v2797_v15 }
 0x1fc   : > { %v8191_v12 = vpack.c.bf16 %v12884_v14, %v12883_v18 }
 0x1fd   : > { %3076 = vmatmul.mubr.f32.gmra.mrb[12].mxu0 %v2632_v1  ;;  %v8200_v1 = vpack.c.bf16 %v12890_v55, %v12889_v40  ;;  %v9114_v40 = vmov 0  }
 0x1fe   : > { %8183 = vmatpush1.bf16.msra.mxu0 %v8182_v49  ;;  %3218 = vmatprep.mubr.f32.mxu0 %v10285_v48 }
 0x1ff   : > { %8184 = vmatprep.subr.bf16.mxu0 %v12784_v41  ;;  %9022 = vset.pattern.permute.xlu0 %v9114_v40 }
 0x200   : > { %9023 = vset.pattern.permute.xlu1 %v9114_v40 }
 0x202   : > { %8186 = vmatpush1.bf16.msra.mxu0 %v8185_v31 }
 0x203   : > { %8187 = vmatprep.subr.bf16.mxu0 %v12784_v41 }
 0x206   : > { %8189 = vmatpush1.bf16.msra.mxu0 %v8188_v8 }
 0x207   : > { %8190 = vmatprep.subr.bf16.mxu0 %v12784_v41 }
 0x20a   : > { %8192 = vmatpush1.bf16.msra.mxu0 %v8191_v12 }
 0x20b   : > { %8193 = vmatprep.subr.bf16.mxu0 %v12784_v41 }
 0x20e   : > { %8195 = vmatpush1.bf16.msra.mxu0 %v8194_v2 }
 0x20f   : > { %8196 = vmatprep.subr.bf16.mxu0 %v12784_v41 }
 0x212   : > { %8198 = vmatpush1.bf16.msra.mxu0 %v8197_v13 }
 0x213   : > { %8199 = vmatprep.subr.bf16.mxu0 %v12784_v41 }
 0x216   : > { %8201 = vmatpush1.bf16.msra.mxu0 %v8200_v1 }
 0x217   : > { %8202 = vmatprep.subr.bf16.mxu0 %v12784_v41 }
 0x21a   : > { %8204 = vmatpush1.bf16.msra.mxu0 %v8203_v42 }
 0x21b   : > { %8205 = vmatprep.subr.bf16.mxu0 %v12784_v41 }
 0x21c   : > { %v6870_v0 = vpop.f32.mrb[2].mxu0 }
 0x21d   : > { %v6871_v45 = vpop.f32.mrb[3].mxu0 }
 0x21e   : > { %v6872_v6 = vadd.f32 %v6871_v45, %v6870_v0  ;;  %8207 = vmatpush1.bf16.msra.mxu0 %v8206_v26 }
 0x21f   : > { %8208 = vmatprep.subr.bf16.mxu0 %v12784_v41 }
 0x220   : > { %v6873_v50 = vpop.f32.mrb[4].mxu0 }
 0x221   : > { %v6874_v11 = vpop.f32.mrb[5].mxu0 }
 0x222   : > { %v6875_v38 = vadd.f32 %v6874_v11, %v6873_v50  ;;  %8210 = vmatpush1.bf16.msra.mxu0 %v8209_v9  ;;  %v6794_v33 = vpop.f32.mrb[4].mxu1  ;;  %v9115_v11 = vmov 1.0  }
 0x223   : > { %v6795_v52 = vpop.f32.mrb[5].mxu1  ;;  %8211 = vmatprep.subr.bf16.mxu0 %v12784_v41  ;;  %296 = vst.msk [vmem:[#allocation3 + $0xdc] ss:$8 sm:$0x7] %vm293_vm2, %v9115_v11 }
 0x224   : > { %v6796_v61 = vadd.f32 %v6795_v52, %v6794_v33 }
 0x226   : > { %8213 = vmatpush1.bf16.msra.mxu0 %v8212_v62  ;;  %v6797_v7 = vpop.f32.mrb[6].mxu1  ;;  %v306_v62 = vshrl.u32 %v291_v60, 7 }
 0x227   : > { %v6798_v21 = vpop.f32.mrb[7].mxu1  ;;  %8214 = vmatprep.subr.bf16.mxu0 %v12784_v41 }
 0x228   : > { %v6799_v49 = vadd.f32 %v6798_v21, %v6797_v7  ;;  %v311_v7 = vsub.s32 1, %v306_v62  ;;  %v315_v21 = vsub.s32 2, %v306_v62 }
 0x229   : > { %3220 = vmatmul.mubr.f32.vlgmr.msra.gmra.mrb[10].mxu0 %v10512_v5 }
 0x22a   : > { %3225 = vmatprep.mubr.f32.mxu0 %v10516_v30  ;;  %8216 = vmatpush1.bf16.msra.mxu0 %v10560_v25 }
 0x22b   : > { %8217 = vmatprep.subr.bf16.mxu0 %v12784_v41 }
 0x22d   : > { %3227 = vmatmul.mubr.f32.gmra.mrb[12].mxu0 %v10525_v39 }
 0x22e   : > { %8219 = vmatpush1.bf16.msra.mxu0 %v10576_v36  ;;  %3321 = vmatprep.mubr.f32.mxu0 %v10285_v48 }
 0x22f   : > { %8220 = vmatprep.subr.bf16.mxu0 %v12784_v41 }
 0x232   : > { %8222 = vmatpush1.bf16.msra.mxu0 %v10588_v29 }
 0x233   : > { %8223 = vmatprep.subr.bf16.mxu0 %v12784_v41 }
 0x236   : > { %8225 = vmatpush1.bf16.msra.mxu0 %v10599_v32 }
 0x237   : > { %8226 = vmatprep.subr.bf16.mxu0 %v12784_v41 }
 0x23a   : > { %8228 = vmatpush1.bf16.msra.mxu0 %v10610_v35 }
 0x23b   : > { %8229 = vmatprep.subr.bf16.mxu0 %v12784_v41 }
 0x23c   : > { %v6946_v46 = vpop.f32.mrb[6].mxu0 }
 0x23d   : > { %v6947_v63 = vpop.f32.mrb[7].mxu0 }
 0x23e   : > { %v6948_v15 = vadd.f32 %v6947_v63, %v6946_v46  ;;  %8231 = vmatpush1.bf16.msra.mxu0 %v10621_v43  ;;  %v12898_v46 = vld [vmem:[#allocation20_spill] sm:$0xff] }
 0x23f   : > { %8232 = vmatprep.subr.bf16.mxu0 %v12784_v41 }
 0x240   : > { %v6949_v48 = vpop.f32.mrb[8].mxu0 }
 0x241   : > { %v6950_v25 = vpop.f32.mrb[9].mxu0 }
 0x242   : > { %v6951_v36 = vadd.f32 %v6950_v25, %v6949_v48  ;;  %v6832_v29 = vpop.f32.mrb[8].mxu1  ;;  %8234 = vmatpush1.bf16.msra.mxu0 %v10632_v4 }
 0x243   : > { %v6833_v32 = vpop.f32.mrb[9].mxu1  ;;  %8235 = vmatprep.subr.bf16.mxu0 %v12784_v41 }
 0x244   : > { %v6834_v28 = vadd.f32 %v6833_v32, %v6832_v29  ;;  %v303_v29 = vld [vmem:[%s12477_s3] sm:$0xf]  ;;  %v3363_v32 = vstv %s301_s20  ;;  %s6758_s20 = sld [smem:[#allocation4 + $0x1]] }
 0x246   : > { %v1959_v35 = vadd.f32 %v6834_v28, %v6796_v61  ;;  %v6835_v58 = vpop.f32.mrb[10].mxu1  ;;  %8237 = vmatpush1.bf16.msra.mxu0 %v10645_v34  ;;  %v307_v61 = vsub.s32 0, %v306_v62 }
 0x247   : > { %v6836_v31 = vpop.f32.mrb[11].mxu1  ;;  %8238 = vmatprep.subr.bf16.mxu0 %v12784_v41 }
 0x248   : > { %v6837_v43 = vadd.f32 %v6836_v31, %v6835_v58  ;;  %v2104_v37 = vadd.f32 %v6872_v6, %v1959_v35 }
 0x24a   : > { %v1966_v54 = vadd.f32 %v6837_v43, %v6799_v49  ;;  %8240 = vmatpush1.bf16.msra.mxu0 %v10657_v3  ;;  %v319_v49 = vsub.s32 3, %v306_v62  ;;  %v3629_v62 = vld [vmem:[%s12476_s2] sm:$0xff] }
 0x24b   : > { %8241 = vmatprep.subr.bf16.mxu0 %v12784_v41 }
 0x24c   : > { %v2113_v8 = vadd.f32 %v6875_v38, %v1966_v54  ;;  %v312_v54 = vrot.slane %v303_v29, %v311_v7 }
 0x24e   : > { %8243 = vmatpush1.bf16.msra.mxu0 %v10669_v53 }
 0x24f   : > { %8244 = vmatprep.subr.bf16.mxu0 %v12784_v41 }
 0x252   : > { %8246 = vmatpush1.bf16.msra.mxu0 %v10679_v23 }
 0x253   : > { %8247 = vmatprep.subr.bf16.mxu0 %v12784_v41 }
 0x256   : > { %8249 = vmatpush1.bf16.msra.mxu0 %v10689_v59 }
 0x259   : > { %3323 = vmatmul.mubr.f32.vlgmr.msra.gmra.mrb[10].mxu0 %v10512_v5 }
 0x25a   : > { %3328 = vmatprep.mubr.f32.mxu0 %v10516_v30 }
 0x25d   : > { %3330 = vmatmul.mubr.f32.gmra.mrb[12].mxu0 %v10525_v39 }
 0x262   : > { %v6908_v4 = vpop.f32.mrb[12].mxu1 }
 0x263   : > { %v6909_v34 = vpop.f32.mrb[13].mxu1 }
 0x264   : > { %v6910_v3 = vadd.f32 %v6909_v34, %v6908_v4  ;;  %v320_v4 = vrot.slane %v303_v29, %v319_v49 }
 0x266   : > { %v2221_v18 = vadd.f32 %v6910_v3, %v2104_v37  ;;  %v6911_v14 = vpop.f32.mrb[14].mxu1  ;;  %v308_v37 = vrot.slane %v303_v29, %v307_v61 }
 0x267   : > { %v6912_v53 = vpop.f32.mrb[15].mxu1 }
 0x268   : > { %v6913_v12 = vadd.f32 %v6912_v53, %v6911_v14  ;;  %v2400_v22 = vadd.f32 %v6948_v15, %v2221_v18  ;;  %v12899_v15 = vld [vmem:[#allocation21_spill] sm:$0xff] }
 0x26a   : > { %v2232_v24 = vadd.f32 %v6913_v12, %v2113_v8  ;;  %v316_v8 = vrot.slane %v303_v29, %v315_v21 }
 0x26c   : > { %v2407_v23 = vadd.f32 %v6951_v36, %v2232_v24 }
 0x282   : > { %v6984_v2 = vpop.f32.mrb[16].mxu1 }
 0x283   : > { %v6985_v41 = vpop.f32.mrb[17].mxu1 }
 0x284   : > { %v6986_v44 = vadd.f32 %v6985_v41, %v6984_v2  ;;  %v3614_v41 = vld [vmem:[%s9250_s8 + $0x80] sm:$0xf0] }
 0x286   : > { %v6987_v59 = vpop.f32.mrb[18].mxu1  ;;  %v2511_v10 = vadd.f32 %v6986_v44, %v2400_v22  ;;  %v3620_v44 = vrot.slane %v3614_v41, 4 }
 0x287   : > { %v6988_v5 = vpop.f32.mrb[19].mxu1 }
 0x288   : > { %v6989_v13 = vadd.f32 %v6988_v5, %v6987_v59  ;;  %3626 = vst [vmem:[#allocation3 + $0xd8] sm:$0xf] %v3620_v44  ;;  %v3615_v59 = vld [vmem:[%s9250_s8 + $0x88] sm:$0xf0] }
 0x28a   : > { %v2518_v30 = vadd.f32 %v6989_v13, %v2407_v23  ;;  %v3616_v13 = vld [vmem:[%s9250_s8 + $0x90] sm:$0xf0] }
 0x2b2   : > { %v2621_v39 = vpop.f32.mrb[20].mxu1 }
 0x2b3   : > { %v2622_v55 = vadd.f32 %v2621_v39, %v2511_v10  ;;  %v2623_v1 = vpop.f32.mrb[21].mxu1  ;;  %v3621_v10 = vrot.slane %v3615_v59, 4 }
 0x2b5   : > { %3627 = vst [vmem:[#allocation3 + $0xe0] sm:$0xf] %v3621_v10 }
 0x2b6   : > { %v2636_v56 = vpop.f32.mrb[22].mxu1 }
 0x2b7   : > { %v2637_v17 = vadd.f32 %v2636_v56, %v2518_v30  ;;  %v2638_v42 = vpop.f32.mrb[23].mxu1  ;;  %v3622_v30 = vrot.slane %v3616_v13, 4 }
 0x2b9   : > { %3628 = vst [vmem:[#allocation3 + $0xe8] sm:$0xf] %v3622_v30 }
 0x32c   : > { %v3324_v57 = vpop.f32.mrb[10].mxu0 }
 0x32d   : > { %v8877_v51 = vadd.f32 %v3324_v57, %v2622_v55  ;;  %v3326_v26 = vpop.f32.mrb[11].mxu0 }
 0x32f   : > { %v3335_v0 = vmul.f32 0.00390625, %v8877_v51 }
 0x330   : > { %v3331_v45 = vpop.f32.mrb[12].mxu0 }
 0x331   : > { %v8879_v6 = vadd.f32 %v3331_v45, %v2637_v17  ;;  %v3333_v16 = vpop.f32.mrb[13].mxu0  ;;  %3341 = vperm.xlu0 %9022, %v3335_v0   ;;  %v3337_v9 = vmul.f32 %v3335_v0, %v3335_v0 }
 0x333   : > { %v3336_v50 = vmul.f32 0.00390625, %v8879_v6 }
 0x335   : > { %v3338_v38 = vsub.f32 %v3336_v50, %v3337_v9 }
 0x337   : > { %v3348_v33 = vadd.f32 1e-05, %v3338_v38 }
 0x339   : > { %9024 = vrsqrt.f32 %v3348_v33 }
 0x343   : > { %v9025_v20 = vpop.eup %9024 }
 0x344   : > { %3352 = vperm.xlu0 %9022, %v9025_v20  }
 0x3b0   : > { %v3342_v52 = vpop.permute.xlu0 %3341 }
 0x3b1   : > { %v3344_v63 = vsub.f32 %v12898_v46, %v3342_v52  ;;  %v3345_v48 = vsub.f32 %v12899_v15, %v3342_v52  ;;  %v3346_v25 = vsub.f32 %v10114_v19, %v3342_v52  ;;  %v3347_v36 = vsub.f32 %v10118_v27, %v3342_v52  ;;  %v10866_v46 = vld [vmem:[#allocation3 + $0xd8] sm:$0xff] }
 0x3c3   : > { %v3353_v28 = vpop.permute.xlu0 %3352 }
 0x3c4   : > { %v3355_v35 = vmul.f32 %v3353_v28, %v3344_v63  ;;  %v3356_v58 = vmul.f32 %v3353_v28, %v3345_v48  ;;  %v3357_v31 = vmul.f32 %v3353_v28, %v3346_v25  ;;  %v3358_v43 = vmul.f32 %v3353_v28, %v3347_v36 }
 0x3c5   : > { %v3663_v25 = vsel %vm3661_vm10, %v3629_v62, 0 }
 0x3c6   : > { %vm3359_vm3 = vcmp.ge.f32.partialorder %v3355_v35, 0.0  ;;  %vm3360_vm4 = vcmp.ge.f32.partialorder %v3356_v58, 0.0  ;;  %vm3361_vm5 = vcmp.ge.f32.partialorder %v3357_v31, 0.0  ;;  %vm3362_vm6 = vcmp.ge.f32.partialorder %v3358_v43, 0.0 }
 0x3c7   : > { %v3364_v19 = vmul.f32 %v3363_v32, %v3355_v35  ;;  %v3365_v27 = vmul.f32 %v3363_v32, %v3356_v58  ;;  %v3366_v34 = vmul.f32 %v3363_v32, %v3357_v31  ;;  %v3367_v3 = vmul.f32 %v3363_v32, %v3358_v43 }
 0x3c8   : > { %v12597_v32 = vand.u32 4294901760, %v10866_v46 }
 0x3c9   : > { %v3368_v18 = vsel %vm3359_vm3, %v3355_v35, %v3364_v19  ;;  %v3369_v14 = vsel %vm3360_vm4, %v3356_v58, %v3365_v27  ;;  %v3370_v53 = vsel %vm3361_vm5, %v3357_v31, %v3366_v34  ;;  %v3371_v12 = vsel %vm3362_vm6, %v3358_v43, %v3367_v3  ;;  %v3630_v35 = vld [vmem:[%s12476_s2 + $0x8] sm:$0xff]  ;;  %v10899_v19 = vld [vmem:[#allocation3 + $0xe0] sm:$0xff] }
 0x3ca   : > { %v3372_v22 = vmul.f32 %v3368_v18, %v308_v37  ;;  %v3373_v24 = vmul.f32 %v3369_v14, %v312_v54  ;;  %v3374_v23 = vmul.f32 %v3370_v53, %v316_v8  ;;  %v3375_v2 = vmul.f32 %v3371_v12, %v320_v4 }
 0x3cb   : > { %v10887_v43 = vand.u32 4294901760, %v3663_v25  ;;  %v3666_v27 = vsel %vm3661_vm10, %v3630_v35, 0  ;;  %v10905_v3 = vsub.f32 %v10866_v46, %v12597_v32 }
 0x3cc   : > { %3379 = vst.msk [vmem:[#allocation2 + $0x18] sm:$0xff] %vm1596_vm1, %v3375_v2  ;;  %3416 = vrot.lane.b32.xlu0 %v3373_v24, %s9116_s23  ;;  %3390 = vrot.lane.b32.xlu1 %v3373_v24, %s9117_s29  ;;  %v10916_v2 = vand.u32 4294901760, %v3666_v27 }
 0x3d0   : > { %3392 = vrot.lane.b32.xlu1 %v3374_v23, %s9117_s29  ;;  %3388 = vrot.lane.b32.xlu0 %v3372_v22, %s9117_s29 }
 0x3d3   : > { %v3409_v5 = vld [vmem:[#allocation2 + $0x18] sm:$0xff] }
 0x3d4   : > { %3418 = vrot.lane.b32.xlu1 %v3374_v23, %s9116_s23  ;;  %3442 = vrot.lane.b32.xlu0 %v3373_v24, %s9118_s9 }
 0x3d8   : > { %3414 = vrot.lane.b32.xlu1 %v3372_v22, %s9116_s23  ;;  %3468 = vrot.lane.b32.xlu0 %v3373_v24, %s9119_s13 }
 0x3dc   : > { %3444 = vrot.lane.b32.xlu1 %v3374_v23, %s9118_s9  ;;  %3440 = vrot.lane.b32.xlu0 %v3372_v22, %s9118_s9 }
 0x3e0   : > { %3470 = vrot.lane.b32.xlu1 %v3374_v23, %s9119_s13  ;;  %3494 = vrot.lane.b32.xlu0 %v3373_v24, %s9120_s14 }
 0x3e4   : > { %3466 = vrot.lane.b32.xlu1 %v3372_v22, %s9119_s13  ;;  %3520 = vrot.lane.b32.xlu0 %v3373_v24, %s9121_s15 }
 0x3e8   : > { %3496 = vrot.lane.b32.xlu1 %v3374_v23, %s9120_s14  ;;  %3492 = vrot.lane.b32.xlu0 %v3372_v22, %s9120_s14 }
 0x3ec   : > { %3522 = vrot.lane.b32.xlu1 %v3374_v23, %s9121_s15  ;;  %3546 = vrot.lane.b32.xlu0 %v3373_v24, %s9122_s16 }
 0x3f0   : > { %3518 = vrot.lane.b32.xlu1 %v3372_v22, %s9121_s15  ;;  %3572 = vrot.lane.b32.xlu0 %v3373_v24, %s9123_s17 }
 0x3f4   : > { %3548 = vrot.lane.b32.xlu1 %v3374_v23, %s9122_s16  ;;  %3544 = vrot.lane.b32.xlu0 %v3372_v22, %s9122_s16 }
 0x3f8   : > { %3574 = vrot.lane.b32.xlu1 %v3374_v23, %s9123_s17  ;;  %3598 = vrot.lane.b32.xlu0 %v3373_v24, %s9124_s18 }
 0x3fc   : > { %3570 = vrot.lane.b32.xlu1 %v3372_v22, %s9123_s17  ;;  %3596 = vrot.lane.b32.xlu0 %v3372_v22, %s9124_s18  ;;  %v10912_v22 = vsub.f32 %v3663_v25, %v10887_v43 }
 0x3fe   : > { %12905 = vst [vmem:[#allocation17_spill] sm:$0xff] %v10912_v22 }
 0x400   : > { %3600 = vrot.lane.b32.xlu1 %v3374_v23, %s9124_s18  ;;  %3420 = vrot.lane.b32.xlu0 %v3409_v5, %s9116_s23  ;;  %v12599_v23 = vand.u32 4294901760, %v10899_v19  ;;  %s8958_s23 = smul.u32 384, %s9187_s28  ;;  %s6666_s28 = scalar_lea.sflag [#allocation5], %s283_s21 }
 0x404   : > { %3394 = vrot.lane.b32.xlu1 %v3409_v5, %s9117_s29  ;;  %3472 = vrot.lane.b32.xlu0 %v3409_v5, %s9119_s13  ;;  %s285_s29 = scalar_lea.vmem [#allocation7], %s8956_s22 }
 0x408   : > { %3446 = vrot.lane.b32.xlu1 %v3409_v5, %s9118_s9  ;;  %3524 = vrot.lane.b32.xlu0 %v3409_v5, %s9121_s15  ;;  %s6680_s9 = sshll.u32 %s285_s29, 4  ;;  %s12430_s15 = scalar_lea.hbm %s12481_s7, %s8958_s23  ;;  %s12432_s9 = int_to_ptr.vmem [resolvable:$true] %s6680_s9 }
 0x40c   : > { %3498 = vrot.lane.b32.xlu1 %v3409_v5, %s9120_s14  ;;  %3576 = vrot.lane.b32.xlu0 %v3409_v5, %s9123_s17  ;;  %s9125_s17 = smov [#allocation7]  }
 0x410   : > { %3550 = vrot.lane.b32.xlu1 %v3409_v5, %s9122_s16  ;;  %s9043_s16 = scalar_lea.vmem %s12432_s9, 384 }
 0x411   : > { %p9044_p9 = scmp.ne.s32.totalorder %s12432_s9, %s9043_s16 }
 0x413   : > { %p9045_p10 = pnand %p9044_p9, %p9204_p5 }
 0x414   : > { %3602 = vrot.lane.b32.xlu1 %v3409_v5, %s9124_s18  ;;  %v12596_v5 = vand.u32 4294901760, %v10905_v3  ;;  %s9047_s18 = sshll.u32 %s9125_s17, 4  ;;  %s9048_s18 = int_to_ptr.vmem [resolvable:$false] %s9047_s18 }
 0x415   : > { %p9046_p12 = pneg %p9045_p10  ;;  %s9049_s8 = scalar_lea.vmem %s9048_s18, 768 }
 0x416   : > { %v10958_v62 = vsub.f32 %v10905_v3, %v12596_v5  ;;  %p9050_p13 = scmp.lt.s32.totalorder %s12432_s9, %s9048_s18  ;;  %p9051_p0 = scmp.lt.s32.totalorder %s9049_s8, %s9043_s16 }
 0x418   : > { %p9052_p1 = por %p9051_p0, %p9050_p13 }
 0x41a   : > { %p9053_p2 = pnand %p9052_p1, %p9046_p12 }
 0x43e   : > { %v3417_v40 = vpop.permute.xlu0 %3416  ;;  %v3391_v39 = vpop.permute.xlu1 %3390 }
 0x442   : > { %v10836_v55 = vpop.permute.xlu1 %3392  ;;  %v3389_v1 = vpop.permute.xlu0 %3388 }
 0x443   : > { %v3398_v56 = vsel %vm3396_vm7, %v3391_v39, %v10836_v55  ;;  %v3397_v17 = vsel %vm3396_vm7, %v3389_v1, %v3391_v39  ;;  %v10931_v1 = vand.u32 4294901760, %v10912_v22 }
 0x444   : > { %v3668_v42 = vand.u32 4294901760, %v3398_v56  ;;  %v3670_v6 = vand.u32 4294901760, %v3397_v17 }
 0x445   : > { %12907 = vst [vmem:[#allocation19_spill] sm:$0xff] %v10931_v1 }
 0x446   : > { %v10841_v57 = vpop.permute.xlu1 %3418  ;;  %v3443_v51 = vpop.permute.xlu0 %3442  ;;  %v10845_v45 = vsub.f32 %v3398_v56, %v3668_v42  ;;  %v10858_v52 = vsub.f32 %v3397_v17, %v3670_v6 }
 0x447   : > { %v3424_v26 = vsel %vm3422_vm8, %v3417_v40, %v10841_v57 }
 0x448   : > { %v3672_v0 = vand.u32 4294901760, %v3424_v26  ;;  %v3777_v33 = vand.u32 4294901760, %v10845_v45  ;;  %v3783_v28 = vand.u32 4294901760, %v10858_v52 }
 0x44a   : > { %v3415_v16 = vpop.permute.xlu1 %3414  ;;  %v3469_v60 = vpop.permute.xlu0 %3468  ;;  %v10847_v9 = vpack.c.bf16 %v3672_v0, %v3668_v42  ;;  %v10849_v50 = vsub.f32 %v3424_v26, %v3672_v0  ;;  %v10946_v26 = vsub.f32 %v3666_v27, %v10916_v2 }
 0x44b   : > { %v3423_v11 = vsel %vm3422_vm8, %v3415_v16, %v3417_v40 }
 0x44c   : > { %12900 = vst [vmem:[#allocation12_spill] sm:$0xff] %v10847_v9  ;;  %8251 = vmatprep.subr.bf16.mxu1 %v10847_v9  ;;  %v3674_v38 = vand.u32 4294901760, %v3423_v11  ;;  %v3789_v20 = vand.u32 4294901760, %v10849_v50  ;;  %12909 = vst [vmem:[#allocation23_spill] sm:$0xff] %v10946_v26 }
 0x44e   : > { %v10860_v61 = vpop.permute.xlu1 %3444  ;;  %v3441_v7 = vpop.permute.xlu0 %3440  ;;  %v10862_v21 = vpack.c.bf16 %v3674_v38, %v3670_v6  ;;  %v10864_v49 = vsub.f32 %v3423_v11, %v3674_v38  ;;  %v10872_v63 = vpack.c.bf16 %v3789_v20, %v3777_v33  ;;  %v3756_v38 = vsub.f32 %v10912_v22, %v10931_v1 }
 0x44f   : > { %v3450_v15 = vsel %vm3448_vm9, %v3443_v51, %v10860_v61  ;;  %v3449_v48 = vsel %vm3448_vm9, %v3441_v7, %v3443_v51  ;;  %v10943_v51 = vsub.f32 %v10899_v19, %v12599_v23  ;;  %v3790_v27 = vsub.f32 %v10849_v50, %v3789_v20 }
 0x450   : > { %12901 = vst [vmem:[#allocation13_spill] sm:$0xff] %v10862_v21  ;;  %12902 = vst [vmem:[#allocation14_spill] sm:$0xff] %v10872_v63  ;;  %8253 = vmatpush1.bf16.msra.mxu1 %v10862_v21  ;;  %v3676_v36 = vand.u32 4294901760, %v3450_v15  ;;  %v3795_v29 = vand.u32 4294901760, %v10864_v49  ;;  %v3678_v34 = vand.u32 4294901760, %v3449_v48 }
 0x452   : > { %v10885_v58 = vpop.permute.xlu1 %3470  ;;  %v3495_v31 = vpop.permute.xlu0 %3494  ;;  %v10895_v54 = vpack.c.bf16 %v3795_v29, %v3783_v28  ;;  %v10897_v4 = vsub.f32 %v3450_v15, %v3676_v36  ;;  %v10921_v10 = vsub.f32 %v3449_v48, %v3678_v34  ;;  %v12598_v15 = vand.u32 4294901760, %v10943_v51 }
 0x453   : > { %v3476_v37 = vsel %vm3474_vm11, %v3469_v60, %v10885_v58  ;;  %v10964_v48 = vand.u32 4294901760, %v10946_v26 }
 0x454   : > { %12903 = vst [vmem:[#allocation15_spill] sm:$0xff] %v10895_v54  ;;  %v3680_v8 = vand.u32 4294901760, %v3476_v37  ;;  %v3801_v44 = vand.u32 4294901760, %v10897_v4  ;;  %v3807_v16 = vand.u32 4294901760, %v10921_v10 }
 0x455   : > { %12910 = vst [vmem:[#allocation38_spill] sm:$0xff] %v10964_v48  ;;  %v3767_v20 = vsub.f32 %v10946_v26, %v10964_v48 }
 0x456   : > { %v3467_v18 = vpop.permute.xlu1 %3466  ;;  %v3521_v14 = vpop.permute.xlu0 %3520  ;;  %v10907_v53 = vpack.c.bf16 %v3680_v8, %v3676_v36  ;;  %v10909_v12 = vsub.f32 %v3476_v37, %v3680_v8  ;;  %v3778_v8 = vsub.f32 %v10845_v45, %v3777_v33  ;;  %v10991_v33 = vsub.f32 %v10943_v51, %v12598_v15 }
 0x457   : > { %v3475_v24 = vsel %vm3474_vm11, %v3467_v18, %v3469_v60  ;;  %v3796_v15 = vsub.f32 %v10864_v49, %v3795_v29  ;;  %v11028_v1 = vand.u32 4294901760, %v3767_v20 }
 0x458   : > { %12904 = vst [vmem:[#allocation16_spill] sm:$0xff] %v10907_v53  ;;  %8255 = vmatprep.subr.bf16.mxu1 %v10907_v53  ;;  %v3682_v41 = vand.u32 4294901760, %v3475_v24  ;;  %v12600_v59 = vand.u32 4294901760, %v10909_v12 }
 0x459   : > { %12919 = vst [vmem:[#allocation11_spill] sm:$0xff] %v11028_v1 }
 0x45a   : > { %v10924_v13 = vpop.permute.xlu1 %3496  ;;  %v3493_v30 = vpop.permute.xlu0 %3492  ;;  %v10926_v40 = vpack.c.bf16 %v3682_v41, %v3678_v34  ;;  %v10928_v39 = vsub.f32 %v3475_v24, %v3682_v41  ;;  %v10935_v56 = vpack.c.bf16 %v12600_v59, %v3801_v44 }
 0x45b   : > { %v3502_v17 = vsel %vm3500_vm12, %v3495_v31, %v10924_v13  ;;  %v3501_v42 = vsel %vm3500_vm12, %v3493_v30, %v3495_v31  ;;  %v10970_v31 = vld [vmem:[#allocation3 + $0xe8] sm:$0xff]  ;;  %v10984_v30 = vand.u32 4294901760, %v3756_v38  ;;  %v3784_v38 = vsub.f32 %v10858_v52, %v3783_v28 }
 0x45c   : > { %12906 = vst [vmem:[#allocation18_spill] sm:$0xff] %v10926_v40  ;;  %12908 = vst [vmem:[#allocation22_spill] sm:$0xff] %v10935_v56  ;;  %8257 = vmatpush1.bf16.msra.mxu1 %v10926_v40  ;;  %v3684_v0 = vand.u32 4294901760, %v3502_v17  ;;  %v3819_v6 = vand.u32 4294901760, %v10928_v39  ;;  %v3686_v37 = vand.u32 4294901760, %v3501_v42  ;;  %v3802_v28 = vsub.f32 %v10897_v4, %v3801_v44 }
 0x45d   : > { %12912 = vst [vmem:[#allocation24_spill] sm:$0xff] %v10970_v31  ;;  %12914 = vst [vmem:[#allocation10_spill] sm:$0xff] %v10984_v30 }
 0x45e   : > { %v10951_v60 = vpop.permute.xlu1 %3522  ;;  %v3547_v11 = vpop.permute.xlu0 %3546  ;;  %v10966_v25 = vpack.c.bf16 %v3819_v6, %v3807_v16  ;;  %v10968_v35 = vsub.f32 %v3502_v17, %v3684_v0  ;;  %v3791_v17 = vand.u32 4294901760, %v3790_v27  ;;  %v12918_v27 = vand.u32 4294901760, %v10909_v12 }
 0x45f   : > { %v3528_v7 = vsel %vm3526_vm13, %v3521_v14, %v10951_v60  ;;  %v3820_v56 = vsub.f32 %v10928_v39, %v3819_v6 }
 0x460   : > { %12911 = vst [vmem:[#allocation39_spill] sm:$0xff] %v10966_v25  ;;  %v3688_v36 = vand.u32 4294901760, %v3528_v7  ;;  %v3814_v29 = vsub.f32 %v10909_v12, %v12918_v27 }
 0x461   : > { %v3821_v40 = vand.u32 4294901760, %v3820_v56 }
 0x462   : > { %v3519_v34 = vpop.permute.xlu1 %3518  ;;  %v10978_v18 = vpop.permute.xlu0 %3572  ;;  %v10980_v24 = vpack.c.bf16 %v3688_v36, %v3684_v0  ;;  %v10982_v41 = vsub.f32 %v3528_v7, %v3688_v36  ;;  %v11002_v36 = vsub.f32 %v3501_v42, %v3686_v37  ;;  %v3815_v20 = vand.u32 4294901760, %v3814_v29 }
 0x463   : > { %v3527_v5 = vsel %vm3526_vm13, %v3519_v34, %v3521_v14  ;;  %v3825_v14 = vand.u32 4294901760, %v10968_v35  ;;  %v3779_v34 = vand.u32 4294901760, %v3778_v8 }
 0x464   : > { %12913 = vst [vmem:[#allocation25_spill] sm:$0xff] %v10980_v24  ;;  %8259 = vmatprep.subr.bf16.mxu1 %v10980_v24  ;;  %v3690_v0 = vand.u32 4294901760, %v3527_v5  ;;  %v3837_v7 = vand.u32 4294901760, %v10982_v41  ;;  %v3797_v24 = vand.u32 4294901760, %v3796_v15 }
 0x466   : > { %v11007_v23 = vpop.permute.xlu1 %3548  ;;  %v3545_v32 = vpop.permute.xlu0 %3544  ;;  %v11009_v59 = vpack.c.bf16 %v3690_v0, %v3686_v37  ;;  %v11011_v25 = vsub.f32 %v3527_v5, %v3690_v0  ;;  %v11014_v48 = vpack.c.bf16 %v3837_v7, %v3825_v14  ;;  %v3808_v0 = vsub.f32 %v10921_v10, %v3807_v16 }
 0x467   : > { %v3554_v42 = vsel %vm3552_vm14, %v3547_v11, %v11007_v23  ;;  %v3553_v8 = vsel %vm3552_vm14, %v3545_v32, %v3547_v11  ;;  %v12920_v32 = vand.u32 4294901760, %v10970_v31  ;;  %v3785_v16 = vand.u32 4294901760, %v3784_v38 }
 0x468   : > { %12915 = vst [vmem:[#allocation42_spill] sm:$0xff] %v11009_v59  ;;  %12916 = vst [vmem:[#allocation26_spill] sm:$0xff] %v11011_v25  ;;  %8261 = vmatpush1.bf16.msra.mxu1 %v11009_v59  ;;  %v3692_v37 = vand.u32 4294901760, %v3554_v42  ;;  %v3694_v5 = vand.u32 4294901760, %v3553_v8  ;;  %v3843_v44 = vand.u32 4294901760, %v11011_v25  ;;  %v11039_v59 = vpack.c.bf16 %v3791_v17, %v3779_v34 }
 0x469   : > { %12917 = vst [vmem:[#allocation27_spill] sm:$0xff] %v11014_v48  ;;  %v3831_v48 = vand.u32 4294901760, %v11002_v36  ;;  %v11033_v11 = vsub.f32 %v10970_v31, %v12920_v32  ;;  %v3803_v31 = vand.u32 4294901760, %v3802_v28  ;;  %v3809_v21 = vand.u32 4294901760, %v3808_v0 }
 0x46a   : > { %v11035_v6 = vpop.permute.xlu1 %3574  ;;  %v3599_v27 = vpop.permute.xlu0 %3598  ;;  %v11037_v63 = vsub.f32 %v3554_v42, %v3692_v37  ;;  %v11046_v32 = vsub.f32 %v3553_v8, %v3694_v5  ;;  %v3826_v42 = vsub.f32 %v10968_v35, %v3825_v14  ;;  %v3838_v17 = vsub.f32 %v10982_v41, %v3837_v7 }
 0x46b   : > { %v3580_v54 = vsel %vm3578_vm15, %v10978_v18, %v11035_v6  ;;  %v11044_v26 = vpack.c.bf16 %v3843_v44, %v3831_v48  ;;  %v3832_v38 = vsub.f32 %v11002_v36, %v3831_v48  ;;  %v3844_v15 = vsub.f32 %v11011_v25, %v3843_v44 }
 0x46c   : > { %v3696_v53 = vand.u32 4294901760, %v3580_v54  ;;  %12922 = vst [vmem:[#allocation29_spill] sm:$0xff] %v11046_v32  ;;  %v11056_v29 = vpack.c.bf16 %v3797_v24, %v3785_v16  ;;  %v3849_v8 = vand.u32 4294901760, %v11037_v63  ;;  %v11062_v7 = vpack.c.bf16 %v3815_v20, %v3803_v31 }
 0x46d   : > { %12921 = vst [vmem:[#allocation28_spill] sm:$0xff] %v11044_v26  ;;  %v11064_v48 = vpack.c.bf16 %v3821_v40, %v3809_v21  ;;  %v3827_v24 = vand.u32 4294901760, %v3826_v42  ;;  %v3839_v44 = vand.u32 4294901760, %v3838_v17  ;;  %v3833_v16 = vand.u32 4294901760, %v3832_v38 }
 0x46e   : > { %v3571_v34 = vpop.permute.xlu1 %3570  ;;  %v3597_v22 = vpop.permute.xlu0 %3596  ;;  %v11052_v9 = vpack.c.bf16 %v3696_v53, %v3692_v37  ;;  %v11054_v56 = vsub.f32 %v3580_v54, %v3696_v53  ;;  %v3855_v53 = vand.u32 4294901760, %v11046_v32  ;;  %v3845_v26 = vand.u32 4294901760, %v3844_v15 }
 0x46f   : > { %v3579_v28 = vsel %vm3578_vm15, %v3571_v34, %v10978_v18  ;;  %v3605_v14 = vsel %vm3604_vm0, %v3597_v22, %v3599_v27  ;;  %v3850_v40 = vsub.f32 %v11037_v63, %v3849_v8 }
 0x470   : > { %12923 = vst [vmem:[#allocation30_spill] sm:$0xff] %v11052_v9  ;;  %8263 = vmatprep.subr.bf16.mxu1 %v11052_v9  ;;  %v3698_v0 = vand.u32 4294901760, %v3579_v28  ;;  %v3702_v37 = vand.u32 4294901760, %v3605_v14  ;;  %v3861_v54 = vand.u32 4294901760, %v11054_v56  ;;  %v3856_v15 = vsub.f32 %v11046_v32, %v3855_v53 }
 0x472   : > { %v11069_v25 = vpop.permute.xlu1 %3600  ;;  %v3421_v18 = vpop.permute.xlu0 %3420  ;;  %v11071_v22 = vpack.c.bf16 %v3698_v0, %v3694_v5  ;;  %v11073_v31 = vsub.f32 %v3579_v28, %v3698_v0  ;;  %v11075_v21 = vsub.f32 %v3605_v14, %v3702_v37  ;;  %v3862_v17 = vsub.f32 %v11054_v56, %v3861_v54 }
 0x473   : > { %v3606_v20 = vsel %vm3604_vm0, %v3599_v27, %v11069_v25  ;;  %v3425_v42 = vsel %vm3422_vm8, %v10841_v57, %v3421_v18  ;;  %v11083_v38 = vpack.c.bf16 %v3861_v54, %v3849_v8  ;;  %v11089_v14 = vpack.c.bf16 %v3839_v44, %v3827_v24 }
 0x474   : > { %12924 = vst [vmem:[#allocation31_spill] sm:$0xff] %v11071_v22  ;;  %8265 = vmatpush1.bf16.msra.mxu1 %v11071_v22  ;;  %v3700_v5 = vand.u32 4294901760, %v3606_v20  ;;  %v3867_v34 = vand.u32 4294901760, %v11073_v31  ;;  %v3879_v28 = vand.u32 4294901760, %v11075_v21  ;;  %v11091_v0 = vpack.c.bf16 %v3845_v26, %v3833_v16 }
 0x475   : > { %12925 = vst [vmem:[#allocation32_spill] sm:$0xff] %v11083_v38  ;;  %v3863_v27 = vand.u32 4294901760, %v3862_v17  ;;  %v4420_v9 = vand.u32 4294901760, %v3425_v42  ;;  %v12926_v8 = vand.u32 4294901760, %v10899_v19  ;;  %v12927_v44 = vand.u32 4294901760, %v10866_v46 }
 0x476   : > { %v3395_v57 = vpop.permute.xlu1 %3394  ;;  %v3473_v18 = vpop.permute.xlu0 %3472  ;;  %v11097_v38 = vsub.f32 %v3606_v20, %v3700_v5  ;;  %v3868_v22 = vsub.f32 %v11073_v31, %v3867_v34  ;;  %v11101_v32 = vsub.f32 %v11075_v21, %v3879_v28  ;;  %v11111_v19 = vpack.c.bf16 %v3867_v34, %v3855_v53 }
 0x477   : > { %v11095_v54 = vpack.c.bf16 %v12926_v8, %v3700_v5  ;;  %v3399_v24 = vsel %vm3396_vm7, %v10836_v55, %v3395_v57  ;;  %v3477_v26 = vsel %vm3474_vm11, %v10885_v58, %v3473_v18  ;;  %v11109_v16 = vpack.c.bf16 %v12927_v44, %v3702_v37 }
 0x478   : > { %v3851_v20 = vand.u32 4294901760, %v3850_v40  ;;  %v3857_v17 = vand.u32 4294901760, %v3856_v15  ;;  %v3869_v5 = vand.u32 4294901760, %v3868_v22  ;;  %v3873_v8 = vand.u32 4294901760, %v11097_v38 }
 0x479   : > { %8267 = vmatprep.subr.bf16.mxu1 %v11095_v54  ;;  %v12928_v55 = vand.u32 4294901760, %v10905_v3  ;;  %v4417_v58 = vand.u32 4294901760, %v3399_v24  ;;  %v4426_v18 = vand.u32 4294901760, %v3477_v26  ;;  %v11120_v46 = vsub.f32 %v3425_v42, %v4420_v9 }
 0x47a   : > { %8269 = vmatpush1.bf16.msra.mxu1 %v11109_v16  ;;  %v3447_v37 = vpop.permute.xlu1 %3446  ;;  %v3525_v53 = vpop.permute.xlu0 %3524  ;;  %v8282_v34 = vpack.c.bf16 %v3863_v27, %v3851_v20  ;;  %v3874_v40 = vsub.f32 %v11097_v38, %v3873_v8  ;;  %v12930_v15 = vand.u32 4294901760, %v10943_v51 }
 0x47b   : > { %v11118_v57 = vpack.c.bf16 %v12928_v55, %v3879_v28  ;;  %8271 = vmatprep.subr.bf16.mxu1 %v11039_v59  ;;  %v3451_v28 = vsel %vm3448_vm9, %v10860_v61, %v3447_v37  ;;  %v3529_v42 = vsel %vm3526_vm13, %v10951_v60, %v3525_v53  ;;  %v11133_v55 = vpack.c.bf16 %v4420_v9, %v4417_v58 }
 0x47c   : > { %v11127_v44 = vpack.c.bf16 %v12930_v15, %v3873_v8  ;;  %v11136_v59 = vpack.c.bf16 %v3869_v5, %v3857_v17  ;;  %v3875_v27 = vand.u32 4294901760, %v3874_v40  ;;  %v4423_v20 = vand.u32 4294901760, %v3451_v28 }
 0x47d   : > { %12929 = vst [vmem:[#allocation33_spill] sm:$0xff] %v11118_v57  ;;  %12931 = vst [vmem:[#allocation34_spill] sm:$0xff] %v11133_v55  ;;  %v4513_v57 = vsub.f32 %v3399_v24, %v4417_v58  ;;  %3758 = vmatmul.mubr.f32.vlgmr.msra.gmra.mrb[24].mxu1 %v10984_v30  ;;  %v4521_v22 = vand.u32 4294901760, %v11120_v46  ;;  %v4432_v8 = vand.u32 4294901760, %v3529_v42  ;;  %v4534_v37 = vsub.f32 %v3477_v26, %v4426_v18 }
 0x47e   : > { %8273 = vmatpush1.bf16.msra.mxu1 %v11056_v29  ;;  %3763 = vmatprep.mubr.f32.mxu1 %v12874_v47  ;;  %v3499_v9 = vpop.permute.xlu1 %3498  ;;  %v3577_v24 = vpop.permute.xlu0 %3576  ;;  %v12933_v17 = vand.u32 4294901760, %v10991_v33  ;;  %v11147_v58 = vpack.c.bf16 %v4426_v18, %v4423_v20  ;;  %v4527_v29 = vsub.f32 %v3451_v28, %v4423_v20 }
 0x47f   : > { %v4514_v61 = vand.u32 4294901760, %v4513_v57  ;;  %v11142_v60 = vpack.c.bf16 %v11120_v46, %v4513_v57  ;;  %8275 = vmatprep.subr.bf16.mxu1 %v11062_v7  ;;  %v4522_v53 = vsub.f32 %v11120_v46, %v4521_v22  ;;  %v3503_v40 = vsel %vm3500_vm12, %v10924_v13, %v3499_v9 }
 0x480   : > { %v8286_v5 = vpack.c.bf16 %v12933_v17, %v3875_v27  ;;  %v3581_v26 = vsel %vm3578_vm15, %v11035_v6, %v3577_v24  ;;  %v4429_v30 = vand.u32 4294901760, %v3503_v40  ;;  %v4528_v33 = vand.u32 4294901760, %v4527_v29 }
 0x481   : > { %12932 = vst [vmem:[#allocation35_spill] sm:$0xff] %v11142_v60  ;;  %v4515_v15 = vsub.f32 %v4513_v57, %v4514_v61  ;;  %v4535_v60 = vand.u32 4294901760, %v4534_v37  ;;  %3769 = vmatmul.mubr.f32.gmra.mrb[26].mxu1 %v11028_v1  ;;  %v4438_v7 = vand.u32 4294901760, %v3581_v26  ;;  %v4523_v55 = vand.u32 4294901760, %v4522_v53 }
 0x482   : > { %8277 = vmatpush1.bf16.msra.mxu1 %v11064_v48  ;;  %3939 = vmatprep.mubr.f32.mxu1 %v12874_v47  ;;  %v4548_v28 = vsub.f32 %v3529_v42, %v4432_v8  ;;  %v11157_v27 = vpack.c.bf16 %v4534_v37, %v4527_v29  ;;  %v3551_v13 = vpop.permute.xlu1 %3550  ;;  %v11160_v6 = vpack.c.bf16 %v4432_v8, %v4429_v30 }
 0x483   : > { %v4516_v18 = vand.u32 4294901760, %v4515_v15  ;;  %v4536_v46 = vsub.f32 %v4534_v37, %v4535_v60  ;;  %8279 = vmatprep.subr.bf16.mxu1 %v11089_v14  ;;  %v4529_v57 = vsub.f32 %v4527_v29, %v4528_v33  ;;  %v4541_v20 = vsub.f32 %v3503_v40, %v4429_v30 }
 0x484   : > { %12934 = vst [vmem:[#allocation36_spill] sm:$0xff] %v11157_v27  ;;  %v4562_v9 = vsub.f32 %v3581_v26, %v4438_v7  ;;  %v3555_v24 = vsel %vm3552_vm14, %v11007_v23, %v3551_v13  ;;  %v4549_v53 = vand.u32 4294901760, %v4548_v28  ;;  %v11169_v8 = vpack.c.bf16 %v4521_v22, %v4514_v61 }
 0x485   : > { %v11164_v17 = vpack.c.bf16 %v4523_v55, %v4516_v18  ;;  %v4537_v48 = vand.u32 4294901760, %v4536_v46  ;;  %v4435_v15 = vand.u32 4294901760, %v3555_v24  ;;  %v4530_v1 = vand.u32 4294901760, %v4529_v57 }
 0x486   : > { %v4542_v42 = vand.u32 4294901760, %v4541_v20  ;;  %v4563_v37 = vand.u32 4294901760, %v4562_v9  ;;  %8281 = vmatpush1.bf16.msra.mxu1 %v11091_v0  ;;  %v4550_v27 = vsub.f32 %v4548_v28, %v4549_v53  ;;  %v11167_v14 = vpack.c.bf16 %v4548_v28, %v4541_v20  ;;  %v3603_v29 = vpop.permute.xlu1 %3602 }
 0x487   : > { %v11171_v30 = vpack.c.bf16 %v4535_v60, %v4528_v33  ;;  %8283 = vmatprep.subr.bf16.mxu1 %v8282_v34  ;;  %v11173_v23 = vpack.c.bf16 %v4438_v7, %v4435_v15  ;;  %v11175_v55 = vpack.c.bf16 %v4537_v48, %v4530_v1  ;;  %v4555_v26 = vsub.f32 %v3555_v24, %v4435_v15  ;;  %v12941_v15 = vld [vmem:[#allocation13_spill] sm:$0xff] }
 0x488   : > { %v4543_v40 = vsub.f32 %v4541_v20, %v4542_v42  ;;  %v11179_v18 = vsel %vm3604_vm0, %v11069_v25, %v3603_v29  ;;  %v4551_v0 = vand.u32 4294901760, %v4550_v27  ;;  %v4564_v46 = vsub.f32 %v4562_v9, %v4563_v37  ;;  %v12951_v29 = vld [vmem:[#allocation15_spill] sm:$0xff] }
 0x489   : > { %v11181_v28 = vpack.c.bf16 %v4549_v53, %v4542_v42  ;;  %v12635_v22 = vand.u32 4294901760, %v11179_v18  ;;  %v4556_v60 = vand.u32 4294901760, %v4555_v26  ;;  %v11184_v33 = vpack.c.bf16 %v4562_v9, %v4555_v26  ;;  %v12949_v42 = vld [vmem:[#allocation14_spill] sm:$0xff] }
 0x48a   : > { %v4544_v61 = vand.u32 4294901760, %v4543_v40  ;;  %8285 = vmatpush1.bf16.msra.mxu1 %v11136_v59  ;;  %v12633_v7 = vand.u32 4294901760, %v11033_v11  ;;  %v12935_v27 = vand.u32 4294901760, %v11101_v32  ;;  %v12936_v13 = vand.u32 4294901760, %v10958_v62  ;;  %v12952_v40 = vld [vmem:[#allocation22_spill] sm:$0xff] }
 0x48b   : > { %8287 = vmatprep.subr.bf16.mxu1 %v8286_v5  ;;  %v4557_v34 = vsub.f32 %v4555_v26, %v4556_v60  ;;  %v11192_v25 = vsub.f32 %v11179_v18, %v12635_v22  ;;  %v11199_v20 = vpack.c.bf16 %v4563_v37, %v4556_v60  ;;  %v8290_v59 = vpack.c.bf16 %v10849_v50, %v10845_v45  ;;  %v12950_v37 = vld [vmem:[#allocation19_spill] sm:$0xff]  ;;  %v12953_v26 = vld [vmem:[#allocation38_spill] sm:$0xff]  ;;  %v12957_v60 = vld [vmem:[#allocation32_spill] sm:$0xff] }
 0x48c   : > { %v11187_v1 = vpack.c.bf16 %v4551_v0, %v4544_v61  ;;  %v8288_v57 = vpack.c.bf16 %v12936_v13, %v12935_v27  ;;  %v4565_v9 = vand.u32 4294901760, %v4564_v46  ;;  %v8292_v62 = vpack.c.bf16 %v10864_v49, %v10858_v52  ;;  %v12937_v52 = vld [vmem:[#allocation26_spill] sm:$0xff]  ;;  %v12954_v0 = vld [vmem:[#allocation39_spill] sm:$0xff]  ;;  %v12956_v61 = vld [vmem:[#allocation28_spill] sm:$0xff] }
 0x48d   : > { %v4558_v5 = vand.u32 4294901760, %v4557_v34  ;;  %v12634_v24 = vand.u32 4294901760, %v11192_v25  ;;  %v8294_v45 = vpack.c.bf16 %v10909_v12, %v10897_v4  ;;  %v8296_v50 = vpack.c.bf16 %v10928_v39, %v10921_v10  ;;  %v12938_v12 = vld [vmem:[#allocation29_spill] sm:$0xff]  ;;  %v12955_v46 = vld [vmem:[#allocation27_spill] sm:$0xff]  ;;  %v381_v27 = vld [vmem:[%s12479_s5] sm:$0xff] }
 0x48e   : > { %8289 = vmatpush1.bf16.msra.mxu1 %v8288_v57  ;;  %v8298_v53 = vpack.c.bf16 %v10982_v41, %v10968_v35  ;;  %v8300_v49 = vpack.c.bf16 %v12937_v52, %v11002_v36  ;;  %v8302_v4 = vpack.c.bf16 %v11054_v56, %v11037_v63  ;;  %v8304_v10 = vpack.c.bf16 %v11073_v31, %v12938_v12  ;;  %v12939_v41 = vld [vmem:[#allocation12_spill] sm:$0xff]  ;;  %v12940_v36 = vld [vmem:[#allocation17_spill] sm:$0xff]  ;;  %v12943_v56 = vld [vmem:[#allocation23_spill] sm:$0xff] }
 0x48f   : > { %8291 = vmatprep.subr.bf16.mxu1 %v8290_v59  ;;  %v11204_v48 = vpack.c.bf16 %v4565_v9, %v4558_v5  ;;  %v11210_v32 = vpack.c.bf16 %v12633_v7, %v12634_v24  ;;  %v8306_v39 = vpack.c.bf16 %v10943_v51, %v11097_v38  ;;  %v8308_v35 = vpack.c.bf16 %v10905_v3, %v11075_v21  ;;  %v12942_v63 = vld [vmem:[#allocation16_spill] sm:$0xff]  ;;  %v12944_v31 = vld [vmem:[#allocation18_spill] sm:$0xff]  ;;  %v12945_v51 = vld [vmem:[#allocation25_spill] sm:$0xff] }
 0x490   : > { %v12946_v3 = vld [vmem:[#allocation42_spill] sm:$0xff]  ;;  %v12948_v38 = vld [vmem:[#allocation31_spill] sm:$0xff]  ;;  %v12958_v34 = vld [vmem:[#allocation33_spill] sm:$0xff]  ;;  %v5026_v5 = vand.u32 4294901760, %v381_v27 }
 0x491   : > { %3941 = vmatmul.mubr.f32.vlgmr.msra.gmra.mrb[24].mxu1 %v10887_v43  ;;  %v12947_v21 = vld [vmem:[#allocation30_spill] sm:$0xff]  ;;  %v382_v59 = vld [vmem:[%s12479_s5 + $0x8] sm:$0xff]  ;;  %v399_v9 = vld [vmem:[%s12479_s5 + $0x90] sm:$0xff] }
 0x492   : > { %8293 = vmatpush1.bf16.msra.mxu1 %v8292_v62  ;;  %3946 = vmatprep.mubr.f32.mxu1 %v12874_v47  ;;  %v400_v62 = vld [vmem:[%s12479_s5 + $0x98] sm:$0xff]  ;;  %v383_v52 = vld [vmem:[%s12479_s5 + $0x10] sm:$0xff] }
 0x493   : > { %8295 = vmatprep.subr.bf16.mxu1 %v8294_v45  ;;  %v5029_v45 = vand.u32 4294901760, %v382_v59 }
 0x495   : > { %3948 = vmatmul.mubr.f32.gmra.mrb[26].mxu1 %v10916_v2 }
 0x496   : > { %8297 = vmatpush1.bf16.msra.mxu1 %v8296_v50  ;;  %4058 = vmatprep.mubr.f32.mxu1 %v12874_v47  ;;  %v5080_v50 = vand.u32 4294901760, %v399_v9 }
 0x497   : > { %8299 = vmatprep.subr.bf16.mxu1 %v8298_v53  ;;  %v5083_v53 = vand.u32 4294901760, %v400_v62 }
 0x49a   : > { %8301 = vmatpush1.bf16.msra.mxu1 %v8300_v49  ;;  %v384_v49 = vld [vmem:[%s12479_s5 + $0x18] sm:$0xff] }
 0x49b   : > { %8303 = vmatprep.subr.bf16.mxu1 %v8302_v4 }
 0x49e   : > { %8305 = vmatpush1.bf16.msra.mxu1 %v8304_v10  ;;  %v11303_v10 = vsub.f32 %v381_v27, %v5026_v5 }
 0x49f   : > { %8307 = vmatprep.subr.bf16.mxu1 %v8306_v39  ;;  %v5032_v39 = vand.u32 4294901760, %v383_v52 }
 0x4a2   : > { %8309 = vmatpush1.bf16.msra.mxu1 %v8308_v35  ;;  %v11308_v35 = vsub.f32 %v382_v59, %v5029_v45  ;;  %v388_v59 = vld [vmem:[%s12479_s5 + $0x38] sm:$0xff] }
 0x4a3   : > { %8311 = vmatprep.subr.bf16.mxu1 %v12939_v41 }
 0x4a5   : > { %4061 = vmatmul.mubr.f32.vlgmr.msra.gmra.mrb[24].mxu1 %v12940_v36 }
 0x4a6   : > { %8313 = vmatpush1.bf16.msra.mxu1 %v12941_v15  ;;  %4066 = vmatprep.mubr.f32.mxu1 %v12874_v47 }
 0x4a7   : > { %8315 = vmatprep.subr.bf16.mxu1 %v12942_v63 }
 0x4a9   : > { %4069 = vmatmul.mubr.f32.gmra.mrb[26].mxu1 %v12943_v56 }
 0x4aa   : > { %8317 = vmatpush1.bf16.msra.mxu1 %v12944_v31  ;;  %4159 = vmatprep.mubr.f32.mxu1 %v12874_v47 }
 0x4ab   : > { %8319 = vmatprep.subr.bf16.mxu1 %v12945_v51 }
 0x4ae   : > { %8321 = vmatpush1.bf16.msra.mxu1 %v12946_v3 }
 0x4af   : > { %8323 = vmatprep.subr.bf16.mxu1 %v12947_v21 }
 0x4b2   : > { %8325 = vmatpush1.bf16.msra.mxu1 %v12948_v38 }
 0x4b3   : > { %8327 = vmatprep.subr.bf16.mxu1 %v11095_v54 }
 0x4b6   : > { %8329 = vmatpush1.bf16.msra.mxu1 %v11109_v16 }
 0x4b7   : > { %8331 = vmatprep.subr.bf16.mxu1 %v12949_v42 }
 0x4b9   : > { %4163 = vmatmul.mubr.f32.vlgmr.msra.gmra.mrb[24].mxu1 %v12950_v37 }
 0x4ba   : > { %8333 = vmatpush1.bf16.msra.mxu1 %v12951_v29  ;;  %4168 = vmatprep.mubr.f32.mxu1 %v12874_v47  ;;  %v11330_v29 = vpack.c.bf16 %v5029_v45, %v5026_v5 }
 0x4bb   : > { %8335 = vmatprep.subr.bf16.mxu1 %v12952_v40  ;;  %v403_v40 = vld [vmem:[%s12479_s5 + $0xb0] sm:$0xff] }
 0x4bc   : > { %v5092_v45 = vand.u32 4294901760, %v403_v40 }
 0x4bd   : > { %4172 = vmatmul.mubr.f32.gmra.mrb[26].mxu1 %v12953_v26 }
 0x4be   : > { %8337 = vmatpush1.bf16.msra.mxu1 %v12954_v0  ;;  %4302 = vmatprep.mubr.f32.mxu1 %v12874_v47  ;;  %v12960_v0 = vld [vmem:[#allocation34_spill] sm:$0xff] }
 0x4bf   : > { %8339 = vmatprep.subr.bf16.mxu1 %v12955_v46  ;;  %v8556_v46 = vpack.c.bf16 %v11308_v35, %v11303_v10 }
 0x4c2   : > { %8341 = vmatpush1.bf16.msra.mxu1 %v12956_v61 }
 0x4c3   : > { %8343 = vmatprep.subr.bf16.mxu1 %v12957_v60 }
 0x4c6   : > { %8345 = vmatpush1.bf16.msra.mxu1 %v11111_v19  ;;  %v397_v19 = vld [vmem:[%s12479_s5 + $0x80] sm:$0xff] }
 0x4c7   : > { %8347 = vmatprep.subr.bf16.mxu1 %v11127_v44  ;;  %v398_v44 = vld [vmem:[%s12479_s5 + $0x88] sm:$0xff]  ;;  %v5074_v13 = vand.u32 4294901760, %v397_v19 }
 0x4c8   : > { %v5077_v57 = vand.u32 4294901760, %v398_v44 }
 0x4c9   : > { %v11299_v4 = vsub.f32 %v397_v19, %v5074_v13 }
 0x4ca   : > { %8349 = vmatpush1.bf16.msra.mxu1 %v12958_v34  ;;  %v11301_v12 = vsub.f32 %v398_v44, %v5077_v57  ;;  %v11328_v42 = vpack.c.bf16 %v5077_v57, %v5074_v13  ;;  %v404_v34 = vld [vmem:[%s12479_s5 + $0xb8] sm:$0xff]  ;;  %v11345_v13 = vpack.c.bf16 %v5083_v53, %v5080_v50  ;;  %v387_v57 = vld [vmem:[%s12479_s5 + $0x30] sm:$0xff] }
 0x4cb   : > { %8351 = vmatprep.subr.bf16.mxu1 %v12939_v41  ;;  %v11310_v41 = vsub.f32 %v399_v9, %v5080_v50 }
 0x4cd   : > { %4304 = vmatmul.mubr.f32.vlgmr.msra.gmra.mrb[24].mxu1 %v10887_v43 }
 0x4ce   : > { %8353 = vmatpush1.bf16.msra.mxu1 %v12941_v15  ;;  %4309 = vmatprep.mubr.f32.mxu1 %v12874_v47  ;;  %v11312_v15 = vsub.f32 %v400_v62, %v5083_v53 }
 0x4cf   : > { %8355 = vmatprep.subr.bf16.mxu1 %v12942_v63  ;;  %v5035_v63 = vand.u32 4294901760, %v384_v49 }
 0x4d1   : > { %4311 = vmatmul.mubr.f32.gmra.mrb[26].mxu1 %v10916_v2  ;;  %v11340_v61 = vsub.f32 %v384_v49, %v5035_v63  ;;  %v11358_v62 = vpack.c.bf16 %v5035_v63, %v5032_v39  ;;  %v5095_v49 = vand.u32 4294901760, %v404_v34  ;;  %v5047_v63 = vand.u32 4294901760, %v388_v59 }
 0x4d2   : > { %8357 = vmatpush1.bf16.msra.mxu1 %v12944_v31  ;;  %4401 = vmatprep.mubr.f32.mxu1 %v12874_v47  ;;  %v402_v31 = vld [vmem:[%s12479_s5 + $0xa8] sm:$0xff] }
 0x4d3   : > { %8359 = vmatprep.subr.bf16.mxu1 %v12945_v51  ;;  %v385_v51 = vld [vmem:[%s12479_s5 + $0x20] sm:$0xff]  ;;  %12961 = vst [vmem:[#allocation40_spill] sm:$0xff] %v11340_v61  ;;  %v5089_v19 = vand.u32 4294901760, %v402_v31 }
 0x4d4   : > { %v5038_v44 = vand.u32 4294901760, %v385_v51 }
 0x4d5   : > { %v11362_v50 = vsub.f32 %v402_v31, %v5089_v19 }
 0x4d6   : > { %8361 = vmatpush1.bf16.msra.mxu1 %v12946_v3  ;;  %v386_v3 = vld [vmem:[%s12479_s5 + $0x28] sm:$0xff]  ;;  %v11364_v53 = vsub.f32 %v385_v51, %v5038_v44  ;;  %v389_v51 = vld [vmem:[%s12479_s5 + $0x40] sm:$0xff] }
 0x4d7   : > { %8363 = vmatprep.subr.bf16.mxu1 %v12947_v21  ;;  %v8554_v21 = vpack.c.bf16 %v11301_v12, %v11299_v4  ;;  %v5041_v27 = vand.u32 4294901760, %v386_v3  ;;  %12963 = vst [vmem:[#allocation43_spill] sm:$0xff] %v11362_v50 }
 0x4d8   : > { %12964 = vst [vmem:[#allocation44_spill] sm:$0xff] %v11364_v53 }
 0x4d9   : > { %8555 = vmatprep.subr.bf16.mxu0 %v8554_v21  ;;  %v405_v21 = vld [vmem:[%s12479_s5 + $0xc0] sm:$0xff]  ;;  %v11391_v7 = vpack.c.bf16 %v5041_v27, %v5038_v44  ;;  %v11402_v44 = vpack.c.bf16 %v5095_v49, %v5092_v45 }
 0x4da   : > { %8365 = vmatpush1.bf16.msra.mxu1 %v12948_v38  ;;  %v11326_v38 = vsub.f32 %v383_v52, %v5032_v39  ;;  %8557 = vmatpush3.bf16.msra.mxu0 %v8556_v46  ;;  %v11366_v52 = vsub.f32 %v386_v3, %v5041_v27  ;;  %v406_v39 = vld [vmem:[%s12479_s5 + $0xc8] sm:$0xff]  ;;  %v5098_v24 = vand.u32 4294901760, %v405_v21  ;;  %v11407_v27 = vld [vmem:[%s12479_s5 + $0xd0] sm:$0xff] }
 0x4db   : > { %8367 = vmatprep.subr.bf16.mxu1 %v11095_v54  ;;  %v401_v54 = vld [vmem:[%s12479_s5 + $0xa0] sm:$0xff]  ;;  %v390_v3 = vld [vmem:[%s12479_s5 + $0x48] sm:$0xff]  ;;  %12969 = vst [vmem:[#allocation12_spill] sm:$0xff] %v11391_v7  ;;  %v5101_v22 = vand.u32 4294901760, %v406_v39  ;;  %12973 = vst [vmem:[#allocation16_spill] sm:$0xff] %v11402_v44 }
 0x4dc   : > { %12959 = vst [vmem:[#allocation37_spill] sm:$0xff] %v11326_v38  ;;  %v5086_v60 = vand.u32 4294901760, %v401_v54  ;;  %v8560_v5 = vpack.c.bf16 %v11340_v61, %v11326_v38  ;;  %12965 = vst [vmem:[#allocation20_spill] sm:$0xff] %v11366_v52  ;;  %v12972_v61 = vld [vmem:[#allocation10_spill] sm:$0xff] }
 0x4de   : > { %8369 = vmatpush1.bf16.msra.mxu1 %v11109_v16  ;;  %v8558_v16 = vpack.c.bf16 %v11312_v15, %v11310_v41  ;;  %v11356_v9 = vsub.f32 %v401_v54, %v5086_v60  ;;  %v11375_v54 = vsub.f32 %v403_v40, %v5092_v45  ;;  %v11377_v31 = vpack.c.bf16 %v5089_v19, %v5086_v60 }
 0x4df   : > { %8371 = vmatprep.subr.bf16.mxu1 %v12960_v0  ;;  %v11389_v40 = vsub.f32 %v404_v34, %v5095_v49  ;;  %v11396_v19 = vsub.f32 %v388_v59, %v5047_v63  ;;  %v5050_v34 = vand.u32 4294901760, %v389_v51  ;;  %v11420_v59 = vsub.f32 %v405_v21, %v5098_v24  ;;  %v11428_v49 = vld [vmem:[%s12479_s5 + $0x58] sm:$0xff] }
 0x4e0   : > { %12962 = vst [vmem:[#allocation41_spill] sm:$0xff] %v11356_v9  ;;  %8559 = vmatprep.subr.bf16.mxu0 %v8558_v16  ;;  %12966 = vst [vmem:[#allocation21_spill] sm:$0xff] %v11375_v54  ;;  %v8562_v46 = vpack.c.bf16 %v11362_v50, %v11356_v9  ;;  %v8564_v16 = vpack.c.bf16 %v11366_v52, %v11364_v53  ;;  %v5053_v53 = vand.u32 4294901760, %v390_v3  ;;  %v12981_v45 = vand.u32 4294901760, %v11179_v18 }
 0x4e1   : > { %4403 = vmatmul.mubr.f32.vlgmr.msra.gmra.mrb[24].mxu1 %v10887_v43  ;;  %12967 = vst [vmem:[#allocation26_spill] sm:$0xff] %v11377_v31  ;;  %12968 = vst [vmem:[#allocation29_spill] sm:$0xff] %v11389_v40  ;;  %8561 = vmatpush3.bf16.msra.mxu0 %v8560_v5  ;;  %v8566_v52 = vpack.c.bf16 %v11389_v40, %v11375_v54  ;;  %v11422_v5 = vsub.f32 %v406_v39, %v5101_v22 }
 0x4e2   : > { %8373 = vmatpush3.bf16.msra.mxu1 %v12960_v0  ;;  %4408 = vmatprep.mubr.f32.mxu1 %v12874_v47  ;;  %v5044_v47 = vand.u32 4294901760, %v387_v57  ;;  %12971 = vst [vmem:[#allocation13_spill] sm:$0xff] %v11396_v19  ;;  %12974 = vst [vmem:[#allocation23_spill] sm:$0xff] %v11420_v59  ;;  %v11430_v40 = vsub.f32 %v389_v51, %v5050_v34  ;;  %v11432_v54 = vsub.f32 %v390_v3, %v5053_v53 }
 0x4e3   : > { %8375 = vmatprep.subr.bf16.mxu1 %v11147_v58  ;;  %8563 = vmatprep.subr.bf16.mxu0 %v8562_v46  ;;  %12975 = vst [vmem:[#allocation18_spill] sm:$0xff] %v11422_v5  ;;  %v8570_v39 = vpack.c.bf16 %v11422_v5, %v11420_v59  ;;  %v12977_v51 = vand.u32 4294901760, %v11407_v27  ;;  %v11454_v3 = vpack.c.bf16 %v5101_v22, %v5098_v24  ;;  %v11478_v24 = vld [vmem:[%s12479_s5 + $0x68] sm:$0xff]  ;;  %v12982_v46 = vld [vmem:[#allocation24_spill] sm:$0xff]  ;;  %v12985_v22 = vand.u32 4294901760, %v11428_v49 }
 0x4e4   : > { %v11394_v60 = vsub.f32 %v387_v57, %v5044_v47  ;;  %v11412_v57 = vld [vmem:[%s12479_s5 + $0xd8] sm:$0xff]  ;;  %v11434_v50 = vpack.c.bf16 %v5047_v63, %v5044_v47  ;;  %v12983_v5 = vand.u32 4294901760, %v12982_v46 }
 0x4e5   : > { %4410 = vmatmul.mubr.f32.gmra.mrb[26].mxu1 %v10916_v2  ;;  %v12650_v9 = vand.u32 4294901760, %v11412_v57  ;;  %8565 = vmatpush3.bf16.msra.mxu0 %v8564_v16  ;;  %v11447_v47 = vsub.f32 %v11407_v27, %v12977_v51  ;;  %12979 = vst [vmem:[#allocation30_spill] sm:$0xff] %v11454_v3  ;;  %v11459_v16 = vld [vmem:[%s12479_s5 + $0xe0] sm:$0xff]  ;;  %v11497_v38 = vsub.f32 %v11428_v49, %v12985_v22 }
 0x4e6   : > { %12970 = vst [vmem:[#allocation17_spill] sm:$0xff] %v11394_v60  ;;  %8377 = vmatpush3.bf16.msra.mxu1 %v11147_v58  ;;  %7418 = vmatprep.mubr.f32.mxu1 %v12972_v61  ;;  %v11417_v61 = vld [vmem:[%s12479_s5 + $0x50] sm:$0xff]  ;;  %12976 = vst [vmem:[#allocation25_spill] sm:$0xff] %v11434_v50  ;;  %v8568_v21 = vpack.c.bf16 %v11396_v19, %v11394_v60  ;;  %v11469_v51 = vld [vmem:[%s12479_s5 + $0x60] sm:$0xff]  ;;  %v11484_v59 = vpack.c.bf16 %v12983_v5, %v12981_v45  ;;  %v12664_v5 = vand.u32 4294901760, %v11478_v24 }
 0x4e7   : > { %8379 = vmatprep.subr.bf16.mxu1 %v11160_v6  ;;  %8567 = vmatprep.subr.bf16.mxu0 %v8566_v52  ;;  %v11452_v63 = vsub.f32 %v11412_v57, %v12650_v9  ;;  %v11464_v52 = vld [vmem:[%s12479_s5 + $0xe8] sm:$0xff]  ;;  %v11472_v9 = vpack.c.bf16 %v5053_v53, %v5050_v34  ;;  %v8572_v19 = vpack.c.bf16 %v11432_v54, %v11430_v40  ;;  %v12984_v53 = vand.u32 4294901760, %v11417_v61 }
 0x4e8   : > { %v12665_v60 = vand.u32 4294901760, %v11464_v52  ;;  %v12663_v18 = vand.u32 4294901760, %v11469_v51 }
 0x4e9   : > { %12978 = vst [vmem:[#allocation42_spill] sm:$0xff] %v11452_v63  ;;  %12980 = vst [vmem:[#allocation31_spill] sm:$0xff] %v11472_v9  ;;  %8569 = vmatpush3.bf16.msra.mxu0 %v8568_v21  ;;  %v11492_v34 = vsub.f32 %v11417_v61, %v12984_v53  ;;  %v8574_v45 = vpack.c.bf16 %v11452_v63, %v11447_v47  ;;  %v12986_v21 = vand.u32 4294901760, %v11459_v16 }
 0x4ea   : > { %8381 = vmatpush3.bf16.msra.mxu1 %v11160_v6  ;;  %8571 = vmatprep.subr.bf16.mxu0 %v8570_v39  ;;  %v11513_v22 = vsub.f32 %v11464_v52, %v12665_v60  ;;  %v11520_v39 = vsub.f32 %v11469_v51, %v12663_v18  ;;  %v11525_v63 = vsub.f32 %v11478_v24, %v12664_v5  ;;  %v12990_v60 = vand.u32 4294901760, %v11033_v11 }
 0x4eb   : > { %8383 = vmatprep.subr.bf16.mxu1 %v11173_v23  ;;  %v11508_v46 = vsub.f32 %v11459_v16, %v12986_v21  ;;  %v8576_v53 = vpack.c.bf16 %v11497_v38, %v11492_v34  ;;  %v12988_v21 = vld [vmem:[#allocation11_spill] sm:$0xff] }
 0x4ec   : > { %12987 = vst [vmem:[#allocation14_spill] sm:$0xff] %v11513_v22  ;;  %v8580_v18 = vpack.c.bf16 %v11525_v63, %v11520_v39 }
 0x4ed   : > { %8573 = vmatpush3.bf16.msra.mxu0 %v8572_v19  ;;  %v8578_v19 = vpack.c.bf16 %v11513_v22, %v11508_v46  ;;  %v4578_v22 = vsub.f32 %v11033_v11, %v12990_v60 }
 0x4ee   : > { %8385 = vmatpush3.bf16.msra.mxu1 %v11173_v23  ;;  %8575 = vmatprep.subr.bf16.mxu0 %v8574_v45  ;;  %v12989_v45 = vand.u32 4294901760, %v11192_v25 }
 0x4ef   : > { %8387 = vmatprep.subr.bf16.mxu1 %v11484_v59 }
 0x4f0   : > { %v4571_v5 = vsub.f32 %v11192_v25, %v12989_v45 }
 0x4f1   : > { %8577 = vmatpush3.bf16.msra.mxu0 %v8576_v53 }
 0x4f2   : > { %8389 = vmatpush3.bf16.msra.mxu1 %v11484_v59  ;;  %8579 = vmatprep.subr.bf16.mxu0 %v8578_v19  ;;  %v4572_v53 = vand.u32 4294901760, %v4571_v5  ;;  %v5274_v5 = vand.u32 4294901760, %v11301_v12 }
 0x4f3   : > { %8391 = vmatprep.subr.bf16.mxu1 %v11164_v17 }
 0x4f5   : > { %7419 = vmatmul.mubr.f32.vlgmr.msra.gmra.mrb[28].mxu1 %v12988_v21  ;;  %8581 = vmatpush3.bf16.msra.mxu0 %v8580_v18  ;;  %v12991_v21 = vld [vmem:[#allocation35_spill] sm:$0xff]  ;;  %v5267_v18 = vand.u32 4294901760, %v11299_v4 }
 0x4f6   : > { %8393 = vmatpush3.bf16.msra.mxu1 %v11164_v17  ;;  %7441 = vmatprep.mubr.f32.mxu1 %v10887_v43  ;;  %v4579_v17 = vand.u32 4294901760, %v4578_v22 }
 0x4f7   : > { %8395 = vmatprep.subr.bf16.mxu1 %v11175_v55 }
 0x4f8   : > { %v8406_v19 = vpack.c.bf16 %v4579_v17, %v4572_v53  ;;  %v8618_v53 = vpack.c.bf16 %v5274_v5, %v5267_v18 }
 0x4fa   : > { %8397 = vmatpush3.bf16.msra.mxu1 %v11175_v55  ;;  %v12992_v55 = vld [vmem:[#allocation36_spill] sm:$0xff] }
 0x4fb   : > { %8399 = vmatprep.subr.bf16.mxu1 %v11187_v1 }
 0x4fe   : > { %8401 = vmatpush3.bf16.msra.mxu1 %v11187_v1  ;;  %v8426_v1 = vpack.c.bf16 %v11033_v11, %v11192_v25  ;;  %v11581_v11 = vld [vmem:[%s12479_s5 + $0xf0] sm:$0xff]  ;;  %v11599_v25 = vld [vmem:[%s12479_s5 + $0x78] sm:$0xff] }
 0x4ff   : > { %8403 = vmatprep.subr.bf16.mxu1 %v11204_v48 }
 0x502   : > { %8405 = vmatpush3.bf16.msra.mxu1 %v11204_v48 }
 0x503   : > { %8407 = vmatprep.subr.bf16.mxu1 %v8406_v19 }
 0x506   : > { %8409 = vmatpush3.bf16.msra.mxu1 %v8406_v19 }
 0x507   : > { %8411 = vmatprep.subr.bf16.mxu1 %v12991_v21 }
 0x509   : > { %7442 = vmatmul.mubr.f32.vlgmr.msra.gmra.mrb[28].mxu1 %v10916_v2 }
 0x50a   : > { %8413 = vmatpush3.bf16.msra.mxu1 %v12991_v21  ;;  %7464 = vmatprep.mubr.f32.mxu1 %v12940_v36  ;;  %v5071_v36 = vand.u32 4294901760, %v11599_v25 }
 0x50b   : > { %8415 = vmatprep.subr.bf16.mxu1 %v12992_v55 }
 0x50c   : > { %v5259_v60 = vsub.f32 %v11599_v25, %v5071_v36 }
 0x50e   : > { %8417 = vmatpush3.bf16.msra.mxu1 %v12992_v55 }
 0x50f   : > { %8419 = vmatprep.subr.bf16.mxu1 %v11167_v14 }
 0x512   : > { %8421 = vmatpush3.bf16.msra.mxu1 %v11167_v14  ;;  %v11586_v14 = vld [vmem:[%s12479_s5 + $0xf8] sm:$0xff] }
 0x513   : > { %8423 = vmatprep.subr.bf16.mxu1 %v11184_v33 }
 0x516   : > { %8425 = vmatpush3.bf16.msra.mxu1 %v11184_v33  ;;  %v5119_v33 = vand.u32 4294901760, %v11586_v14 }
 0x517   : > { %8427 = vmatprep.subr.bf16.mxu1 %v8426_v1 }
 0x51a   : > { %8429 = vmatpush3.bf16.msra.mxu1 %v8426_v1 }
 0x51b   : > { %8431 = vmatprep.subr.bf16.mxu1 %v12960_v0 }
 0x51d   : > { %7465 = vmatmul.mubr.f32.vlgmr.msra.gmra.mrb[28].mxu1 %v12943_v56 }
 0x51e   : > { %8433 = vmatpush3.bf16.msra.mxu1 %v12960_v0  ;;  %7487 = vmatprep.mubr.f32.mxu1 %v12950_v37  ;;  %v5371_v37 = vsub.f32 %v11586_v14, %v5119_v33  ;;  %v5281_v14 = vand.u32 4294901760, %v11310_v41 }
 0x51f   : > { %8435 = vmatprep.subr.bf16.mxu1 %v11147_v58 }
 0x520   : > { %v5282_v25 = vsub.f32 %v11310_v41, %v5281_v14 }
 0x522   : > { %8437 = vmatpush3.bf16.msra.mxu1 %v11147_v58 }
 0x523   : > { %8439 = vmatprep.subr.bf16.mxu1 %v11160_v6 }
 0x526   : > { %8441 = vmatpush3.bf16.msra.mxu1 %v11160_v6 }
 0x527   : > { %8443 = vmatprep.subr.bf16.mxu1 %v11173_v23 }
 0x52a   : > { %8445 = vmatpush3.bf16.msra.mxu1 %v11173_v23 }
 0x52b   : > { %8447 = vmatprep.subr.bf16.mxu1 %v11484_v59 }
 0x52e   : > { %8449 = vmatpush3.bf16.msra.mxu1 %v11484_v59 }
 0x52f   : > { %8451 = vmatprep.subr.bf16.mxu1 %v11169_v8 }
 0x531   : > { %7488 = vmatmul.mubr.f32.vlgmr.msra.gmra.mrb[28].mxu1 %v12953_v26 }
 0x532   : > { %8453 = vmatpush3.bf16.msra.mxu1 %v11169_v8  ;;  %7510 = vmatprep.mubr.f32.mxu1 %v10887_v43  ;;  %v5116_v8 = vand.u32 4294901760, %v11581_v11 }
 0x533   : > { %8455 = vmatprep.subr.bf16.mxu1 %v11171_v30 }
 0x534   : > { %v5364_v56 = vsub.f32 %v11581_v11, %v5116_v8  ;;  %v5162_v11 = vand.u32 4294901760, %v11308_v35 }
 0x536   : > { %8457 = vmatpush3.bf16.msra.mxu1 %v11171_v30  ;;  %v11594_v30 = vld [vmem:[%s12479_s5 + $0x70] sm:$0xff]  ;;  %v8582_v22 = vpack.c.bf16 %v5371_v37, %v5364_v56 }
 0x537   : > { %8459 = vmatprep.subr.bf16.mxu1 %v11181_v28  ;;  %v5068_v48 = vand.u32 4294901760, %v11594_v30 }
 0x538   : > { %8583 = vmatprep.subr.bf16.mxu0 %v8582_v22 }
 0x539   : > { %v5252_v26 = vsub.f32 %v11594_v30, %v5068_v48  ;;  %v5163_v30 = vsub.f32 %v11308_v35, %v5162_v11 }
 0x53a   : > { %8461 = vmatpush3.bf16.msra.mxu1 %v11181_v28  ;;  %v5365_v28 = vand.u32 4294901760, %v5364_v56 }
 0x53b   : > { %8463 = vmatprep.subr.bf16.mxu1 %v11199_v20  ;;  %v8584_v45 = vpack.c.bf16 %v5259_v60, %v5252_v26 }
 0x53d   : > { %8585 = vmatpush3.bf16.msra.mxu0 %v8584_v45  ;;  %v12997_v45 = vand.u32 4294901760, %v11428_v49  ;;  %v13003_v49 = vand.u32 4294901760, %v11478_v24  ;;  %v5155_v24 = vand.u32 4294901760, %v11303_v10 }
 0x53e   : > { %8465 = vmatpush3.bf16.msra.mxu1 %v11199_v20  ;;  %8619 = vmatprep.subr.bf16.mxu0 %v8618_v53  ;;  %v5372_v20 = vand.u32 4294901760, %v5371_v37 }
 0x53f   : > { %8467 = vmatprep.subr.bf16.mxu1 %v11210_v32 }
 0x542   : > { %8469 = vmatpush3.bf16.msra.mxu1 %v11210_v32  ;;  %v5260_v32 = vand.u32 4294901760, %v5259_v60 }
 0x543   : > { %8471 = vmatprep.subr.bf16.mxu1 %v12960_v0 }
 0x545   : > { %7511 = vmatmul.mubr.f32.vlgmr.msra.gmra.mrb[28].mxu1 %v10916_v2 }
 0x546   : > { %8473 = vmatpush3.bf16.msra.mxu1 %v12960_v0  ;;  %7533 = vmatprep.mubr.f32.mxu1 %v10887_v43  ;;  %v5253_v43 = vand.u32 4294901760, %v5252_v26  ;;  %v11635_v0 = vpack.c.bf16 %v5372_v20, %v5365_v28 }
 0x547   : > { %8475 = vmatprep.subr.bf16.mxu1 %v11147_v58 }
 0x548   : > { %v5254_v17 = vsub.f32 %v5252_v26, %v5253_v43 }
 0x54a   : > { %8477 = vmatpush3.bf16.msra.mxu1 %v11147_v58  ;;  %v11638_v58 = vpack.c.bf16 %v5260_v32, %v5253_v43  ;;  %v5255_v55 = vand.u32 4294901760, %v5254_v17 }
 0x54b   : > { %8479 = vmatprep.subr.bf16.mxu1 %v11160_v6 }
 0x54e   : > { %8481 = vmatpush3.bf16.msra.mxu1 %v11160_v6  ;;  %v5366_v6 = vsub.f32 %v5364_v56, %v5365_v28  ;;  %v12993_v56 = vand.u32 4294901760, %v11407_v27  ;;  %v12999_v28 = vand.u32 4294901760, %v11459_v16  ;;  %v5268_v27 = vsub.f32 %v11299_v4, %v5267_v18 }
 0x54f   : > { %8483 = vmatprep.subr.bf16.mxu1 %v11173_v23  ;;  %v11686_v16 = vpack.c.bf16 %v5119_v33, %v5116_v8  ;;  %v5288_v8 = vand.u32 4294901760, %v11312_v15  ;;  %v5156_v33 = vsub.f32 %v11303_v10, %v5155_v24 }
 0x550   : > { %v5367_v19 = vand.u32 4294901760, %v5366_v6 }
 0x551   : > { %13005 = vst [vmem:[#allocation39_spill] sm:$0xff] %v11686_v16 }
 0x552   : > { %8485 = vmatpush3.bf16.msra.mxu1 %v11173_v23  ;;  %v5373_v23 = vsub.f32 %v5371_v37, %v5372_v20  ;;  %v12994_v37 = vand.u32 4294901760, %v11412_v57  ;;  %v13000_v20 = vand.u32 4294901760, %v11464_v52  ;;  %v5275_v57 = vsub.f32 %v11301_v12, %v5274_v5  ;;  %v13008_v5 = vld [vmem:[#allocation40_spill] sm:$0xff] }
 0x553   : > { %8487 = vmatprep.subr.bf16.mxu1 %v11484_v59  ;;  %v5269_v52 = vand.u32 4294901760, %v5268_v27  ;;  %v11693_v12 = vpack.c.bf16 %v5071_v36, %v5068_v48  ;;  %v5289_v48 = vsub.f32 %v11312_v15, %v5288_v8  ;;  %v13007_v36 = vld [vmem:[#allocation37_spill] sm:$0xff]  ;;  %v5176_v6 = vand.u32 4294901760, %v13008_v5 }
 0x554   : > { %v5374_v21 = vand.u32 4294901760, %v5373_v23  ;;  %v11656_v26 = vpack.c.bf16 %v12994_v37, %v12993_v56  ;;  %v11670_v43 = vpack.c.bf16 %v13000_v20, %v12999_v28  ;;  %v5276_v4 = vand.u32 4294901760, %v5275_v57  ;;  %v13009_v23 = vld [vmem:[#allocation41_spill] sm:$0xff]  ;;  %v13012_v37 = vld [vmem:[#allocation20_spill] sm:$0xff] }
 0x555   : > { %13006 = vst [vmem:[#allocation27_spill] sm:$0xff] %v11693_v12  ;;  %v5169_v18 = vand.u32 4294901760, %v13007_v36  ;;  %v5295_v17 = vand.u32 4294901760, %v13009_v23  ;;  %v5190_v10 = vand.u32 4294901760, %v13012_v37  ;;  %v5177_v41 = vsub.f32 %v13008_v5, %v5176_v6  ;;  %v13013_v20 = vld [vmem:[#allocation21_spill] sm:$0xff] }
 0x556   : > { %8489 = vmatpush3.bf16.msra.mxu1 %v11484_v59  ;;  %v5261_v59 = vsub.f32 %v5259_v60, %v5260_v32  ;;  %v11644_v22 = vpack.c.bf16 %v5374_v21, %v5367_v19  ;;  %12995 = vst [vmem:[#allocation19_spill] sm:$0xff] %v11656_v26  ;;  %v12996_v60 = vand.u32 4294901760, %v11417_v61  ;;  %13001 = vst [vmem:[#allocation22_spill] sm:$0xff] %v11670_v43  ;;  %v13002_v61 = vand.u32 4294901760, %v11469_v51  ;;  %v13014_v57 = vld [vmem:[#allocation29_spill] sm:$0xff] }
 0x557   : > { %8491 = vmatprep.subr.bf16.mxu1 %v11328_v42  ;;  %v8522_v51 = vpack.c.bf16 %v5276_v4, %v5269_v52  ;;  %v5157_v21 = vand.u32 4294901760, %v5156_v33  ;;  %v5170_v35 = vsub.f32 %v13007_v36, %v5169_v18  ;;  %v11715_v15 = vpack.c.bf16 %v5288_v8, %v5281_v14  ;;  %v13016_v36 = vld [vmem:[#allocation13_spill] sm:$0xff] }
 0x558   : > { %v5262_v1 = vand.u32 4294901760, %v5261_v59  ;;  %v11663_v53 = vpack.c.bf16 %v12997_v45, %v12996_v60  ;;  %v11679_v32 = vpack.c.bf16 %v13003_v49, %v13002_v61  ;;  %v13010_v59 = vld [vmem:[#allocation43_spill] sm:$0xff]  ;;  %v11713_v60 = vpack.c.bf16 %v5162_v11, %v5155_v24 }
 0x559   : > { %7534 = vmatmul.mubr.f32.vlgmr.msra.gmra.mrb[28].mxu1 %v10916_v2  ;;  %v5302_v19 = vand.u32 4294901760, %v13010_v59  ;;  %v5283_v45 = vand.u32 4294901760, %v5282_v25  ;;  %v5290_v28 = vand.u32 4294901760, %v5289_v48  ;;  %v5309_v27 = vand.u32 4294901760, %v13013_v20  ;;  %v13015_v25 = vld [vmem:[#allocation17_spill] sm:$0xff] }
 0x55a   : > { %8493 = vmatpush3.bf16.msra.mxu1 %v11330_v29  ;;  %v11646_v2 = vpack.c.bf16 %v5262_v1, %v5255_v55  ;;  %12998 = vst [vmem:[#allocation15_spill] sm:$0xff] %v11663_v53  ;;  %13004 = vst [vmem:[#allocation38_spill] sm:$0xff] %v11679_v32  ;;  %v5164_v55 = vand.u32 4294901760, %v5163_v30  ;;  %v13011_v1 = vld [vmem:[#allocation44_spill] sm:$0xff]  ;;  %v5316_v61 = vand.u32 4294901760, %v13014_v57  ;;  %v5296_v49 = vsub.f32 %v13009_v23, %v5295_v17 }
 0x55b   : > { %8495 = vmatprep.subr.bf16.mxu1 %v11345_v13  ;;  %v5183_v56 = vand.u32 4294901760, %v13011_v1  ;;  %v5303_v52 = vsub.f32 %v13010_v59, %v5302_v19  ;;  %v11721_v4 = vpack.c.bf16 %v5176_v6, %v5169_v18  ;;  %v11725_v33 = vpack.c.bf16 %v5302_v19, %v5295_v17 }
 0x55c   : > { %v5171_v11 = vand.u32 4294901760, %v5170_v35  ;;  %v5178_v14 = vand.u32 4294901760, %v5177_v41  ;;  %v5191_v30 = vsub.f32 %v13012_v37, %v5190_v10  ;;  %v5197_v48 = vand.u32 4294901760, %v13015_v25  ;;  %v13018_v35 = vld [vmem:[#allocation18_spill] sm:$0xff] }
 0x55d   : > { %v11727_v24 = vpack.c.bf16 %v5190_v10, %v5183_v56  ;;  %v5184_v8 = vsub.f32 %v13011_v1, %v5183_v56  ;;  %v5204_v5 = vand.u32 4294901760, %v13016_v36  ;;  %v5310_v23 = vsub.f32 %v13013_v20, %v5309_v27 }
 0x55e   : > { %8497 = vmatpush3.bf16.msra.mxu1 %v11358_v62  ;;  %v5317_v18 = vsub.f32 %v13014_v57, %v5316_v61  ;;  %v11735_v6 = vpack.c.bf16 %v5290_v28, %v5283_v45  ;;  %v11737_v17 = vpack.c.bf16 %v5316_v61, %v5309_v27  ;;  %v5297_v59 = vand.u32 4294901760, %v5296_v49  ;;  %v13019_v61 = vld [vmem:[#allocation42_spill] sm:$0xff] }
 0x55f   : > { %8499 = vmatprep.subr.bf16.mxu1 %v11377_v31  ;;  %v5304_v19 = vand.u32 4294901760, %v5303_v52  ;;  %v5330_v1 = vand.u32 4294901760, %v13018_v35  ;;  %v5198_v56 = vsub.f32 %v13015_v25, %v5197_v48  ;;  %v5205_v37 = vsub.f32 %v13016_v36, %v5204_v5 }
 0x560   : > { %v5185_v10 = vand.u32 4294901760, %v5184_v8  ;;  %v5192_v41 = vand.u32 4294901760, %v5191_v30  ;;  %v5211_v20 = vand.u32 4294901760, %v11430_v40  ;;  %v5218_v57 = vand.u32 4294901760, %v11432_v54 }
 0x561   : > { %v5311_v45 = vand.u32 4294901760, %v5310_v23  ;;  %v5318_v28 = vand.u32 4294901760, %v5317_v18  ;;  %v5337_v27 = vand.u32 4294901760, %v11447_v47  ;;  %v5344_v49 = vand.u32 4294901760, %v13019_v61 }
 0x562   : > { %8501 = vmatpush3.bf16.msra.mxu1 %v11391_v7  ;;  %v11747_v52 = vpack.c.bf16 %v5178_v14, %v5171_v11  ;;  %v5331_v36 = vsub.f32 %v13018_v35, %v5330_v1  ;;  %v5199_v8 = vand.u32 4294901760, %v5198_v56  ;;  %v5206_v30 = vand.u32 4294901760, %v5205_v37 }
 0x563   : > { %8503 = vmatprep.subr.bf16.mxu1 %v11402_v44  ;;  %v11755_v23 = vpack.c.bf16 %v5304_v19, %v5297_v59  ;;  %v5219_v11 = vsub.f32 %v11432_v54, %v5218_v57  ;;  %v11761_v14 = vpack.c.bf16 %v5192_v41, %v5185_v10  ;;  %v13021_v19 = vld [vmem:[#allocation14_spill] sm:$0xff] }
 0x564   : > { %v5332_v37 = vand.u32 4294901760, %v5331_v36  ;;  %v11780_v10 = vpack.c.bf16 %v5206_v30, %v5199_v8  ;;  %v11801_v36 = vld [vmem:[%s12479_s5 + $0x118] sm:$0xff] }
 0x566   : > { %8505 = vmatpush3.bf16.msra.mxu1 %v11434_v50 }
 0x567   : > { %8507 = vmatprep.subr.bf16.mxu1 %v11454_v3 }
 0x56a   : > { %8509 = vmatpush3.bf16.msra.mxu1 %v11472_v9 }
 0x56b   : > { %8511 = vmatprep.subr.bf16.mxu1 %v11656_v26 }
 0x56e   : > { %8513 = vmatpush3.bf16.msra.mxu1 %v11663_v53  ;;  %v13026_v53 = vand.u32 4294901760, %v11508_v46 }
 0x56f   : > { %8515 = vmatprep.subr.bf16.mxu1 %v11670_v43  ;;  %v5212_v43 = vsub.f32 %v11430_v40, %v5211_v20 }
 0x572   : > { %8517 = vmatpush3.bf16.msra.mxu1 %v11679_v32  ;;  %v12676_v32 = vand.u32 4294901760, %v11497_v38 }
 0x573   : > { %8519 = vmatprep.subr.bf16.mxu1 %v11686_v16  ;;  %v12677_v16 = vand.u32 4294901760, %v11492_v34 }
 0x575   : > { %v11786_v41 = vpack.c.bf16 %v12676_v32, %v12677_v16 }
 0x576   : > { %8521 = vmatpush3.bf16.msra.mxu1 %v11693_v12  ;;  %v11749_v12 = vpack.c.bf16 %v5204_v5, %v5197_v48  ;;  %v11763_v48 = vpack.c.bf16 %v5218_v57, %v5211_v20  ;;  %v11765_v5 = vpack.c.bf16 %v5318_v28, %v5311_v45  ;;  %v5213_v45 = vand.u32 4294901760, %v5212_v43 }
 0x577   : > { %8523 = vmatprep.subr.bf16.mxu1 %v8522_v51  ;;  %v11723_v51 = vpack.c.bf16 %v5164_v55, %v5157_v21  ;;  %v13017_v21 = vld [vmem:[#allocation23_spill] sm:$0xff]  ;;  %v5220_v28 = vand.u32 4294901760, %v5219_v11 }
 0x578   : > { %v5323_v55 = vand.u32 4294901760, %v13017_v21 }
 0x57a   : > { %v5324_v25 = vsub.f32 %v13017_v21, %v5323_v55  ;;  %v11757_v18 = vpack.c.bf16 %v5330_v1, %v5323_v55  ;;  %v11767_v21 = vpack.c.bf16 %v5344_v49, %v5337_v27 }
 0x57c   : > { %v5325_v56 = vand.u32 4294901760, %v5324_v25  ;;  %v11796_v25 = vld [vmem:[%s12479_s5 + $0x110] sm:$0xff] }
 0x57e   : > { %v11819_v59 = vpack.c.bf16 %v5332_v37, %v5325_v56  ;;  %v11838_v56 = vld [vmem:[%s12479_s5 + $0x120] sm:$0xff]  ;;  %v11846_v37 = vsub.f32 %v11447_v47, %v5337_v27  ;;  %v13032_v27 = vand.u32 4294901760, %v11801_v36 }
 0x5b4   : > { %v11769_v35 = vpop.f32.mrb[24].mxu1 }
 0x5b5   : > { %13020 = vst [vmem:[#allocation28_spill] sm:$0xff] %v11769_v35  ;;  %v5022_v40 = vmul.f32 %v11769_v35, %v11769_v35  ;;  %v11776_v54 = vand.u32 4294901760, %v11769_v35  ;;  %v11778_v1 = vpop.f32.mrb[25].mxu1 }
 0x5b6   : > { %13022 = vst [vmem:[#allocation32_spill] sm:$0xff] %v11778_v1  ;;  %v5023_v20 = vmul.f32 %v11778_v1, %v11778_v1  ;;  %v11791_v57 = vand.u32 4294901760, %v11778_v1 }
 0x5b7   : > { %v11805_v8 = vsub.f32 %v11769_v35, %v11776_v54  ;;  %v11807_v30 = vand.u32 4294901760, %v5022_v40  ;;  %v13027_v35 = vand.u32 4294901760, %v13021_v19 }
 0x5b8   : > { %13023 = vst [vmem:[#allocation33_spill] sm:$0xff] %v11791_v57  ;;  %v11811_v11 = vand.u32 4294901760, %v5023_v20  ;;  %v11813_v16 = vpop.f32.mrb[26].mxu1  ;;  %v11817_v55 = vsub.f32 %v11778_v1, %v11791_v57  ;;  %v11854_v1 = vld [vmem:[%s12479_s5 + $0x128] sm:$0xff] }
 0x5b9   : > { %13024 = vst [vmem:[#allocation34_spill] sm:$0xff] %v11805_v8  ;;  %13025 = vst [vmem:[#allocation10_spill] sm:$0xff] %v11813_v16  ;;  %v11825_v26 = vpack.c.bf16 %v13027_v35, %v13026_v53  ;;  %v11827_v9 = vpop.f32.mrb[27].mxu1  ;;  %v11830_v43 = vsub.f32 %v5022_v40, %v11807_v30  ;;  %v12686_v32 = vand.u32 4294901760, %v11805_v8  ;;  %v11849_v40 = vsub.f32 %v13019_v61, %v5344_v49 }
 0x5ba   : > { %13028 = vst [vmem:[#allocation24_spill] sm:$0xff] %v11827_v9  ;;  %5521 = vmatprep.mubr.f32.mxu0 %v11817_v55  ;;  %v11842_v53 = vsub.f32 %v5023_v20, %v11811_v11  ;;  %v13031_v35 = vand.u32 4294901760, %v11796_v25  ;;  %v11869_v61 = vsub.f32 %v11801_v36, %v13032_v27  ;;  %v13033_v49 = vand.u32 4294901760, %v11817_v55 }
 0x5bb   : > { %13029 = vst [vmem:[#allocation11_spill] sm:$0xff] %v11830_v43  ;;  %5524 = vmatmul.mubr.f32.vlgmr.msra.gmra.mrb[14].mxu0 %v11805_v8  ;;  %v5130_v20 = vsub.f32 %v11805_v8, %v12686_v32  ;;  %v11877_v9 = vpack.c.bf16 %v5220_v28, %v5213_v45  ;;  %v13034_v8 = vand.u32 4294901760, %v11520_v39  ;;  %v13035_v27 = vand.u32 4294901760, %v11525_v63  ;;  %v11896_v45 = vld [vmem:[%s12479_s5 + $0x138] sm:$0xff] }
 0x5bc   : > { %13030 = vst [vmem:[#allocation35_spill] sm:$0xff] %v11842_v53  ;;  %v11864_v47 = vsub.f32 %v11796_v25, %v13031_v35  ;;  %8621 = vmatpush3.bf16.msra.mxu0 %v11713_v60  ;;  %5530 = vmatprep.mubr.f32.mxu0 %v11842_v53  ;;  %v5124_v32 = vsub.f32 %v11817_v55, %v13033_v49  ;;  %v11891_v49 = vld [vmem:[%s12479_s5 + $0x130] sm:$0xff]  ;;  %v12700_v28 = vand.u32 4294901760, %v11869_v61  ;;  %v13037_v60 = vand.u32 4294901760, %v11838_v56 }
 0x5bd   : > { %8623 = vmatprep.subr.bf16.mxu0 %v11715_v15  ;;  %v11885_v3 = vpack.c.bf16 %v13035_v27, %v13034_v8  ;;  %v5131_v16 = vand.u32 4294901760, %v5130_v20  ;;  %v13036_v8 = vand.u32 4294901760, %v11842_v53  ;;  %v13038_v44 = vand.u32 4294901760, %v11830_v43 }
 0x5be   : > { %v12701_v15 = vand.u32 4294901760, %v11864_v47  ;;  %v5125_v35 = vand.u32 4294901760, %v5124_v32  ;;  %v11906_v50 = vsub.f32 %v11838_v56, %v13037_v60  ;;  %v6069_v20 = vsub.f32 %v11869_v61, %v12700_v28 }
 0x5bf   : > { %v5139_v27 = vsub.f32 %v11842_v53, %v13036_v8  ;;  %5533 = vmatmul.mubr.f32.gmra.mrb[16].mxu0 %v11830_v43  ;;  %v5145_v7 = vsub.f32 %v11830_v43, %v13038_v44  ;;  %v13039_v8 = vand.u32 4294901760, %v11854_v1  ;;  %v12703_v31 = vand.u32 4294901760, %v11891_v49 }
 0x5c0   : > { %v6062_v32 = vsub.f32 %v11864_v47, %v12701_v15  ;;  %8625 = vmatpush3.bf16.msra.mxu0 %v11721_v4  ;;  %5126 = vmatprep.mubr.f32.mxu1 %v5125_v35  ;;  %v12704_v44 = vand.u32 4294901760, %v11896_v45  ;;  %v12702_v43 = vand.u32 4294901760, %v11906_v50  ;;  %v13040_v28 = vand.u32 4294901760, %v11492_v34  ;;  %v11936_v4 = vld [vmem:[%s12479_s5 + $0x140] sm:$0xff] }
 0x5c1   : > { %v11921_v53 = vsub.f32 %v11854_v1, %v13039_v8  ;;  %v5140_v60 = vand.u32 4294901760, %v5139_v27  ;;  %5818 = vmatprep.mubr.f32.mxu0 %v11791_v57  ;;  %5132 = vmatmul.mubr.f32.vlgmr.msra.gmra.mrb[30].mxu1 %v5131_v16  ;;  %v6070_v27 = vand.u32 4294901760, %v6069_v20  ;;  %v11943_v16 = vld [vmem:[%s12479_s5 + $0x148] sm:$0xff]  ;;  %v13041_v20 = vand.u32 4294901760, %v11497_v38 }
 0x5c2   : > { %v11931_v15 = vsub.f32 %v11492_v34, %v13040_v28  ;;  %v6063_v35 = vand.u32 4294901760, %v6062_v32  ;;  %8525 = vmatpush3.bf16.msra.mxu1 %v11723_v51  ;;  %v6076_v34 = vsub.f32 %v11906_v50, %v12702_v43  ;;  %v11951_v28 = vsub.f32 %v11891_v49, %v12703_v31  ;;  %8627 = vmatprep.subr.bf16.mxu0 %v11725_v33  ;;  %v11973_v33 = vld [vmem:[%s12479_s5 + $0x150] sm:$0xff] }
 0x5c3   : > { %v12705_v8 = vand.u32 4294901760, %v11921_v53  ;;  %5141 = vmatprep.mubr.f32.mxu1 %v5140_v60  ;;  %v11956_v32 = vsub.f32 %v11896_v45, %v12704_v44  ;;  %8527 = vmatprep.subr.bf16.mxu1 %v11735_v6  ;;  %v5146_v51 = vand.u32 4294901760, %v5145_v7  ;;  %v5233_v60 = vsub.f32 %v11497_v38, %v13041_v20  ;;  %v11984_v20 = vld [vmem:[%s12479_s5 + $0x158] sm:$0xff] }
 0x5c4   : > { %v11963_v43 = vpack.c.bf16 %v6070_v27, %v6063_v35  ;;  %8629 = vmatpush3.bf16.msra.mxu0 %v11727_v24  ;;  %v12708_v44 = vand.u32 4294901760, %v11936_v4  ;;  %v6077_v7 = vand.u32 4294901760, %v6076_v34  ;;  %v12707_v6 = vand.u32 4294901760, %v11951_v28 }
 0x5c5   : > { %v6083_v31 = vsub.f32 %v11921_v53, %v12705_v8  ;;  %v12706_v38 = vand.u32 4294901760, %v11956_v32  ;;  %5147 = vmatmul.mubr.f32.gmra.mrb[32].mxu1 %v5146_v51  ;;  %8631 = vmatprep.subr.bf16.mxu0 %v11737_v17  ;;  %v5339_v35 = vand.u32 4294901760, %v11846_v37  ;;  %v5346_v27 = vand.u32 4294901760, %v11849_v40 }
 0x5c6   : > { %13042 = vst [vmem:[#allocation36_spill] sm:$0xff] %v11963_v43  ;;  %v12709_v24 = vand.u32 4294901760, %v11943_v16  ;;  %8529 = vmatpush3.bf16.msra.mxu1 %v11747_v52  ;;  %5377 = vmatprep.mubr.f32.mxu1 %v11791_v57  ;;  %v6090_v17 = vsub.f32 %v11951_v28, %v12707_v6  ;;  %v11997_v40 = vsub.f32 %v11936_v4, %v12708_v44  ;;  %v12014_v6 = vld [vmem:[%s12479_s5 + $0x160] sm:$0xff] }
 0x5c7   : > { %v6084_v8 = vand.u32 4294901760, %v6083_v31  ;;  %v6097_v37 = vsub.f32 %v11956_v32, %v12706_v38  ;;  %8531 = vmatprep.subr.bf16.mxu1 %v11755_v23  ;;  %v5227_v31 = vand.u32 4294901760, %v11931_v15  ;;  %13044 = vst [vmem:[#allocation40_spill] sm:$0xff] %v12014_v6 }
 0x5c8   : > { %v12007_v51 = vsub.f32 %v11943_v16, %v12709_v24  ;;  %8633 = vmatpush3.bf16.msra.mxu0 %v11749_v12  ;;  %v6091_v23 = vand.u32 4294901760, %v6090_v17  ;;  %v12710_v44 = vand.u32 4294901760, %v11997_v40  ;;  %v13045_v24 = vand.u32 4294901760, %v11508_v46  ;;  %v12024_v12 = vld [vmem:[%s12479_s5 + $0x168] sm:$0xff] }
 0x5c9   : > { %v12002_v34 = vpack.c.bf16 %v6084_v8, %v6077_v7  ;;  %v6098_v15 = vand.u32 4294901760, %v6097_v37  ;;  %8635 = vmatprep.subr.bf16.mxu0 %v11757_v18  ;;  %v8542_v8 = vpack.c.bf16 %v5346_v27, %v5339_v35  ;;  %v5234_v7 = vand.u32 4294901760, %v5233_v60  ;;  %13046 = vst [vmem:[#allocation41_spill] sm:$0xff] %v12024_v12 }
 0x5ca   : > { %v5352_v52 = vsub.f32 %v11508_v46, %v13045_v24  ;;  %v12711_v38 = vand.u32 4294901760, %v12007_v51  ;;  %8533 = vmatpush3.bf16.msra.mxu1 %v11761_v14  ;;  %v6104_v18 = vsub.f32 %v11997_v40, %v12710_v44  ;;  %v13048_v60 = vand.u32 4294901760, %v11973_v33 }
 0x5cb   : > { %13043 = vst [vmem:[#allocation37_spill] sm:$0xff] %v12002_v34  ;;  %v12028_v17 = vpack.c.bf16 %v6098_v15, %v6091_v23  ;;  %v13049_v46 = vand.u32 4294901760, %v11984_v20  ;;  %8535 = vmatprep.subr.bf16.mxu1 %v11765_v5  ;;  %v13050_v14 = vand.u32 4294901760, %v13021_v19  ;;  %v13051_v37 = vand.u32 4294901760, %v11520_v39  ;;  %v12059_v5 = vld [vmem:[%s12479_s5 + $0x170] sm:$0xff] }
 0x5cc   : > { %v12036_v35 = vsub.f32 %v11973_v33, %v13048_v60  ;;  %v6111_v60 = vsub.f32 %v12007_v51, %v12711_v38  ;;  %8637 = vmatpush3.bf16.msra.mxu0 %v11763_v48  ;;  %v5353_v44 = vand.u32 4294901760, %v5352_v52  ;;  %v13052_v38 = vand.u32 4294901760, %v11525_v63 }
 0x5cd   : > { %13047 = vst [vmem:[#allocation43_spill] sm:$0xff] %v12028_v17  ;;  %v12041_v27 = vsub.f32 %v11984_v20, %v13049_v46  ;;  %v5359_v24 = vsub.f32 %v13021_v19, %v13050_v14  ;;  %v5240_v23 = vsub.f32 %v11520_v39, %v13051_v37  ;;  %v6105_v19 = vand.u32 4294901760, %v6104_v18  ;;  %8639 = vmatprep.subr.bf16.mxu0 %v11767_v21  ;;  %v413_v46 = vld [vmem:[%s12479_s5 + $0x100] sm:$0xff]  ;;  %v414_v18 = vld [vmem:[%s12479_s5 + $0x108] sm:$0xff]  ;;  %v12077_v21 = vld [vmem:[%s12479_s5 + $0x178] sm:$0xff] }
 0x5ce   : > { %v12713_v14 = vand.u32 4294901760, %v12036_v35  ;;  %v8544_v37 = vpack.c.bf16 %v5234_v7, %v5227_v31  ;;  %v5247_v48 = vsub.f32 %v11525_v63, %v13052_v38  ;;  %v6112_v15 = vand.u32 4294901760, %v6111_v60  ;;  %8537 = vmatpush3.bf16.msra.mxu1 %v11780_v10 }
 0x5cf   : > { %v12715_v39 = vand.u32 4294901760, %v12041_v27  ;;  %v13053_v38 = vand.u32 4294901760, %v12014_v6  ;;  %v13054_v52 = vand.u32 4294901760, %v12024_v12  ;;  %8539 = vmatprep.subr.bf16.mxu1 %v11819_v59  ;;  %v5360_v60 = vand.u32 4294901760, %v5359_v24 }
 0x5d0   : > { %v6118_v63 = vsub.f32 %v12036_v35, %v12713_v14  ;;  %v5241_v17 = vand.u32 4294901760, %v5240_v23  ;;  %v5986_v14 = vand.u32 4294901760, %v12059_v5  ;;  %v12097_v34 = vpack.c.bf16 %v6112_v15, %v6105_v19  ;;  %8641 = vmatpush3.bf16.msra.mxu0 %v11786_v41 }
 0x5d1   : > { %v6125_v10 = vsub.f32 %v12041_v27, %v12715_v39  ;;  %v12088_v31 = vsub.f32 %v12014_v6, %v13053_v38  ;;  %v12093_v7 = vsub.f32 %v12024_v12, %v13054_v52  ;;  %8643 = vmatprep.subr.bf16.mxu0 %v11825_v26  ;;  %v5248_v52 = vand.u32 4294901760, %v5247_v48 }
 0x5d2   : > { %v6119_v39 = vand.u32 4294901760, %v6118_v63  ;;  %v5944_v12 = vand.u32 4294901760, %v413_v46  ;;  %v5947_v6 = vand.u32 4294901760, %v414_v18  ;;  %v5989_v59 = vand.u32 4294901760, %v12077_v21  ;;  %8541 = vmatpush3.bf16.msra.mxu1 %v11877_v9 }
 0x5d3   : > { %v6126_v43 = vand.u32 4294901760, %v6125_v10  ;;  %v12723_v38 = vand.u32 4294901760, %v12088_v31  ;;  %v12722_v57 = vand.u32 4294901760, %v12093_v7  ;;  %v12116_v26 = vsub.f32 %v12059_v5, %v5986_v14  ;;  %8543 = vmatprep.subr.bf16.mxu1 %v8542_v8  ;;  %v13077_v5 = vld [vmem:[#allocation15_spill] sm:$0xff] }
 0x5d4   : > { %v8546_v15 = vpack.c.bf16 %v5360_v60, %v5353_v44  ;;  %v12121_v9 = vsub.f32 %v12077_v21, %v5989_v59  ;;  %8645 = vmatpush3.bf16.msra.mxu0 %v11885_v3  ;;  %v12126_v48 = vpack.c.bf16 %v5947_v6, %v5944_v12  ;;  %v8548_v8 = vpack.c.bf16 %v5248_v52, %v5241_v17  ;;  %v13078_v21 = vld [vmem:[#allocation22_spill] sm:$0xff] }
 0x5d5   : > { %v12105_v24 = vpack.c.bf16 %v6126_v43, %v6119_v39  ;;  %v6132_v41 = vsub.f32 %v12088_v31, %v12723_v38  ;;  %v6139_v23 = vsub.f32 %v12093_v7, %v12722_v57  ;;  %v12721_v39 = vand.u32 4294901760, %v12116_v26  ;;  %8647 = vmatprep.subr.bf16.mxu0 %v11635_v0  ;;  %v13084_v57 = vld [vmem:[#allocation35_spill] sm:$0xff] }
 0x5d6   : > { %v12720_v63 = vand.u32 4294901760, %v12121_v9  ;;  %8545 = vmatpush3.bf16.msra.mxu1 %v8544_v37  ;;  %v12138_v0 = vsub.f32 %v413_v46, %v5944_v12  ;;  %v12140_v60 = vsub.f32 %v414_v18, %v5947_v6  ;;  %v13055_v17 = vand.u32 4294901760, %v11796_v25 }
 0x5d7   : > { %v6133_v43 = vand.u32 4294901760, %v6132_v41  ;;  %v6140_v19 = vand.u32 4294901760, %v6139_v23  ;;  %v6146_v10 = vsub.f32 %v12116_v26, %v12721_v39  ;;  %8547 = vmatprep.subr.bf16.mxu1 %v8546_v15  ;;  %v13056_v37 = vand.u32 4294901760, %v11801_v36 }
 0x5d8   : > { %v6153_v3 = vsub.f32 %v12121_v9, %v12720_v63  ;;  %8649 = vmatpush3.bf16.msra.mxu0 %v11638_v58  ;;  %v12151_v15 = vpack.c.bf16 %v12140_v60, %v12138_v0  ;;  %v12159_v6 = vpack.c.bf16 %v11869_v61, %v11864_v47  ;;  %v13057_v25 = vand.u32 4294901760, %v11838_v56 }
 0x5d9   : > { %v12129_v44 = vpack.c.bf16 %v6140_v19, %v6133_v43  ;;  %v6147_v41 = vand.u32 4294901760, %v6146_v10  ;;  %8683 = vmatprep.subr.bf16.mxu0 %v12126_v48  ;;  %v12147_v52 = vpack.c.bf16 %v13056_v37, %v13055_v17  ;;  %v13058_v36 = vand.u32 4294901760, %v11854_v1  ;;  %v13064_v19 = vld [vmem:[#allocation26_spill] sm:$0xff]  ;;  %v13068_v17 = vld [vmem:[#allocation16_spill] sm:$0xff] }
 0x5da   : > { %v6154_v23 = vand.u32 4294901760, %v6153_v3  ;;  %8549 = vmatpush3.bf16.msra.mxu1 %v8548_v8  ;;  %v13059_v1 = vand.u32 4294901760, %v11891_v49  ;;  %v13060_v56 = vand.u32 4294901760, %v11896_v45  ;;  %v13061_v49 = vand.u32 4294901760, %v11936_v4 }
 0x5db   : > { %5820 = vmatmul.mubr.f32.vlgmr.msra.gmra.mrb[18].mxu0 %v11776_v54  ;;  %8551 = vmatprep.subr.bf16.mxu1 %v11644_v22  ;;  %v12168_v12 = vpack.c.bf16 %v13058_v36, %v13057_v25  ;;  %v12175_v22 = vpack.c.bf16 %v11921_v53, %v11906_v50  ;;  %v13062_v45 = vand.u32 4294901760, %v11943_v16  ;;  %v13063_v43 = vand.u32 4294901760, %v11817_v55 }
 0x5dc   : > { %v12155_v58 = vpack.c.bf16 %v6154_v23, %v6147_v41  ;;  %5825 = vmatprep.mubr.f32.mxu0 %v11811_v11  ;;  %8685 = vmatpush3.bf16.msra.mxu0 %v12126_v48  ;;  %v12184_v46 = vpack.c.bf16 %v13060_v56, %v13059_v1  ;;  %v12208_v8 = vpack.c.bf16 %v12007_v51, %v11997_v40  ;;  %v13065_v4 = vand.u32 4294901760, %v11973_v33  ;;  %v13067_v41 = vld [vmem:[#allocation12_spill] sm:$0xff]  ;;  %v13071_v23 = vld [vmem:[#allocation41_spill] sm:$0xff] }
 0x5dd   : > { %8687 = vmatprep.subr.bf16.mxu0 %v12147_v52  ;;  %v12200_v18 = vpack.c.bf16 %v13062_v45, %v13061_v49  ;;  %v13066_v16 = vand.u32 4294901760, %v11984_v20  ;;  %v6047_v3 = vand.u32 4294901760, %v12138_v0  ;;  %v12724_v55 = vand.u32 4294901760, %v12140_v60  ;;  %v13069_v33 = vld [vmem:[#allocation40_spill] sm:$0xff]  ;;  %v13073_v49 = vld [vmem:[#allocation25_spill] sm:$0xff]  ;;  %v13074_v45 = vld [vmem:[#allocation30_spill] sm:$0xff] }
 0x5de   : > { %8553 = vmatpush3.bf16.msra.mxu1 %v11646_v2  ;;  %v12191_v2 = vpack.c.bf16 %v11956_v32, %v11951_v28  ;;  %v12224_v37 = vpack.c.bf16 %v12041_v27, %v12036_v35  ;;  %v13070_v20 = vand.u32 4294901760, %v13069_v33  ;;  %v13072_v25 = vand.u32 4294901760, %v13071_v23  ;;  %v13076_v23 = vld [vmem:[#allocation19_spill] sm:$0xff] }
 0x5df   : > { %5827 = vmatmul.mubr.f32.gmra.mrb[20].mxu0 %v11807_v30  ;;  %8587 = vmatprep.subr.bf16.mxu1 %v11328_v42  ;;  %v12216_v10 = vpack.c.bf16 %v13066_v16, %v13065_v4  ;;  %v6048_v1 = vsub.f32 %v12138_v0, %v6047_v3  ;;  %v6055_v56 = vsub.f32 %v12140_v60, %v12724_v55  ;;  %v13088_v55 = vld [vmem:[#allocation33_spill] sm:$0xff]  ;;  %v13095_v0 = vand.u32 4294901760, %v11906_v50 }
 0x5e0   : > { %8689 = vmatpush3.bf16.msra.mxu0 %v12147_v52  ;;  %v12232_v36 = vpack.c.bf16 %v13072_v25, %v13070_v20  ;;  %v12252_v4 = vpack.c.bf16 %v5989_v59, %v5986_v14  ;;  %v13075_v20 = vld [vmem:[#allocation31_spill] sm:$0xff]  ;;  %v12258_v25 = vpack.c.bf16 %v12121_v9, %v12116_v26  ;;  %v13079_v14 = vld [vmem:[#allocation38_spill] sm:$0xff]  ;;  %v13101_v50 = vand.u32 4294901760, %v12036_v35 }
 0x5e1   : > { %5379 = vmatmul.mubr.f32.vlgmr.msra.gmra.mrb[34].mxu1 %v11776_v54  ;;  %8691 = vmatprep.subr.bf16.mxu0 %v12168_v12  ;;  %v6049_v16 = vand.u32 4294901760, %v6048_v1  ;;  %v6056_v33 = vand.u32 4294901760, %v6055_v56  ;;  %v13080_v59 = vld [vmem:[#allocation39_spill] sm:$0xff]  ;;  %v13082_v56 = vld [vmem:[#allocation34_spill] sm:$0xff] }
 0x5e2   : > { %5384 = vmatprep.mubr.f32.mxu1 %v11811_v11  ;;  %8589 = vmatpush3.bf16.msra.mxu1 %v11330_v29  ;;  %v13081_v1 = vld [vmem:[#allocation27_spill] sm:$0xff]  ;;  %v13083_v39 = vand.u32 4294901760, %v13082_v56 }
 0x5e3   : > { %8591 = vmatprep.subr.bf16.mxu1 %v11345_v13  ;;  %v8714_v63 = vpack.c.bf16 %v6056_v33, %v6049_v16  ;;  %v13085_v16 = vand.u32 4294901760, %v13084_v57  ;;  %v13086_v33 = vld [vmem:[#allocation11_spill] sm:$0xff] }
 0x5e4   : > { %8693 = vmatpush3.bf16.msra.mxu0 %v12168_v12  ;;  %v13087_v38 = vand.u32 4294901760, %v13086_v33 }
 0x5e5   : > { %5386 = vmatmul.mubr.f32.gmra.mrb[36].mxu1 %v11807_v30  ;;  %8695 = vmatprep.subr.bf16.mxu0 %v12184_v46 }
 0x5e6   : > { %8593 = vmatpush3.bf16.msra.mxu1 %v11358_v62  ;;  %5637 = vmatprep.mubr.f32.mxu1 %v13063_v43  ;;  %v12244_v43 = vpack.c.bf16 %v12093_v7, %v12088_v31 }
 0x5e7   : > { %8595 = vmatprep.subr.bf16.mxu1 %v13064_v19 }
 0x5e8   : > { %8697 = vmatpush3.bf16.msra.mxu0 %v12184_v46 }
 0x5e9   : > { %8699 = vmatprep.subr.bf16.mxu0 %v12200_v18 }
 0x5ea   : > { %8597 = vmatpush3.bf16.msra.mxu1 %v13067_v41 }
 0x5eb   : > { %8599 = vmatprep.subr.bf16.mxu1 %v13068_v17 }
 0x5ec   : > { %8701 = vmatpush3.bf16.msra.mxu0 %v12200_v18 }
 0x5ed   : > { %8703 = vmatprep.subr.bf16.mxu0 %v12216_v10 }
 0x5ee   : > { %8601 = vmatpush3.bf16.msra.mxu1 %v13073_v49 }
 0x5ef   : > { %8603 = vmatprep.subr.bf16.mxu1 %v13074_v45 }
 0x5f0   : > { %8705 = vmatpush3.bf16.msra.mxu0 %v12216_v10 }
 0x5f1   : > { %8707 = vmatprep.subr.bf16.mxu0 %v12232_v36 }
 0x5f2   : > { %8605 = vmatpush3.bf16.msra.mxu1 %v13075_v20 }
 0x5f3   : > { %8607 = vmatprep.subr.bf16.mxu1 %v13076_v23 }
 0x5f4   : > { %8709 = vmatpush3.bf16.msra.mxu0 %v12232_v36 }
 0x5f5   : > { %8711 = vmatprep.subr.bf16.mxu0 %v12252_v4 }
 0x5f6   : > { %8609 = vmatpush3.bf16.msra.mxu1 %v13077_v5 }
 0x5f7   : > { %8611 = vmatprep.subr.bf16.mxu1 %v13078_v21 }
 0x5f8   : > { %8713 = vmatpush3.bf16.msra.mxu0 %v12252_v4 }
 0x5f9   : > { %8715 = vmatprep.subr.bf16.mxu0 %v8714_v63 }
 0x5fa   : > { %8613 = vmatpush3.bf16.msra.mxu1 %v13079_v14 }
 0x5fb   : > { %8615 = vmatprep.subr.bf16.mxu1 %v13080_v59 }
 0x5fe   : > { %8617 = vmatpush3.bf16.msra.mxu1 %v13081_v1 }
 0x5ff   : > { %8651 = vmatprep.subr.bf16.mxu1 %v11328_v42 }
 0x601   : > { %5641 = vmatmul.mubr.f32.vlgmr.msra.gmra.mrb[38].mxu1 %v13083_v39 }
 0x602   : > { %5648 = vmatprep.mubr.f32.mxu1 %v13085_v16  ;;  %8653 = vmatpush3.bf16.msra.mxu1 %v11330_v29 }
 0x603   : > { %8655 = vmatprep.subr.bf16.mxu1 %v11345_v13 }
 0x605   : > { %5652 = vmatmul.mubr.f32.gmra.mrb[40].mxu1 %v13087_v38 }
 0x606   : > { %8657 = vmatpush3.bf16.msra.mxu1 %v11358_v62  ;;  %5929 = vmatprep.mubr.f32.mxu1 %v13088_v55 }
 0x607   : > { %8659 = vmatprep.subr.bf16.mxu1 %v13064_v19 }
 0x60a   : > { %8661 = vmatpush3.bf16.msra.mxu1 %v13067_v41 }
 0x60b   : > { %8663 = vmatprep.subr.bf16.mxu1 %v13068_v17  ;;  %v13089_v17 = vld [vmem:[#allocation36_spill] sm:$0xff] }
 0x60e   : > { %8665 = vmatpush3.bf16.msra.mxu1 %v13073_v49  ;;  %v13090_v49 = vld [vmem:[#allocation37_spill] sm:$0xff] }
 0x60f   : > { %8667 = vmatprep.subr.bf16.mxu1 %v13074_v45  ;;  %v13091_v45 = vld [vmem:[#allocation43_spill] sm:$0xff] }
 0x612   : > { %8669 = vmatpush3.bf16.msra.mxu1 %v13075_v20  ;;  %v13093_v20 = vand.u32 4294901760, %v11864_v47  ;;  %v13097_v47 = vand.u32 4294901760, %v11951_v28  ;;  %v13103_v28 = vand.u32 4294901760, %v12088_v31 }
 0x613   : > { %8671 = vmatprep.subr.bf16.mxu1 %v13076_v23  ;;  %v13094_v23 = vand.u32 4294901760, %v11869_v61  ;;  %v13098_v61 = vand.u32 4294901760, %v11956_v32  ;;  %v13104_v32 = vand.u32 4294901760, %v12093_v7 }
 0x615   : > { %v8834_v33 = vpack.c.bf16 %v13104_v32, %v13103_v28 }
 0x616   : > { %8673 = vmatpush3.bf16.msra.mxu1 %v13077_v5 }
 0x617   : > { %8675 = vmatprep.subr.bf16.mxu1 %v13078_v21 }
 0x61a   : > { %8677 = vmatpush3.bf16.msra.mxu1 %v13079_v14  ;;  %v8822_v14 = vpack.c.bf16 %v13098_v61, %v13097_v47  ;;  %v13108_v47 = vld [vmem:[#allocation32_spill] sm:$0xff] }
 0x61b   : > { %8679 = vmatprep.subr.bf16.mxu1 %v13080_v59  ;;  %v13099_v59 = vand.u32 4294901760, %v11997_v40 }
 0x61e   : > { %8681 = vmatpush3.bf16.msra.mxu1 %v13081_v1  ;;  %v13100_v1 = vand.u32 4294901760, %v12007_v51  ;;  %v13105_v51 = vand.u32 4294901760, %v12116_v26 }
 0x620   : > { %v8826_v56 = vpack.c.bf16 %v13100_v1, %v13099_v59  ;;  %v6652_v59 = vstv %s6758_s20 }
 0x621   : > { %5931 = vmatmul.mubr.f32.vlgmr.msra.gmra.mrb[42].mxu1 %v11776_v54 }
 0x622   : > { %5936 = vmatprep.mubr.f32.mxu1 %v11811_v11 }
 0x625   : > { %5938 = vmatmul.mubr.f32.gmra.mrb[44].mxu1 %v11807_v30 }
 0x62c   : > { %v12294_v42 = vpop.f32.mrb[28].mxu1 }
 0x62d   : > { %v12296_v29 = vpop.f32.mrb[29].mxu1 }
 0x62e   : > { %v5024_v13 = vmul.f32 %v12296_v29, %v12296_v29  ;;  %v12301_v62 = vand.u32 4294901760, %v12296_v29 }
 0x630   : > { %v6025_v57 = vsub.f32 %v12296_v29, %v12301_v62  ;;  %v12305_v38 = vand.u32 4294901760, %v5024_v13 }
 0x632   : > { %v12308_v54 = vsub.f32 %v5024_v13, %v12305_v38  ;;  %v6026_v11 = vand.u32 4294901760, %v6025_v57 }
 0x634   : > { %v6036_v30 = vand.u32 4294901760, %v12308_v54  ;;  %v6027_v39 = vsub.f32 %v6025_v57, %v6026_v11 }
 0x636   : > { %v6037_v19 = vsub.f32 %v12308_v54, %v6036_v30  ;;  %v6028_v55 = vand.u32 4294901760, %v6027_v39 }
 0x638   : > { %7568 = vmatprep.mubr.f32.mxu0 %v6028_v55  ;;  %v6038_v41 = vand.u32 4294901760, %v6037_v19 }
 0x63a   : > { %7569 = vmatmul.mubr.f32.vlgmr.msra.gmra.mrb[22].mxu0 %v6038_v41 }
 0x63b   : > { %8717 = vmatpush3.bf16.msra.mxu0 %v8714_v63  ;;  %7603 = vmatprep.mubr.f32.mxu0 %v12301_v62 }
 0x63c   : > { %8719 = vmatprep.subr.bf16.mxu0 %v13089_v17 }
 0x63f   : > { %8721 = vmatpush3.bf16.msra.mxu0 %v13089_v17 }
 0x640   : > { %8723 = vmatprep.subr.bf16.mxu0 %v13090_v49 }
 0x643   : > { %8725 = vmatpush3.bf16.msra.mxu0 %v13090_v49 }
 0x644   : > { %8727 = vmatprep.subr.bf16.mxu0 %v13091_v45 }
 0x647   : > { %8729 = vmatpush3.bf16.msra.mxu0 %v13091_v45 }
 0x648   : > { %8731 = vmatprep.subr.bf16.mxu0 %v12097_v34 }
 0x64b   : > { %8733 = vmatpush3.bf16.msra.mxu0 %v12097_v34 }
 0x64c   : > { %8735 = vmatprep.subr.bf16.mxu0 %v12105_v24 }
 0x64f   : > { %8737 = vmatpush3.bf16.msra.mxu0 %v12105_v24 }
 0x650   : > { %8739 = vmatprep.subr.bf16.mxu0 %v12129_v44 }
 0x653   : > { %8741 = vmatpush3.bf16.msra.mxu0 %v12129_v44 }
 0x654   : > { %8743 = vmatprep.subr.bf16.mxu0 %v12155_v58 }
 0x657   : > { %8745 = vmatpush3.bf16.msra.mxu0 %v12155_v58 }
 0x658   : > { %8747 = vmatprep.subr.bf16.mxu0 %v12151_v15 }
 0x65a   : > { %7604 = vmatmul.mubr.f32.vlgmr.msra.gmra.mrb[22].mxu0 %v12305_v38 }
 0x65b   : > { %8749 = vmatpush3.bf16.msra.mxu0 %v12151_v15  ;;  %7638 = vmatprep.mubr.f32.mxu0 %v6025_v57 }
 0x65c   : > { %8751 = vmatprep.subr.bf16.mxu0 %v12159_v6 }
 0x65f   : > { %8753 = vmatpush3.bf16.msra.mxu0 %v12159_v6 }
 0x660   : > { %8755 = vmatprep.subr.bf16.mxu0 %v12175_v22 }
 0x663   : > { %8757 = vmatpush3.bf16.msra.mxu0 %v12175_v22  ;;  %v13092_v22 = vand.u32 4294901760, %v12140_v60  ;;  %v13096_v60 = vand.u32 4294901760, %v11921_v53  ;;  %v13102_v53 = vand.u32 4294901760, %v12041_v27 }
 0x664   : > { %8759 = vmatprep.subr.bf16.mxu0 %v12191_v2 }
 0x665   : > { %v8830_v16 = vpack.c.bf16 %v13102_v53, %v13101_v50 }
 0x667   : > { %8761 = vmatpush3.bf16.msra.mxu0 %v12191_v2  ;;  %v8810_v2 = vpack.c.bf16 %v13092_v22, %v6047_v3  ;;  %v8818_v3 = vpack.c.bf16 %v13096_v60, %v13095_v0  ;;  %v13107_v60 = vld [vmem:[#allocation28_spill] sm:$0xff] }
 0x668   : > { %8763 = vmatprep.subr.bf16.mxu0 %v12208_v8 }
 0x66b   : > { %8765 = vmatpush3.bf16.msra.mxu0 %v12208_v8 }
 0x66c   : > { %8767 = vmatprep.subr.bf16.mxu0 %v12224_v37 }
 0x66f   : > { %8769 = vmatpush3.bf16.msra.mxu0 %v12224_v37 }
 0x670   : > { %8771 = vmatprep.subr.bf16.mxu0 %v12244_v43 }
 0x673   : > { %8773 = vmatpush3.bf16.msra.mxu0 %v12244_v43 }
 0x674   : > { %8775 = vmatprep.subr.bf16.mxu0 %v12258_v25 }
 0x677   : > { %8777 = vmatpush3.bf16.msra.mxu0 %v12258_v25  ;;  %v8814_v25 = vpack.c.bf16 %v13094_v23, %v13093_v20 }
 0x678   : > { %8779 = vmatprep.subr.bf16.mxu0 %v12126_v48 }
 0x67a   : > { %7639 = vmatmul.mubr.f32.vlgmr.msra.gmra.mrb[22].mxu0 %v12308_v54  ;;  %v13106_v54 = vand.u32 4294901760, %v12121_v9 }
 0x67b   : > { %8781 = vmatpush3.bf16.msra.mxu0 %v12126_v48  ;;  %7673 = vmatprep.mubr.f32.mxu0 %v6026_v11 }
 0x67c   : > { %8783 = vmatprep.subr.bf16.mxu0 %v12147_v52  ;;  %v8838_v35 = vpack.c.bf16 %v13106_v54, %v13105_v51  ;;  %v13110_v51 = vld [vmem:[#allocation24_spill] sm:$0xff] }
 0x67f   : > { %8785 = vmatpush3.bf16.msra.mxu0 %v12147_v52 }
 0x680   : > { %8787 = vmatprep.subr.bf16.mxu0 %v12168_v12 }
 0x683   : > { %8789 = vmatpush3.bf16.msra.mxu0 %v12168_v12 }
 0x684   : > { %8791 = vmatprep.subr.bf16.mxu0 %v12184_v46 }
 0x687   : > { %8793 = vmatpush3.bf16.msra.mxu0 %v12184_v46 }
 0x688   : > { %8795 = vmatprep.subr.bf16.mxu0 %v12200_v18 }
 0x68b   : > { %8797 = vmatpush3.bf16.msra.mxu0 %v12200_v18 }
 0x68c   : > { %8799 = vmatprep.subr.bf16.mxu0 %v12216_v10 }
 0x68e   : > { %v7170_v34 = vpop.f32.mrb[14].mxu0 }
 0x68f   : > { %8801 = vmatpush3.bf16.msra.mxu0 %v12216_v10  ;;  %v7171_v24 = vpop.f32.mrb[15].mxu0 }
 0x690   : > { %v7172_v63 = vadd.f32 %v7171_v24, %v7170_v34  ;;  %8803 = vmatprep.subr.bf16.mxu0 %v12232_v36 }
 0x692   : > { %v7173_v44 = vpop.f32.mrb[16].mxu0 }
 0x693   : > { %8805 = vmatpush3.bf16.msra.mxu0 %v12232_v36  ;;  %v7174_v15 = vpop.f32.mrb[17].mxu0 }
 0x694   : > { %v7175_v58 = vadd.f32 %v7174_v15, %v7173_v44  ;;  %v7094_v6 = vpop.f32.mrb[30].mxu1  ;;  %8807 = vmatprep.subr.bf16.mxu0 %v12252_v4 }
 0x695   : > { %v7095_v8 = vpop.f32.mrb[31].mxu1 }
 0x696   : > { %v7096_v37 = vadd.f32 %v7095_v8, %v7094_v6 }
 0x697   : > { %8809 = vmatpush3.bf16.msra.mxu0 %v12252_v4 }
 0x698   : > { %v7097_v43 = vpop.f32.mrb[32].mxu1  ;;  %8811 = vmatprep.subr.bf16.mxu0 %v8810_v2 }
 0x699   : > { %v7098_v5 = vpop.f32.mrb[33].mxu1 }
 0x69a   : > { %v7099_v21 = vadd.f32 %v7098_v5, %v7097_v43  ;;  %7674 = vmatmul.mubr.f32.vlgmr.msra.gmra.mrb[22].mxu0 %v6036_v30 }
 0x69b   : > { %8813 = vmatpush3.bf16.msra.mxu0 %v8810_v2  ;;  %7708 = vmatprep.mubr.f32.mxu0 %v12301_v62 }
 0x69c   : > { %8815 = vmatprep.subr.bf16.mxu0 %v8814_v25 }
 0x69f   : > { %8817 = vmatpush3.bf16.msra.mxu0 %v8814_v25 }
 0x6a0   : > { %8819 = vmatprep.subr.bf16.mxu0 %v8818_v3 }
 0x6a3   : > { %8821 = vmatpush3.bf16.msra.mxu0 %v8818_v3 }
 0x6a4   : > { %8823 = vmatprep.subr.bf16.mxu0 %v8822_v14 }
 0x6a7   : > { %8825 = vmatpush3.bf16.msra.mxu0 %v8822_v14 }
 0x6a8   : > { %8827 = vmatprep.subr.bf16.mxu0 %v8826_v56 }
 0x6ab   : > { %8829 = vmatpush3.bf16.msra.mxu0 %v8826_v56 }
 0x6ac   : > { %8831 = vmatprep.subr.bf16.mxu0 %v8830_v16 }
 0x6ae   : > { %v7246_v13 = vpop.f32.mrb[18].mxu0 }
 0x6af   : > { %v7247_v57 = vpop.f32.mrb[19].mxu0  ;;  %8833 = vmatpush3.bf16.msra.mxu0 %v8830_v16 }
 0x6b0   : > { %v7248_v40 = vadd.f32 %v7247_v57, %v7246_v13  ;;  %8835 = vmatprep.subr.bf16.mxu0 %v8834_v33 }
 0x6b2   : > { %v7249_v11 = vpop.f32.mrb[20].mxu0 }
 0x6b3   : > { %v7250_v27 = vpop.f32.mrb[21].mxu0  ;;  %8837 = vmatpush3.bf16.msra.mxu0 %v8834_v33 }
 0x6b4   : > { %v7251_v30 = vadd.f32 %v7250_v27, %v7249_v11  ;;  %v7132_v39 = vpop.f32.mrb[34].mxu1  ;;  %8839 = vmatprep.subr.bf16.mxu0 %v8838_v35 }
 0x6b5   : > { %v7133_v31 = vpop.f32.mrb[35].mxu1 }
 0x6b6   : > { %v7134_v19 = vadd.f32 %v7133_v31, %v7132_v39 }
 0x6b7   : > { %8841 = vmatpush3.bf16.msra.mxu0 %v8838_v35 }
 0x6b8   : > { %v5381_v7 = vadd.f32 %v7134_v19, %v7096_v37  ;;  %v7135_v55 = vpop.f32.mrb[36].mxu1  ;;  %8843 = vmatprep.subr.bf16.mxu0 %v12126_v48 }
 0x6b9   : > { %v7136_v41 = vpop.f32.mrb[37].mxu1 }
 0x6ba   : > { %v7137_v17 = vadd.f32 %v7136_v41, %v7135_v55  ;;  %7709 = vmatmul.mubr.f32.vlgmr.msra.gmra.mrb[22].mxu0 %v12305_v38  ;;  %v5526_v26 = vadd.f32 %v7172_v63, %v5381_v7 }
 0x6bb   : > { %8845 = vmatpush3.bf16.msra.mxu0 %v12126_v48  ;;  %7743 = vmatprep.mubr.f32.mxu0 %v12301_v62 }
 0x6bc   : > { %v5388_v9 = vadd.f32 %v7137_v17, %v7099_v21  ;;  %8847 = vmatprep.subr.bf16.mxu0 %v12147_v52 }
 0x6be   : > { %v5535_v49 = vadd.f32 %v7175_v58, %v5388_v9 }
 0x6bf   : > { %8849 = vmatpush3.bf16.msra.mxu0 %v12147_v52 }
 0x6c0   : > { %8851 = vmatprep.subr.bf16.mxu0 %v12168_v12 }
 0x6c3   : > { %8853 = vmatpush3.bf16.msra.mxu0 %v12168_v12 }
 0x6c4   : > { %8855 = vmatprep.subr.bf16.mxu0 %v12184_v46 }
 0x6c7   : > { %8857 = vmatpush3.bf16.msra.mxu0 %v12184_v46 }
 0x6c8   : > { %8859 = vmatprep.subr.bf16.mxu0 %v12200_v18 }
 0x6cb   : > { %8861 = vmatpush3.bf16.msra.mxu0 %v12200_v18 }
 0x6cc   : > { %8863 = vmatprep.subr.bf16.mxu0 %v12216_v10 }
 0x6cf   : > { %8865 = vmatpush3.bf16.msra.mxu0 %v12216_v10 }
 0x6d0   : > { %8867 = vmatprep.subr.bf16.mxu0 %v12232_v36 }
 0x6d3   : > { %8869 = vmatpush3.bf16.msra.mxu0 %v12232_v36 }
 0x6d4   : > { %v7208_v48 = vpop.f32.mrb[38].mxu1  ;;  %8871 = vmatprep.subr.bf16.mxu0 %v12252_v4 }
 0x6d5   : > { %v7209_v52 = vpop.f32.mrb[39].mxu1 }
 0x6d6   : > { %v7210_v12 = vadd.f32 %v7209_v52, %v7208_v48 }
 0x6d7   : > { %8873 = vmatpush3.bf16.msra.mxu0 %v12252_v4 }
 0x6d8   : > { %v5643_v46 = vadd.f32 %v7210_v12, %v5526_v26  ;;  %v7211_v62 = vpop.f32.mrb[40].mxu1 }
 0x6d9   : > { %v7212_v45 = vpop.f32.mrb[41].mxu1 }
 0x6da   : > { %v7213_v34 = vadd.f32 %v7212_v45, %v7211_v62  ;;  %7744 = vmatmul.mubr.f32.vlgmr.msra.gmra.mrb[22].mxu0 %v12305_v38  ;;  %v5822_v18 = vadd.f32 %v7248_v40, %v5643_v46 }
 0x6dc   : > { %v5654_v24 = vadd.f32 %v7213_v34, %v5535_v49 }
 0x6de   : > { %v5829_v10 = vadd.f32 %v7251_v30, %v5654_v24 }
 0x6f4   : > { %v7284_v63 = vpop.f32.mrb[42].mxu1 }
 0x6f5   : > { %v7285_v44 = vpop.f32.mrb[43].mxu1 }
 0x6f6   : > { %v7286_v15 = vadd.f32 %v7285_v44, %v7284_v63 }
 0x6f8   : > { %v7287_v36 = vpop.f32.mrb[44].mxu1  ;;  %v5933_v58 = vadd.f32 %v7286_v15, %v5822_v18 }
 0x6f9   : > { %v7288_v6 = vpop.f32.mrb[45].mxu1 }
 0x6fa   : > { %v7289_v22 = vadd.f32 %v7288_v6, %v7287_v36 }
 0x6fc   : > { %v5940_v2 = vadd.f32 %v7289_v22, %v5829_v10 }
 0x7ad   : > { %v7745_v8 = vpop.f32.mrb[22].mxu0 }
 0x7ae   : > { %v8880_v4 = vadd.f32 %v7745_v8, %v5940_v2  ;;  %v6617_v37 = vpop.f32.mrb[23].mxu0 }
 0x7af   : > { %v8881_v43 = vadd.f32 %v6617_v37, %v5933_v58 }
 0x7b0   : > { %v6628_v23 = vmul.f32 0.00390625, %v8880_v4 }
 0x7b1   : > { %v6627_v20 = vmul.f32 0.00390625, %v8881_v43 }
 0x7b3   : > { %v6629_v38 = vmul.f32 %v6627_v20, %v6627_v20  ;;  %6633 = vperm.xlu0 %9022, %v6627_v20  }
 0x7b5   : > { %v6630_v25 = vsub.f32 %v6628_v23, %v6629_v38 }
 0x7b7   : > { %v6639_v5 = vadd.f32 1e-05, %v6630_v25 }
 0x7b9   : > { %9026 = vrsqrt.f32 %v6639_v5 }
 0x7c3   : > { %v9027_v21 = vpop.eup %9026 }
 0x7c4   : > { %6643 = vperm.xlu1 %9023, %v9027_v21  }
 0x832   : > { %v6634_v0 = vpop.permute.xlu0 %6633 }
 0x833   : > { %v6636_v3 = vsub.f32 %v13107_v60, %v6634_v0  ;;  %v6637_v61 = vsub.f32 %v13108_v47, %v6634_v0  ;;  %v6638_v14 = vsub.f32 %v12296_v29, %v6634_v0  ;;  %v13109_v29 = vld [vmem:[#allocation10_spill] sm:$0xff] }
 0x843   : > { %v6644_v1 = vpop.permute.xlu1 %6643 }
 0x844   : > { %v6646_v56 = vmul.f32 %v6644_v1, %v6636_v3  ;;  %v6647_v50 = vmul.f32 %v6644_v1, %v6637_v61  ;;  %v6648_v53 = vmul.f32 %v6644_v1, %v6638_v14 }
 0x846   : > { %vm6649_vm1 = vcmp.ge.f32.partialorder %v6646_v56, 0.0  ;;  %vm6650_vm2 = vcmp.ge.f32.partialorder %v6647_v50, 0.0  ;;  %vm6651_vm3 = vcmp.ge.f32.partialorder %v6648_v53, 0.0  ;;  %v6653_v16 = vmul.f32 %v6652_v59, %v6646_v56 }
 0x847   : > { %v6654_v28 = vmul.f32 %v6652_v59, %v6647_v50  ;;  %v6655_v32 = vmul.f32 %v6652_v59, %v6648_v53 }
 0x848   : > { %v6656_v33 = vsel %vm6649_vm1, %v6646_v56, %v6653_v16 }
 0x849   : > { %v6657_v13 = vsel %vm6650_vm2, %v6647_v50, %v6654_v28  ;;  %v6658_v57 = vsel %vm6651_vm3, %v6648_v53, %v6655_v32  ;;  %v6659_v40 = vadd.f32 %v6656_v33, %v13109_v29 }
 0x84a   : > { %v6660_v54 = vadd.f32 %v6657_v13, %v13110_v51  ;;  %v6661_v35 = vadd.f32 %v12294_v42, %v6658_v57 }
 0x84b   : > { %6662 = vst [vmem:[%s285_s29] sm:$0xff] %v6659_v40 }
 0x84c   : > { %6663 = vst [vmem:[%s285_s29 + $0x8] sm:$0xff] %v6660_v54  ;;  %6664 = vst [vmem:[%s285_s29 + $0x10] sm:$0xff] %v6661_v35 }
 0x84d   : > { %9056 = shalt.err (!%p9053_p2)
}
 0x84e   : > { %s9057_s19 = scalar_lea.hbm %s12430_s15, 384  ;;  %s9061_s22 = scalar_lea.hbm %s12481_s7, 768 }
 0x84f   : > { %p9058_p3 = scmp.ne.s32.totalorder %s12430_s15, %s9057_s19  ;;  %p9062_p8 = scmp.lt.u32.totalorder %s12430_s15, %s12481_s7 }
 0x850   : > { %p9063_p11 = scmp.lt.u32.totalorder %s9061_s22, %s9057_s19  ;;  %p9065_p10 = scmp.lt.u32.totalorder %s9057_s19, %s12430_s15 }
 0x851   : > { %p9059_p4 = pnand %p9058_p3, %p9204_p5 }
 0x852   : > { %p9064_p9 = por %p9063_p11, %p9062_p8 }
 0x853   : > { %p9060_p7 = pneg %p9059_p4 }
 0x854   : > { %p9066_p12 = por %p9065_p10, %p9064_p9 }
 0x856   : > { %p9067_p13 = pnand %p9066_p12, %p9060_p7 }
 0x858   : > { %9070 = shalt.err (!%p9067_p13)
}
 0x859   : > { %8963 = dma.vmem_to_hbm [thread:$0]  (%p9204_p5), %s12432_s9, 384, %s12430_s15, %s6666_s28  }
 0x85a PF: > { %p8975_p0 = scmp.ge.s32.totalorder %s9109_s27, 2  ;;  %s6692_s13 = sand.u32 1, %s9097_s24  }
 0x85b   : > { %s6693_s14 = scalar_lea.sflag [#allocation5], %s6692_s13 }
 0x85c   : > { %p8970_p1 = pnand %p8975_p0, %p9208_p6 }
 0x85e   : > { %9092 = dma.done.wait (!%p8970_p1), %s6693_s14, 384  }
 0x85f   : > { %9094 = vsyncadd (!%p8970_p1), %s6693_s14, 4294966912  ;;  %p18_p2 = scmp.ge.s32.totalorder %s9191_s30, 4   ;;  %s13111_s24 = smov %s9101_s25 }
 0x860   : > { %s13112_s25 = smov %s9105_s26  ;;  %s13113_s26 = smov %s9202_s10 }
 0x861   : > { %s13114_s27 = smov %s9191_s30  ;;  %20 = sbr.rel (!%p18_p2) target bundleno = 4 (0x4), region = 89 }
 0x868   :  { %6698 = vsyncpa [#allocation5], 1 }
 0x869   :  { %6700 = vsyncpa [#allocation5 + $0x1], 1 }
 0x86a   :  { %6701 = vsyncpa [#allocation6], 1 }
 0x86b   :  { %6703 = vsyncpa [#allocation6 + $0x1], 1 }

</bundles_post_ra>
